<compile_context>
chip_gen: v6e
topology: v6e:2x2x1
jax: 0.10.0
libtpu: 0.0.40
codegen_flags: <defaults>
</compile_context>

<pallas_src>
import functools
import numpy as np
import jax
import jax.numpy as jnp
from jax import lax
from jax.experimental import pallas as pl
from jax.experimental.pallas import tpu as pltpu

# ---- model dimensions (ConvMDN(input_channel=4, dim_output=2, fc_input=32,
# ---- num_components=3) on a 16x16 input) --------------------------------
INPUT_CHANNEL = 4
DIM_OUTPUT = 2
NUM_COMPONENTS = 3
DIM_FEA = NUM_COMPONENTS * DIM_OUTPUT * 3       # 18
FC_INPUT = 32
FC_HIDDEN = 128
NEG_SLOPE = 0.1

C = 32                    # conv channels
H1 = 6                    # conv1 output spatial (16 -> 6 with k=5, stride=2)
HP = 3                    # spatial after 2x2 maxpool
P2 = HP * HP              # 9 spatial positions for conv2..6
FLAT = P2 * C             # 288 = flattened (h, w, c) activation
K1 = INPUT_CHANNEL * 5 * 5  # 100 im2col contraction for conv1
K1_PAD = 128              # pad contraction dim to a lane multiple


def _full_spec(shape):
    nd = len(shape)
    return pl.BlockSpec(shape, lambda *_: (0,) * nd)


def _leaky(v):
    return jnp.where(v > 0, v, NEG_SLOPE * v)


# ------------------------------ fused kernel --------------------------------

def _convmdn_kernel(rows1_ref, w1_ref, b1_ref, e_ref,
                    d2_ref, b2_ref, d3_ref, b3_ref, d4_ref, b4_ref,
                    d5_ref, b5_ref, d6_ref, b6_ref,
                    dfc1_ref, bfc1_ref, wfc2_ref, bfc2_ref,
                    wpi_ref, bpi_ref, wmu_ref, bmu_ref, wsg_ref, bsg_ref,
                    pi_ref, mu_ref, sg_ref):
    f32 = jnp.float32

    # conv1 (BN folded) evaluated per 2x2-maxpool tap, max over taps, then
    # LeakyReLU.  (leaky is monotonic => pool(leaky(x)) == leaky(pool(x)).)
    y = None
    for t in range(4):
        yt = jnp.dot(rows1_ref[t], w1_ref[...],
                     preferred_element_type=f32) + b1_ref[...]
        y = yt if y is None else jnp.maximum(y, yt)
    a1_rows = _leaky(y)                               # (N*9, 32), rows = (n,hp,wp)

    # Layout change: (n, p) rows x c lanes  ->  n rows x (p, c) lanes.
    # Done with 9 tiny 0/1-selection matmuls + a lane concat (MXU only, no
    # in-kernel transposes/reshapes).
    a1 = jnp.concatenate(
        [jnp.dot(e_ref[p], a1_rows, preferred_element_type=f32)
         for p in range(P2)], axis=1)                 # (N, 288)

    # conv2..conv6: each 3x3/pad1 conv on the 3x3x32 map is a dense (288,288)
    # matrix -> one MXU matmul per layer; residuals are plain adds in vregs.
    o2 = _leaky(jnp.dot(a1, d2_ref[...], preferred_element_type=f32) + b2_ref[...])
    o3 = _leaky(jnp.dot(o2, d3_ref[...], preferred_element_type=f32) + b3_ref[...] + a1)
    o4 = _leaky(jnp.dot(o3, d4_ref[...], preferred_element_type=f32) + b4_ref[...])
    o5 = _leaky(jnp.dot(o4, d5_ref[...], preferred_element_type=f32) + b5_ref[...])
    o6 = _leaky(jnp.dot(o5, d6_ref[...], preferred_element_type=f32) + b6_ref[...] + o3)

    # AvgPool2d(2,2) (floor mode) + fc1 folded into a single (288,128) matrix.
    h = jnp.maximum(
        jnp.dot(o6, dfc1_ref[...], preferred_element_type=f32) + bfc1_ref[...], 0.0)
    feat = jnp.dot(h, wfc2_ref[...], preferred_element_type=f32) + bfc2_ref[...]

    # MDN head: pi softmax / mu / sigma = exp(.)
    logits = jnp.dot(feat, wpi_ref[...], preferred_element_type=f32) + bpi_ref[...]
    logits = logits - jnp.max(logits, axis=-1, keepdims=True)
    ez = jnp.exp(logits)
    pi_ref[...] = (ez / jnp.sum(ez, axis=-1, keepdims=True)).astype(pi_ref.dtype)
    mu_ref[...] = (jnp.dot(feat, wmu_ref[...], preferred_element_type=f32)
                   + bmu_ref[...]).astype(mu_ref.dtype)
    s = jnp.dot(feat, wsg_ref[...], preferred_element_type=f32) + bsg_ref[...]
    sg_ref[...] = jnp.exp(s).astype(sg_ref.dtype)


# ----------------------------- host-side glue -------------------------------

def _conv1_rows(x):
    """im2col for conv1 only (k=5, stride=2, no pad) on the raw input, grouped
    by 2x2-maxpool tap.  Returns (4, N*9, 128): columns = (c_in, ki, kj) zero
    padded 100 -> 128; rows within each tap ordered (n, hp, wp)."""
    N = x.shape[0]
    patches = []
    for i in range(5):
        for j in range(5):
            patches.append(x[:, :, i:i + 2 * H1:2, j:j + 2 * H1:2])  # (N,4,6,6)
    p = jnp.stack(patches, axis=2)                       # (N, 4, 25, 6, 6)
    p = p.transpose(0, 3, 4, 1, 2).reshape(N, H1, H1, K1)  # cols = (cin, tap)
    p = jnp.pad(p, ((0, 0), (0, 0), (0, 0), (0, K1_PAD - K1)))
    # ho = 2*hp + a, wo = 2*wp + b  ->  group rows by pool tap (a, b)
    p = p.reshape(N, HP, 2, HP, 2, K1_PAD).transpose(2, 4, 0, 1, 3, 5)
    return p.reshape(4, N * P2, K1_PAD)


def conv_mdn_forward(x, K):
    """Fused ConvMDN forward.  x: (N, 4, 16, 16); K: packed operands."""
    N = x.shape[0]
    rows1 = _conv1_rows(x)
    args = (rows1, K["w1"], K["b1"], K["E"],
            K["d2"], K["b2"], K["d3"], K["b3"], K["d4"], K["b4"],
            K["d5"], K["b5"], K["d6"], K["b6"],
            K["dfc1"], K["bfc1"], K["wfc2"], K["bfc2"],
            K["wpi"], K["bpi"], K["wmu"], K["bmu"], K["wsg"], K["bsg"])
    out_shapes = (jax.ShapeDtypeStruct((N, NUM_COMPONENTS), x.dtype),
                  jax.ShapeDtypeStruct((N, NUM_COMPONENTS * DIM_OUTPUT), x.dtype),
                  jax.ShapeDtypeStruct((N, NUM_COMPONENTS * DIM_OUTPUT), x.dtype))
    pi, mu, sg = pl.pallas_call(
        _convmdn_kernel,
        out_shape=out_shapes,
        grid=(1,),
        in_specs=[_full_spec(a.shape) for a in args],
        out_specs=[_full_spec(s.shape) for s in out_shapes],
        compiler_params=pltpu.CompilerParams(dimension_semantics=("arbitrary",)),
    )(*args)
    return (pi,
            mu.reshape(N, NUM_COMPONENTS, DIM_OUTPUT),
            sg.reshape(N, NUM_COMPONENTS, DIM_OUTPUT))


# ------------------------------- parameters ---------------------------------

def init_params(key):
    """Raw (BN folded, inference mode) parameters."""
    keys = jax.random.split(key, 64)
    it = iter(keys)
    nxt = lambda: next(it)
    eps = 1e-5
    P = {}
    conv_defs = [("1", INPUT_CHANNEL, C, 5)] + [(str(i), C, C, 3) for i in range(2, 7)]
    for name, cin, cout, k in conv_defs:
        fan_in = cin * k * k
        w = jax.random.normal(nxt(), (cout, cin, k, k), jnp.float32) * np.sqrt(2.0 / fan_in)
        gamma = 1.0 + 0.05 * jax.random.normal(nxt(), (cout,), jnp.float32)
        beta = 0.05 * jax.random.normal(nxt(), (cout,), jnp.float32)
        rmean = 0.05 * jax.random.normal(nxt(), (cout,), jnp.float32)
        rvar = 0.9 + 0.2 * jax.random.uniform(nxt(), (cout,), jnp.float32)
        scale = gamma / jnp.sqrt(rvar + eps)
        P[f"k{name}"] = w * scale[:, None, None, None]      # folded conv kernel
        P[f"cb{name}"] = beta - rmean * scale               # folded bias

    def linear(cin, cout):
        w = jax.random.normal(nxt(), (cin, cout), jnp.float32) * np.sqrt(1.0 / cin)
        b = 0.01 * jax.random.normal(nxt(), (cout,), jnp.float32)
        return w, b

    P["fc1_w"], P["fc1_b"] = linear(FC_INPUT, FC_HIDDEN)
    P["fc2_w"], P["fc2_b"] = linear(FC_HIDDEN, DIM_FEA)
    P["mdn_wp"], P["mdn_bp"] = linear(DIM_FEA, NUM_COMPONENTS)
    P["mdn_wm"], P["mdn_bm"] = linear(DIM_FEA, NUM_COMPONENTS * DIM_OUTPUT)
    P["mdn_ws"], P["mdn_bs"] = linear(DIM_FEA, NUM_COMPONENTS * DIM_OUTPUT)
    return P


def _conv3x3_to_dense(k):
    """Fold a 3x3/pad1 conv on a 3x3 spatial map into a (288, 288) matrix acting
    on the (h, w, c)-flattened activation."""
    k = np.asarray(k)
    cout, cin = k.shape[0], k.shape[1]
    D = np.zeros((P2 * cin, P2 * cout), np.float32)
    for ho in range(HP):
        for wo in range(HP):
            for ki in range(3):
                for kj in range(3):
                    h, w = ho + ki - 1, wo + kj - 1
                    if 0 <= h < HP and 0 <= w < HP:
                        D[(h * HP + w) * cin:(h * HP + w + 1) * cin,
                          (ho * HP + wo) * cout:(ho * HP + wo + 1) * cout] = k[:, :, ki, kj].T
    return D


def pack_params(P, batch):
    """Build the VMEM-resident operand set for the fused kernel."""
    K = {}
    # conv1 im2col weight, contraction padded 100 -> 128
    w1 = np.asarray(P["k1"]).reshape(C, K1).T                    # (100, 32)
    K["w1"] = jnp.asarray(np.pad(w1, ((0, K1_PAD - K1), (0, 0))))
    K["b1"] = jnp.asarray(np.asarray(P["cb1"]).reshape(1, C))
    # row-selection matrices for the (n*9, 32) -> (n, 288) layout change
    E = np.zeros((P2, batch, batch * P2), np.float32)
    for p in range(P2):
        for n in range(batch):
            E[p, n, n * P2 + p] = 1.0
    K["E"] = jnp.asarray(E)
    # conv2..6 folded to dense matrices; biases tiled over the 9 positions
    for i in range(2, 7):
        K[f"d{i}"] = jnp.asarray(_conv3x3_to_dense(P[f"k{i}"]))
        K[f"b{i}"] = jnp.asarray(np.tile(np.asarray(P[f"cb{i}"]), P2).reshape(1, FLAT))
    # AvgPool2d(2,2) (floor -> window at spatial (0:2, 0:2)) folded into fc1
    fc1 = np.asarray(P["fc1_w"])                                 # (32, 128)
    dfc1 = np.zeros((FLAT, FC_HIDDEN), np.float32)
    for hp in (0, 1):
        for wp in (0, 1):
            p = hp * HP + wp
            dfc1[p * C:(p + 1) * C, :] = 0.25 * fc1
    K["dfc1"] = jnp.asarray(dfc1)
    K["bfc1"] = P["fc1_b"].reshape(1, FC_HIDDEN)
    K["wfc2"] = P["fc2_w"]
    K["bfc2"] = P["fc2_b"].reshape(1, DIM_FEA)
    K["wpi"], K["bpi"] = P["mdn_wp"], P["mdn_bp"].reshape(1, -1)
    K["wmu"], K["bmu"] = P["mdn_wm"], P["mdn_bm"].reshape(1, -1)
    K["wsg"], K["bsg"] = P["mdn_ws"], P["mdn_bs"].reshape(1, -1)
    return K


# --------------------------- pure-JAX reference ------------------------------

def reference_forward(x, P):
    """Independent reference: real convolutions/pools on the raw folded params
    (does not reuse any of the Pallas-side matrix folding)."""
    def conv(v, k, b, stride, pad):
        y = lax.conv_general_dilated(v, k, (stride, stride),
                                     [(pad, pad), (pad, pad)],
                                     dimension_numbers=("NCHW", "OIHW", "NCHW"))
        return y + b[None, :, None, None]

    leaky = lambda v: jnp.where(v > 0, v, NEG_SLOPE * v)
    N = x.shape[0]
    o1 = leaky(conv(x, P["k1"], P["cb1"], 2, 0))                       # (N,32,6,6)
    o1 = o1.reshape(N, C, HP, 2, HP, 2).max(axis=(3, 5))               # maxpool 2x2
    o2 = leaky(conv(o1, P["k2"], P["cb2"], 1, 1))
    o3 = leaky(conv(o2, P["k3"], P["cb3"], 1, 1) + o1)
    o4 = leaky(conv(o3, P["k4"], P["cb4"], 1, 1))
    o5 = leaky(conv(o4, P["k5"], P["cb5"], 1, 1))
    o6 = leaky(conv(o5, P["k6"], P["cb6"], 1, 1) + o3)
    ap = o6[:, :, 0:2, 0:2].mean(axis=(2, 3))                          # AvgPool2d(2,2), floor
    h = jnp.maximum(ap @ P["fc1_w"] + P["fc1_b"], 0.0)
    f = h @ P["fc2_w"] + P["fc2_b"]
    logits = f @ P["mdn_wp"] + P["mdn_bp"]
    logits = logits - jnp.max(logits, axis=-1, keepdims=True)
    e = jnp.exp(logits)
    pi = e / jnp.sum(e, axis=-1, keepdims=True)
    mu = (f @ P["mdn_wm"] + P["mdn_bm"]).reshape(N, NUM_COMPONENTS, DIM_OUTPUT)
    sg = jnp.exp(f @ P["mdn_ws"] + P["mdn_bs"]).reshape(N, NUM_COMPONENTS, DIM_OUTPUT)
    return pi, mu, sg


# ---------------------------------- main -------------------------------------

if __name__ == "__main__":
    x = jax.random.normal(jax.random.PRNGKey(0), (2, INPUT_CHANNEL, 16, 16), jnp.float32)
    P = init_params(jax.random.PRNGKey(42))
    K = pack_params(P, batch=x.shape[0])

    fwd = jax.jit(conv_mdn_forward)
    pi, mu, sigma = fwd(x, K)
    jax.block_until_ready((pi, mu, sigma))

    assert pi.shape == (2, NUM_COMPONENTS)
    assert mu.shape == (2, NUM_COMPONENTS, DIM_OUTPUT)
    assert sigma.shape == (2, NUM_COMPONENTS, DIM_OUTPUT)

    # independent pure-JAX reference (real convs/pools) as a sanity check
    rpi, rmu, rsg = reference_forward(x, P)
    for a, b in ((pi, rpi), (mu, rmu), (sigma, rsg)):
        err = float(jnp.max(jnp.abs(a - b)))
        if err > 5e-2:
            raise RuntimeError(f"Pallas vs reference mismatch: max abs err {err}")

    print("KERNEL_OK")
</pallas_src>

<mosaic_0001>
module attributes {stable_mosaic.version = 11 : i64} {
  func.func @_convmdn_kernel(%arg0: i32, %arg1: memref<4x18x128xf32, #tpu.memory_space<vmem>>, %arg2: memref<128x32xf32, #tpu.memory_space<vmem>>, %arg3: memref<1x32xf32, #tpu.memory_space<vmem>>, %arg4: memref<9x2x18xf32, #tpu.memory_space<vmem>>, %arg5: memref<288x288xf32, #tpu.memory_space<vmem>>, %arg6: memref<1x288xf32, #tpu.memory_space<vmem>>, %arg7: memref<288x288xf32, #tpu.memory_space<vmem>>, %arg8: memref<1x288xf32, #tpu.memory_space<vmem>>, %arg9: memref<288x288xf32, #tpu.memory_space<vmem>>, %arg10: memref<1x288xf32, #tpu.memory_space<vmem>>, %arg11: memref<288x288xf32, #tpu.memory_space<vmem>>, %arg12: memref<1x288xf32, #tpu.memory_space<vmem>>, %arg13: memref<288x288xf32, #tpu.memory_space<vmem>>, %arg14: memref<1x288xf32, #tpu.memory_space<vmem>>, %arg15: memref<288x128xf32, #tpu.memory_space<vmem>>, %arg16: memref<1x128xf32, #tpu.memory_space<vmem>>, %arg17: memref<128x18xf32, #tpu.memory_space<vmem>>, %arg18: memref<1x18xf32, #tpu.memory_space<vmem>>, %arg19: memref<18x3xf32, #tpu.memory_space<vmem>>, %arg20: memref<1x3xf32, #tpu.memory_space<vmem>>, %arg21: memref<18x6xf32, #tpu.memory_space<vmem>>, %arg22: memref<1x6xf32, #tpu.memory_space<vmem>>, %arg23: memref<18x6xf32, #tpu.memory_space<vmem>>, %arg24: memref<1x6xf32, #tpu.memory_space<vmem>>, %arg25: memref<2x3xf32, #tpu.memory_space<vmem>>, %arg26: memref<2x6xf32, #tpu.memory_space<vmem>>, %arg27: memref<2x6xf32, #tpu.memory_space<vmem>>) attributes {dimension_semantics = [#tpu.dimension_semantics<arbitrary>], iteration_bounds = array<i64: 1>, scalar_prefetch = 0 : i64, scratch_operands = 0 : i64, tpu.core_type = #tpu.core_type<tc>, window_params = [{pipeline_mode = #tpu.pipeline_mode<synchronous>, transform_indices = @transform_0, window_bounds = array<i64: 4, 18, 128>}, {pipeline_mode = #tpu.pipeline_mode<synchronous>, transform_indices = @transform_1, window_bounds = array<i64: 128, 32>}, {pipeline_mode = #tpu.pipeline_mode<synchronous>, transform_indices = @transform_2, window_bounds = array<i64: 1, 32>}, {pipeline_mode = #tpu.pipeline_mode<synchronous>, transform_indices = @transform_3, window_bounds = array<i64: 9, 2, 18>}, {pipeline_mode = #tpu.pipeline_mode<synchronous>, transform_indices = @transform_4, window_bounds = array<i64: 288, 288>}, {pipeline_mode = #tpu.pipeline_mode<synchronous>, transform_indices = @transform_5, window_bounds = array<i64: 1, 288>}, {pipeline_mode = #tpu.pipeline_mode<synchronous>, transform_indices = @transform_6, window_bounds = array<i64: 288, 288>}, {pipeline_mode = #tpu.pipeline_mode<synchronous>, transform_indices = @transform_7, window_bounds = array<i64: 1, 288>}, {pipeline_mode = #tpu.pipeline_mode<synchronous>, transform_indices = @transform_8, window_bounds = array<i64: 288, 288>}, {pipeline_mode = #tpu.pipeline_mode<synchronous>, transform_indices = @transform_9, window_bounds = array<i64: 1, 288>}, {pipeline_mode = #tpu.pipeline_mode<synchronous>, transform_indices = @transform_10, window_bounds = array<i64: 288, 288>}, {pipeline_mode = #tpu.pipeline_mode<synchronous>, transform_indices = @transform_11, window_bounds = array<i64: 1, 288>}, {pipeline_mode = #tpu.pipeline_mode<synchronous>, transform_indices = @transform_12, window_bounds = array<i64: 288, 288>}, {pipeline_mode = #tpu.pipeline_mode<synchronous>, transform_indices = @transform_13, window_bounds = array<i64: 1, 288>}, {pipeline_mode = #tpu.pipeline_mode<synchronous>, transform_indices = @transform_14, window_bounds = array<i64: 288, 128>}, {pipeline_mode = #tpu.pipeline_mode<synchronous>, transform_indices = @transform_15, window_bounds = array<i64: 1, 128>}, {pipeline_mode = #tpu.pipeline_mode<synchronous>, transform_indices = @transform_16, window_bounds = array<i64: 128, 18>}, {pipeline_mode = #tpu.pipeline_mode<synchronous>, transform_indices = @transform_17, window_bounds = array<i64: 1, 18>}, {pipeline_mode = #tpu.pipeline_mode<synchronous>, transform_indices = @transform_18, window_bounds = array<i64: 18, 3>}, {pipeline_mode = #tpu.pipeline_mode<synchronous>, transform_indices = @transform_19, window_bounds = array<i64: 1, 3>}, {pipeline_mode = #tpu.pipeline_mode<synchronous>, transform_indices = @transform_20, window_bounds = array<i64: 18, 6>}, {pipeline_mode = #tpu.pipeline_mode<synchronous>, transform_indices = @transform_21, window_bounds = array<i64: 1, 6>}, {pipeline_mode = #tpu.pipeline_mode<synchronous>, transform_indices = @transform_22, window_bounds = array<i64: 18, 6>}, {pipeline_mode = #tpu.pipeline_mode<synchronous>, transform_indices = @transform_23, window_bounds = array<i64: 1, 6>}, {pipeline_mode = #tpu.pipeline_mode<synchronous>, transform_indices = @transform_24, window_bounds = array<i64: 2, 3>}, {pipeline_mode = #tpu.pipeline_mode<synchronous>, transform_indices = @transform_25, window_bounds = array<i64: 2, 6>}, {pipeline_mode = #tpu.pipeline_mode<synchronous>, transform_indices = @transform_26, window_bounds = array<i64: 2, 6>}]} {
    %c0 = arith.constant 0 : index
    %c0_0 = arith.constant 0 : index
    %c0_1 = arith.constant 0 : index
    %0 = vector.load %arg1[%c0, %c0_0, %c0_1] : memref<4x18x128xf32, #tpu.memory_space<vmem>>, vector<1x18x128xf32>
    %1 = vector.shape_cast %0 : vector<1x18x128xf32> to vector<18x128xf32>
    %c0_2 = arith.constant 0 : index
    %c0_3 = arith.constant 0 : index
    %2 = vector.load %arg2[%c0_2, %c0_3] : memref<128x32xf32, #tpu.memory_space<vmem>>, vector<128x32xf32>
    %cst = arith.constant dense<0.000000e+00> : vector<18x32xf32>
    %3 = tpu.matmul %1, %2, %cst {dimension_numbers = #tpu.dot_dimension_numbers<[1], [0], [0], [1], [0, 0, 1, 1], [], []>} : vector<18x128xf32>, vector<128x32xf32>, vector<18x32xf32> -> vector<18x32xf32>
    %c0_4 = arith.constant 0 : index
    %c0_5 = arith.constant 0 : index
    %4 = vector.load %arg3[%c0_4, %c0_5] : memref<1x32xf32, #tpu.memory_space<vmem>>, vector<1x32xf32>
    %5 = vector.broadcast %4 : vector<1x32xf32> to vector<18x32xf32>
    %6 = arith.addf %3, %5 : vector<18x32xf32>
    %c1 = arith.constant 1 : index
    %c0_6 = arith.constant 0 : index
    %c0_7 = arith.constant 0 : index
    %7 = vector.load %arg1[%c1, %c0_6, %c0_7] : memref<4x18x128xf32, #tpu.memory_space<vmem>>, vector<1x18x128xf32>
    %8 = vector.shape_cast %7 : vector<1x18x128xf32> to vector<18x128xf32>
    %c0_8 = arith.constant 0 : index
    %c0_9 = arith.constant 0 : index
    %9 = vector.load %arg2[%c0_8, %c0_9] : memref<128x32xf32, #tpu.memory_space<vmem>>, vector<128x32xf32>
    %cst_10 = arith.constant dense<0.000000e+00> : vector<18x32xf32>
    %10 = tpu.matmul %8, %9, %cst_10 {dimension_numbers = #tpu.dot_dimension_numbers<[1], [0], [0], [1], [0, 0, 1, 1], [], []>} : vector<18x128xf32>, vector<128x32xf32>, vector<18x32xf32> -> vector<18x32xf32>
    %c0_11 = arith.constant 0 : index
    %c0_12 = arith.constant 0 : index
    %11 = vector.load %arg3[%c0_11, %c0_12] : memref<1x32xf32, #tpu.memory_space<vmem>>, vector<1x32xf32>
    %12 = vector.broadcast %11 : vector<1x32xf32> to vector<18x32xf32>
    %13 = arith.addf %10, %12 : vector<18x32xf32>
    %14 = arith.maximumf %6, %13 : vector<18x32xf32>
    %c2 = arith.constant 2 : index
    %c0_13 = arith.constant 0 : index
    %c0_14 = arith.constant 0 : index
    %15 = vector.load %arg1[%c2, %c0_13, %c0_14] : memref<4x18x128xf32, #tpu.memory_space<vmem>>, vector<1x18x128xf32>
    %16 = vector.shape_cast %15 : vector<1x18x128xf32> to vector<18x128xf32>
    %c0_15 = arith.constant 0 : index
    %c0_16 = arith.constant 0 : index
    %17 = vector.load %arg2[%c0_15, %c0_16] : memref<128x32xf32, #tpu.memory_space<vmem>>, vector<128x32xf32>
    %cst_17 = arith.constant dense<0.000000e+00> : vector<18x32xf32>
    %18 = tpu.matmul %16, %17, %cst_17 {dimension_numbers = #tpu.dot_dimension_numbers<[1], [0], [0], [1], [0, 0, 1, 1], [], []>} : vector<18x128xf32>, vector<128x32xf32>, vector<18x32xf32> -> vector<18x32xf32>
    %c0_18 = arith.constant 0 : index
    %c0_19 = arith.constant 0 : index
    %19 = vector.load %arg3[%c0_18, %c0_19] : memref<1x32xf32, #tpu.memory_space<vmem>>, vector<1x32xf32>
    %20 = vector.broadcast %19 : vector<1x32xf32> to vector<18x32xf32>
    %21 = arith.addf %18, %20 : vector<18x32xf32>
    %22 = arith.maximumf %14, %21 : vector<18x32xf32>
    %c3 = arith.constant 3 : index
    %c0_20 = arith.constant 0 : index
    %c0_21 = arith.constant 0 : index
    %23 = vector.load %arg1[%c3, %c0_20, %c0_21] : memref<4x18x128xf32, #tpu.memory_space<vmem>>, vector<1x18x128xf32>
    %24 = vector.shape_cast %23 : vector<1x18x128xf32> to vector<18x128xf32>
    %c0_22 = arith.constant 0 : index
    %c0_23 = arith.constant 0 : index
    %25 = vector.load %arg2[%c0_22, %c0_23] : memref<128x32xf32, #tpu.memory_space<vmem>>, vector<128x32xf32>
    %cst_24 = arith.constant dense<0.000000e+00> : vector<18x32xf32>
    %26 = tpu.matmul %24, %25, %cst_24 {dimension_numbers = #tpu.dot_dimension_numbers<[1], [0], [0], [1], [0, 0, 1, 1], [], []>} : vector<18x128xf32>, vector<128x32xf32>, vector<18x32xf32> -> vector<18x32xf32>
    %c0_25 = arith.constant 0 : index
    %c0_26 = arith.constant 0 : index
    %27 = vector.load %arg3[%c0_25, %c0_26] : memref<1x32xf32, #tpu.memory_space<vmem>>, vector<1x32xf32>
    %28 = vector.broadcast %27 : vector<1x32xf32> to vector<18x32xf32>
    %29 = arith.addf %26, %28 : vector<18x32xf32>
    %30 = arith.maximumf %22, %29 : vector<18x32xf32>
    %cst_27 = arith.constant 0.000000e+00 : f32
    %31 = vector.broadcast %cst_27 : f32 to vector<18x32xf32>
    %32 = arith.cmpf ogt, %30, %31 : vector<18x32xf32>
    %cst_28 = arith.constant 1.000000e-01 : f32
    %33 = vector.broadcast %cst_28 : f32 to vector<18x32xf32>
    %34 = arith.mulf %33, %30 : vector<18x32xf32>
    %35 = arith.select %32, %30, %34 : vector<18x32xi1>, vector<18x32xf32>
    %c0_29 = arith.constant 0 : index
    %c0_30 = arith.constant 0 : index
    %c0_31 = arith.constant 0 : index
    %36 = vector.load %arg4[%c0_29, %c0_30, %c0_31] : memref<9x2x18xf32, #tpu.memory_space<vmem>>, vector<1x2x18xf32>
    %37 = vector.shape_cast %36 : vector<1x2x18xf32> to vector<2x18xf32>
    %cst_32 = arith.constant dense<0.000000e+00> : vector<2x32xf32>
    %38 = tpu.matmul %37, %35, %cst_32 {dimension_numbers = #tpu.dot_dimension_numbers<[1], [0], [0], [1], [0, 0, 1, 1], [], []>} : vector<2x18xf32>, vector<18x32xf32>, vector<2x32xf32> -> vector<2x32xf32>
    %c1_33 = arith.constant 1 : index
    %c0_34 = arith.constant 0 : index
    %c0_35 = arith.constant 0 : index
    %39 = vector.load %arg4[%c1_33, %c0_34, %c0_35] : memref<9x2x18xf32, #tpu.memory_space<vmem>>, vector<1x2x18xf32>
    %40 = vector.shape_cast %39 : vector<1x2x18xf32> to vector<2x18xf32>
    %cst_36 = arith.constant dense<0.000000e+00> : vector<2x32xf32>
    %41 = tpu.matmul %40, %35, %cst_36 {dimension_numbers = #tpu.dot_dimension_numbers<[1], [0], [0], [1], [0, 0, 1, 1], [], []>} : vector<2x18xf32>, vector<18x32xf32>, vector<2x32xf32> -> vector<2x32xf32>
    %c2_37 = arith.constant 2 : index
    %c0_38 = arith.constant 0 : index
    %c0_39 = arith.constant 0 : index
    %42 = vector.load %arg4[%c2_37, %c0_38, %c0_39] : memref<9x2x18xf32, #tpu.memory_space<vmem>>, vector<1x2x18xf32>
    %43 = vector.shape_cast %42 : vector<1x2x18xf32> to vector<2x18xf32>
    %cst_40 = arith.constant dense<0.000000e+00> : vector<2x32xf32>
    %44 = tpu.matmul %43, %35, %cst_40 {dimension_numbers = #tpu.dot_dimension_numbers<[1], [0], [0], [1], [0, 0, 1, 1], [], []>} : vector<2x18xf32>, vector<18x32xf32>, vector<2x32xf32> -> vector<2x32xf32>
    %c3_41 = arith.constant 3 : index
    %c0_42 = arith.constant 0 : index
    %c0_43 = arith.constant 0 : index
    %45 = vector.load %arg4[%c3_41, %c0_42, %c0_43] : memref<9x2x18xf32, #tpu.memory_space<vmem>>, vector<1x2x18xf32>
    %46 = vector.shape_cast %45 : vector<1x2x18xf32> to vector<2x18xf32>
    %cst_44 = arith.constant dense<0.000000e+00> : vector<2x32xf32>
    %47 = tpu.matmul %46, %35, %cst_44 {dimension_numbers = #tpu.dot_dimension_numbers<[1], [0], [0], [1], [0, 0, 1, 1], [], []>} : vector<2x18xf32>, vector<18x32xf32>, vector<2x32xf32> -> vector<2x32xf32>
    %c4 = arith.constant 4 : index
    %c0_45 = arith.constant 0 : index
    %c0_46 = arith.constant 0 : index
    %48 = vector.load %arg4[%c4, %c0_45, %c0_46] : memref<9x2x18xf32, #tpu.memory_space<vmem>>, vector<1x2x18xf32>
    %49 = vector.shape_cast %48 : vector<1x2x18xf32> to vector<2x18xf32>
    %cst_47 = arith.constant dense<0.000000e+00> : vector<2x32xf32>
    %50 = tpu.matmul %49, %35, %cst_47 {dimension_numbers = #tpu.dot_dimension_numbers<[1], [0], [0], [1], [0, 0, 1, 1], [], []>} : vector<2x18xf32>, vector<18x32xf32>, vector<2x32xf32> -> vector<2x32xf32>
    %c5 = arith.constant 5 : index
    %c0_48 = arith.constant 0 : index
    %c0_49 = arith.constant 0 : index
    %51 = vector.load %arg4[%c5, %c0_48, %c0_49] : memref<9x2x18xf32, #tpu.memory_space<vmem>>, vector<1x2x18xf32>
    %52 = vector.shape_cast %51 : vector<1x2x18xf32> to vector<2x18xf32>
    %cst_50 = arith.constant dense<0.000000e+00> : vector<2x32xf32>
    %53 = tpu.matmul %52, %35, %cst_50 {dimension_numbers = #tpu.dot_dimension_numbers<[1], [0], [0], [1], [0, 0, 1, 1], [], []>} : vector<2x18xf32>, vector<18x32xf32>, vector<2x32xf32> -> vector<2x32xf32>
    %c6 = arith.constant 6 : index
    %c0_51 = arith.constant 0 : index
    %c0_52 = arith.constant 0 : index
    %54 = vector.load %arg4[%c6, %c0_51, %c0_52] : memref<9x2x18xf32, #tpu.memory_space<vmem>>, vector<1x2x18xf32>
    %55 = vector.shape_cast %54 : vector<1x2x18xf32> to vector<2x18xf32>
    %cst_53 = arith.constant dense<0.000000e+00> : vector<2x32xf32>
    %56 = tpu.matmul %55, %35, %cst_53 {dimension_numbers = #tpu.dot_dimension_numbers<[1], [0], [0], [1], [0, 0, 1, 1], [], []>} : vector<2x18xf32>, vector<18x32xf32>, vector<2x32xf32> -> vector<2x32xf32>
    %c7 = arith.constant 7 : index
    %c0_54 = arith.constant 0 : index
    %c0_55 = arith.constant 0 : index
    %57 = vector.load %arg4[%c7, %c0_54, %c0_55] : memref<9x2x18xf32, #tpu.memory_space<vmem>>, vector<1x2x18xf32>
    %58 = vector.shape_cast %57 : vector<1x2x18xf32> to vector<2x18xf32>
    %cst_56 = arith.constant dense<0.000000e+00> : vector<2x32xf32>
    %59 = tpu.matmul %58, %35, %cst_56 {dimension_numbers = #tpu.dot_dimension_numbers<[1], [0], [0], [1], [0, 0, 1, 1], [], []>} : vector<2x18xf32>, vector<18x32xf32>, vector<2x32xf32> -> vector<2x32xf32>
    %c8 = arith.constant 8 : index
    %c0_57 = arith.constant 0 : index
    %c0_58 = arith.constant 0 : index
    %60 = vector.load %arg4[%c8, %c0_57, %c0_58] : memref<9x2x18xf32, #tpu.memory_space<vmem>>, vector<1x2x18xf32>
    %61 = vector.shape_cast %60 : vector<1x2x18xf32> to vector<2x18xf32>
    %cst_59 = arith.constant dense<0.000000e+00> : vector<2x32xf32>
    %62 = tpu.matmul %61, %35, %cst_59 {dimension_numbers = #tpu.dot_dimension_numbers<[1], [0], [0], [1], [0, 0, 1, 1], [], []>} : vector<2x18xf32>, vector<18x32xf32>, vector<2x32xf32> -> vector<2x32xf32>
    %63 = tpu.concatenate %38, %41, %44, %47, %50, %53, %56, %59, %62 in 1 : vector<2x32xf32>, vector<2x32xf32>, vector<2x32xf32>, vector<2x32xf32>, vector<2x32xf32>, vector<2x32xf32>, vector<2x32xf32>, vector<2x32xf32>, vector<2x32xf32> -> vector<2x288xf32>
    %c0_60 = arith.constant 0 : index
    %c0_61 = arith.constant 0 : index
    %64 = vector.load %arg5[%c0_60, %c0_61] : memref<288x288xf32, #tpu.memory_space<vmem>>, vector<288x288xf32>
    %cst_62 = arith.constant dense<0.000000e+00> : vector<2x288xf32>
    %65 = tpu.matmul %63, %64, %cst_62 {dimension_numbers = #tpu.dot_dimension_numbers<[1], [0], [0], [1], [0, 0, 1, 1], [], []>} : vector<2x288xf32>, vector<288x288xf32>, vector<2x288xf32> -> vector<2x288xf32>
    %c0_63 = arith.constant 0 : index
    %c0_64 = arith.constant 0 : index
    %66 = vector.load %arg6[%c0_63, %c0_64] : memref<1x288xf32, #tpu.memory_space<vmem>>, vector<1x288xf32>
    %67 = vector.broadcast %66 : vector<1x288xf32> to vector<2x288xf32>
    %68 = arith.addf %65, %67 : vector<2x288xf32>
    %cst_65 = arith.constant 0.000000e+00 : f32
    %69 = vector.broadcast %cst_65 : f32 to vector<2x288xf32>
    %70 = arith.cmpf ogt, %68, %69 : vector<2x288xf32>
    %cst_66 = arith.constant 1.000000e-01 : f32
    %71 = vector.broadcast %cst_66 : f32 to vector<2x288xf32>
    %72 = arith.mulf %71, %68 : vector<2x288xf32>
    %73 = arith.select %70, %68, %72 : vector<2x288xi1>, vector<2x288xf32>
    %c0_67 = arith.constant 0 : index
    %c0_68 = arith.constant 0 : index
    %74 = vector.load %arg7[%c0_67, %c0_68] : memref<288x288xf32, #tpu.memory_space<vmem>>, vector<288x288xf32>
    %cst_69 = arith.constant dense<0.000000e+00> : vector<2x288xf32>
    %75 = tpu.matmul %73, %74, %cst_69 {dimension_numbers = #tpu.dot_dimension_numbers<[1], [0], [0], [1], [0, 0, 1, 1], [], []>} : vector<2x288xf32>, vector<288x288xf32>, vector<2x288xf32> -> vector<2x288xf32>
    %c0_70 = arith.constant 0 : index
    %c0_71 = arith.constant 0 : index
    %76 = vector.load %arg8[%c0_70, %c0_71] : memref<1x288xf32, #tpu.memory_space<vmem>>, vector<1x288xf32>
    %77 = vector.broadcast %76 : vector<1x288xf32> to vector<2x288xf32>
    %78 = arith.addf %75, %77 : vector<2x288xf32>
    %79 = arith.addf %78, %63 : vector<2x288xf32>
    %cst_72 = arith.constant 0.000000e+00 : f32
    %80 = vector.broadcast %cst_72 : f32 to vector<2x288xf32>
    %81 = arith.cmpf ogt, %79, %80 : vector<2x288xf32>
    %cst_73 = arith.constant 1.000000e-01 : f32
    %82 = vector.broadcast %cst_73 : f32 to vector<2x288xf32>
    %83 = arith.mulf %82, %79 : vector<2x288xf32>
    %84 = arith.select %81, %79, %83 : vector<2x288xi1>, vector<2x288xf32>
    %c0_74 = arith.constant 0 : index
    %c0_75 = arith.constant 0 : index
    %85 = vector.load %arg9[%c0_74, %c0_75] : memref<288x288xf32, #tpu.memory_space<vmem>>, vector<288x288xf32>
    %cst_76 = arith.constant dense<0.000000e+00> : vector<2x288xf32>
    %86 = tpu.matmul %84, %85, %cst_76 {dimension_numbers = #tpu.dot_dimension_numbers<[1], [0], [0], [1], [0, 0, 1, 1], [], []>} : vector<2x288xf32>, vector<288x288xf32>, vector<2x288xf32> -> vector<2x288xf32>
    %c0_77 = arith.constant 0 : index
    %c0_78 = arith.constant 0 : index
    %87 = vector.load %arg10[%c0_77, %c0_78] : memref<1x288xf32, #tpu.memory_space<vmem>>, vector<1x288xf32>
    %88 = vector.broadcast %87 : vector<1x288xf32> to vector<2x288xf32>
    %89 = arith.addf %86, %88 : vector<2x288xf32>
    %cst_79 = arith.constant 0.000000e+00 : f32
    %90 = vector.broadcast %cst_79 : f32 to vector<2x288xf32>
    %91 = arith.cmpf ogt, %89, %90 : vector<2x288xf32>
    %cst_80 = arith.constant 1.000000e-01 : f32
    %92 = vector.broadcast %cst_80 : f32 to vector<2x288xf32>
    %93 = arith.mulf %92, %89 : vector<2x288xf32>
    %94 = arith.select %91, %89, %93 : vector<2x288xi1>, vector<2x288xf32>
    %c0_81 = arith.constant 0 : index
    %c0_82 = arith.constant 0 : index
    %95 = vector.load %arg11[%c0_81, %c0_82] : memref<288x288xf32, #tpu.memory_space<vmem>>, vector<288x288xf32>
    %cst_83 = arith.constant dense<0.000000e+00> : vector<2x288xf32>
    %96 = tpu.matmul %94, %95, %cst_83 {dimension_numbers = #tpu.dot_dimension_numbers<[1], [0], [0], [1], [0, 0, 1, 1], [], []>} : vector<2x288xf32>, vector<288x288xf32>, vector<2x288xf32> -> vector<2x288xf32>
    %c0_84 = arith.constant 0 : index
    %c0_85 = arith.constant 0 : index
    %97 = vector.load %arg12[%c0_84, %c0_85] : memref<1x288xf32, #tpu.memory_space<vmem>>, vector<1x288xf32>
    %98 = vector.broadcast %97 : vector<1x288xf32> to vector<2x288xf32>
    %99 = arith.addf %96, %98 : vector<2x288xf32>
    %cst_86 = arith.constant 0.000000e+00 : f32
    %100 = vector.broadcast %cst_86 : f32 to vector<2x288xf32>
    %101 = arith.cmpf ogt, %99, %100 : vector<2x288xf32>
    %cst_87 = arith.constant 1.000000e-01 : f32
    %102 = vector.broadcast %cst_87 : f32 to vector<2x288xf32>
    %103 = arith.mulf %102, %99 : vector<2x288xf32>
    %104 = arith.select %101, %99, %103 : vector<2x288xi1>, vector<2x288xf32>
    %c0_88 = arith.constant 0 : index
    %c0_89 = arith.constant 0 : index
    %105 = vector.load %arg13[%c0_88, %c0_89] : memref<288x288xf32, #tpu.memory_space<vmem>>, vector<288x288xf32>
    %cst_90 = arith.constant dense<0.000000e+00> : vector<2x288xf32>
    %106 = tpu.matmul %104, %105, %cst_90 {dimension_numbers = #tpu.dot_dimension_numbers<[1], [0], [0], [1], [0, 0, 1, 1], [], []>} : vector<2x288xf32>, vector<288x288xf32>, vector<2x288xf32> -> vector<2x288xf32>
    %c0_91 = arith.constant 0 : index
    %c0_92 = arith.constant 0 : index
    %107 = vector.load %arg14[%c0_91, %c0_92] : memref<1x288xf32, #tpu.memory_space<vmem>>, vector<1x288xf32>
    %108 = vector.broadcast %107 : vector<1x288xf32> to vector<2x288xf32>
    %109 = arith.addf %106, %108 : vector<2x288xf32>
    %110 = arith.addf %109, %84 : vector<2x288xf32>
    %cst_93 = arith.constant 0.000000e+00 : f32
    %111 = vector.broadcast %cst_93 : f32 to vector<2x288xf32>
    %112 = arith.cmpf ogt, %110, %111 : vector<2x288xf32>
    %cst_94 = arith.constant 1.000000e-01 : f32
    %113 = vector.broadcast %cst_94 : f32 to vector<2x288xf32>
    %114 = arith.mulf %113, %110 : vector<2x288xf32>
    %115 = arith.select %112, %110, %114 : vector<2x288xi1>, vector<2x288xf32>
    %c0_95 = arith.constant 0 : index
    %c0_96 = arith.constant 0 : index
    %116 = vector.load %arg15[%c0_95, %c0_96] : memref<288x128xf32, #tpu.memory_space<vmem>>, vector<288x128xf32>
    %cst_97 = arith.constant dense<0.000000e+00> : vector<2x128xf32>
    %117 = tpu.matmul %115, %116, %cst_97 {dimension_numbers = #tpu.dot_dimension_numbers<[1], [0], [0], [1], [0, 0, 1, 1], [], []>} : vector<2x288xf32>, vector<288x128xf32>, vector<2x128xf32> -> vector<2x128xf32>
    %c0_98 = arith.constant 0 : index
    %c0_99 = arith.constant 0 : index
    %118 = vector.load %arg16[%c0_98, %c0_99] : memref<1x128xf32, #tpu.memory_space<vmem>>, vector<1x128xf32>
    %119 = vector.broadcast %118 : vector<1x128xf32> to vector<2x128xf32>
    %120 = arith.addf %117, %119 : vector<2x128xf32>
    %cst_100 = arith.constant 0.000000e+00 : f32
    %121 = vector.broadcast %cst_100 : f32 to vector<2x128xf32>
    %122 = arith.maximumf %120, %121 : vector<2x128xf32>
    %c0_101 = arith.constant 0 : index
    %c0_102 = arith.constant 0 : index
    %123 = vector.load %arg17[%c0_101, %c0_102] : memref<128x18xf32, #tpu.memory_space<vmem>>, vector<128x18xf32>
    %cst_103 = arith.constant dense<0.000000e+00> : vector<2x18xf32>
    %124 = tpu.matmul %122, %123, %cst_103 {dimension_numbers = #tpu.dot_dimension_numbers<[1], [0], [0], [1], [0, 0, 1, 1], [], []>} : vector<2x128xf32>, vector<128x18xf32>, vector<2x18xf32> -> vector<2x18xf32>
    %c0_104 = arith.constant 0 : index
    %c0_105 = arith.constant 0 : index
    %125 = vector.load %arg18[%c0_104, %c0_105] : memref<1x18xf32, #tpu.memory_space<vmem>>, vector<1x18xf32>
    %126 = vector.broadcast %125 : vector<1x18xf32> to vector<2x18xf32>
    %127 = arith.addf %124, %126 : vector<2x18xf32>
    %c0_106 = arith.constant 0 : index
    %c0_107 = arith.constant 0 : index
    %128 = vector.load %arg19[%c0_106, %c0_107] : memref<18x3xf32, #tpu.memory_space<vmem>>, vector<18x3xf32>
    %cst_108 = arith.constant dense<0.000000e+00> : vector<2x3xf32>
    %129 = tpu.matmul %127, %128, %cst_108 {dimension_numbers = #tpu.dot_dimension_numbers<[1], [0], [0], [1], [0, 0, 1, 1], [], []>} : vector<2x18xf32>, vector<18x3xf32>, vector<2x3xf32> -> vector<2x3xf32>
    %c0_109 = arith.constant 0 : index
    %c0_110 = arith.constant 0 : index
    %130 = vector.load %arg20[%c0_109, %c0_110] : memref<1x3xf32, #tpu.memory_space<vmem>>, vector<1x3xf32>
    %131 = vector.broadcast %130 : vector<1x3xf32> to vector<2x3xf32>
    %132 = arith.addf %129, %131 : vector<2x3xf32>
    %cst_111 = arith.constant dense<0xFF800000> : vector<2xf32>
    %133 = vector.multi_reduction <maximumf>, %132, %cst_111 [1] : vector<2x3xf32> to vector<2xf32>
    %134 = vector.shape_cast %133 : vector<2xf32> to vector<2x1xf32>
    %135 = vector.broadcast %134 : vector<2x1xf32> to vector<2x3xf32>
    %136 = arith.subf %132, %135 : vector<2x3xf32>
    %137 = math.exp %136 : vector<2x3xf32>
    %cst_112 = arith.constant dense<0.000000e+00> : vector<2xf32>
    %138 = vector.multi_reduction <add>, %137, %cst_112 [1] : vector<2x3xf32> to vector<2xf32>
    %139 = vector.shape_cast %138 : vector<2xf32> to vector<2x1xf32>
    %140 = vector.broadcast %139 : vector<2x1xf32> to vector<2x3xf32>
    %141 = arith.divf %137, %140 : vector<2x3xf32>
    %c0_113 = arith.constant 0 : index
    %c0_114 = arith.constant 0 : index
    %142 = vector.load %arg25[%c0_113, %c0_114] : memref<2x3xf32, #tpu.memory_space<vmem>>, vector<2x3xf32>
    tpu.vector_store %arg25[%c0_113, %c0_114], %141 {strides = array<i32>} : memref<2x3xf32, #tpu.memory_space<vmem>>, vector<2x3xf32>,
    %c0_115 = arith.constant 0 : index
    %c0_116 = arith.constant 0 : index
    %143 = vector.load %arg21[%c0_115, %c0_116] : memref<18x6xf32, #tpu.memory_space<vmem>>, vector<18x6xf32>
    %cst_117 = arith.constant dense<0.000000e+00> : vector<2x6xf32>
    %144 = tpu.matmul %127, %143, %cst_117 {dimension_numbers = #tpu.dot_dimension_numbers<[1], [0], [0], [1], [0, 0, 1, 1], [], []>} : vector<2x18xf32>, vector<18x6xf32>, vector<2x6xf32> -> vector<2x6xf32>
    %c0_118 = arith.constant 0 : index
    %c0_119 = arith.constant 0 : index
    %145 = vector.load %arg22[%c0_118, %c0_119] : memref<1x6xf32, #tpu.memory_space<vmem>>, vector<1x6xf32>
    %146 = vector.broadcast %145 : vector<1x6xf32> to vector<2x6xf32>
    %147 = arith.addf %144, %146 : vector<2x6xf32>
    %c0_120 = arith.constant 0 : index
    %c0_121 = arith.constant 0 : index
    %148 = vector.load %arg26[%c0_120, %c0_121] : memref<2x6xf32, #tpu.memory_space<vmem>>, vector<2x6xf32>
    tpu.vector_store %arg26[%c0_120, %c0_121], %147 {strides = array<i32>} : memref<2x6xf32, #tpu.memory_space<vmem>>, vector<2x6xf32>,
    %c0_122 = arith.constant 0 : index
    %c0_123 = arith.constant 0 : index
    %149 = vector.load %arg23[%c0_122, %c0_123] : memref<18x6xf32, #tpu.memory_space<vmem>>, vector<18x6xf32>
    %cst_124 = arith.constant dense<0.000000e+00> : vector<2x6xf32>
    %150 = tpu.matmul %127, %149, %cst_124 {dimension_numbers = #tpu.dot_dimension_numbers<[1], [0], [0], [1], [0, 0, 1, 1], [], []>} : vector<2x18xf32>, vector<18x6xf32>, vector<2x6xf32> -> vector<2x6xf32>
    %c0_125 = arith.constant 0 : index
    %c0_126 = arith.constant 0 : index
    %151 = vector.load %arg24[%c0_125, %c0_126] : memref<1x6xf32, #tpu.memory_space<vmem>>, vector<1x6xf32>
    %152 = vector.broadcast %151 : vector<1x6xf32> to vector<2x6xf32>
    %153 = arith.addf %150, %152 : vector<2x6xf32>
    %154 = math.exp %153 : vector<2x6xf32>
    %c0_127 = arith.constant 0 : index
    %c0_128 = arith.constant 0 : index
    %155 = vector.load %arg27[%c0_127, %c0_128] : memref<2x6xf32, #tpu.memory_space<vmem>>, vector<2x6xf32>
    tpu.vector_store %arg27[%c0_127, %c0_128], %154 {strides = array<i32>} : memref<2x6xf32, #tpu.memory_space<vmem>>, vector<2x6xf32>,
    return
  }
  func.func @transform_0(%arg0: i32) -> (i32, i32, i32) {
    %c0_i32 = arith.constant 0 : i32
    %c0_i32_0 = arith.constant 0 : i32
    %c0_i32_1 = arith.constant 0 : i32
    %c0_i32_2 = arith.constant 0 : i32
    return %c0_i32, %c0_i32_0, %c0_i32_1 : i32, i32, i32
  }
  func.func @transform_1(%arg0: i32) -> (i32, i32) {
    %c0_i32 = arith.constant 0 : i32
    %c0_i32_0 = arith.constant 0 : i32
    %c0_i32_1 = arith.constant 0 : i32
    return %c0_i32, %c0_i32_0 : i32, i32
  }
  func.func @transform_2(%arg0: i32) -> (i32, i32) {
    %c0_i32 = arith.constant 0 : i32
    %c0_i32_0 = arith.constant 0 : i32
    %c0_i32_1 = arith.constant 0 : i32
    return %c0_i32, %c0_i32_0 : i32, i32
  }
  func.func @transform_3(%arg0: i32) -> (i32, i32, i32) {
    %c0_i32 = arith.constant 0 : i32
    %c0_i32_0 = arith.constant 0 : i32
    %c0_i32_1 = arith.constant 0 : i32
    %c0_i32_2 = arith.constant 0 : i32
    return %c0_i32, %c0_i32_0, %c0_i32_1 : i32, i32, i32
  }
  func.func @transform_4(%arg0: i32) -> (i32, i32) {
    %c0_i32 = arith.constant 0 : i32
    %c0_i32_0 = arith.constant 0 : i32
    %c0_i32_1 = arith.constant 0 : i32
    return %c0_i32, %c0_i32_0 : i32, i32
  }
  func.func @transform_5(%arg0: i32) -> (i32, i32) {
    %c0_i32 = arith.constant 0 : i32
    %c0_i32_0 = arith.constant 0 : i32
    %c0_i32_1 = arith.constant 0 : i32
    return %c0_i32, %c0_i32_0 : i32, i32
  }
  func.func @transform_6(%arg0: i32) -> (i32, i32) {
    %c0_i32 = arith.constant 0 : i32
    %c0_i32_0 = arith.constant 0 : i32
    %c0_i32_1 = arith.constant 0 : i32
    return %c0_i32, %c0_i32_0 : i32, i32
  }
  func.func @transform_7(%arg0: i32) -> (i32, i32) {
    %c0_i32 = arith.constant 0 : i32
    %c0_i32_0 = arith.constant 0 : i32
    %c0_i32_1 = arith.constant 0 : i32
    return %c0_i32, %c0_i32_0 : i32, i32
  }
  func.func @transform_8(%arg0: i32) -> (i32, i32) {
    %c0_i32 = arith.constant 0 : i32
    %c0_i32_0 = arith.constant 0 : i32
    %c0_i32_1 = arith.constant 0 : i32
    return %c0_i32, %c0_i32_0 : i32, i32
  }
  func.func @transform_9(%arg0: i32) -> (i32, i32) {
    %c0_i32 = arith.constant 0 : i32
    %c0_i32_0 = arith.constant 0 : i32
    %c0_i32_1 = arith.constant 0 : i32
    return %c0_i32, %c0_i32_0 : i32, i32
  }
  func.func @transform_10(%arg0: i32) -> (i32, i32) {
    %c0_i32 = arith.constant 0 : i32
    %c0_i32_0 = arith.constant 0 : i32
    %c0_i32_1 = arith.constant 0 : i32
    return %c0_i32, %c0_i32_0 : i32, i32
  }
  func.func @transform_11(%arg0: i32) -> (i32, i32) {
    %c0_i32 = arith.constant 0 : i32
    %c0_i32_0 = arith.constant 0 : i32
    %c0_i32_1 = arith.constant 0 : i32
    return %c0_i32, %c0_i32_0 : i32, i32
  }
  func.func @transform_12(%arg0: i32) -> (i32, i32) {
    %c0_i32 = arith.constant 0 : i32
    %c0_i32_0 = arith.constant 0 : i32
    %c0_i32_1 = arith.constant 0 : i32
    return %c0_i32, %c0_i32_0 : i32, i32
  }
  func.func @transform_13(%arg0: i32) -> (i32, i32) {
    %c0_i32 = arith.constant 0 : i32
    %c0_i32_0 = arith.constant 0 : i32
    %c0_i32_1 = arith.constant 0 : i32
    return %c0_i32, %c0_i32_0 : i32, i32
  }
  func.func @transform_14(%arg0: i32) -> (i32, i32) {
    %c0_i32 = arith.constant 0 : i32
    %c0_i32_0 = arith.constant 0 : i32
    %c0_i32_1 = arith.constant 0 : i32
    return %c0_i32, %c0_i32_0 : i32, i32
  }
  func.func @transform_15(%arg0: i32) -> (i32, i32) {
    %c0_i32 = arith.constant 0 : i32
    %c0_i32_0 = arith.constant 0 : i32
    %c0_i32_1 = arith.constant 0 : i32
    return %c0_i32, %c0_i32_0 : i32, i32
  }
  func.func @transform_16(%arg0: i32) -> (i32, i32) {
    %c0_i32 = arith.constant 0 : i32
    %c0_i32_0 = arith.constant 0 : i32
    %c0_i32_1 = arith.constant 0 : i32
    return %c0_i32, %c0_i32_0 : i32, i32
  }
  func.func @transform_17(%arg0: i32) -> (i32, i32) {
    %c0_i32 = arith.constant 0 : i32
    %c0_i32_0 = arith.constant 0 : i32
    %c0_i32_1 = arith.constant 0 : i32
    return %c0_i32, %c0_i32_0 : i32, i32
  }
  func.func @transform_18(%arg0: i32) -> (i32, i32) {
    %c0_i32 = arith.constant 0 : i32
    %c0_i32_0 = arith.constant 0 : i32
    %c0_i32_1 = arith.constant 0 : i32
    return %c0_i32, %c0_i32_0 : i32, i32
  }
  func.func @transform_19(%arg0: i32) -> (i32, i32) {
    %c0_i32 = arith.constant 0 : i32
    %c0_i32_0 = arith.constant 0 : i32
    %c0_i32_1 = arith.constant 0 : i32
    return %c0_i32, %c0_i32_0 : i32, i32
  }
  func.func @transform_20(%arg0: i32) -> (i32, i32) {
    %c0_i32 = arith.constant 0 : i32
    %c0_i32_0 = arith.constant 0 : i32
    %c0_i32_1 = arith.constant 0 : i32
    return %c0_i32, %c0_i32_0 : i32, i32
  }
  func.func @transform_21(%arg0: i32) -> (i32, i32) {
    %c0_i32 = arith.constant 0 : i32
    %c0_i32_0 = arith.constant 0 : i32
    %c0_i32_1 = arith.constant 0 : i32
    return %c0_i32, %c0_i32_0 : i32, i32
  }
  func.func @transform_22(%arg0: i32) -> (i32, i32) {
    %c0_i32 = arith.constant 0 : i32
    %c0_i32_0 = arith.constant 0 : i32
    %c0_i32_1 = arith.constant 0 : i32
    return %c0_i32, %c0_i32_0 : i32, i32
  }
  func.func @transform_23(%arg0: i32) -> (i32, i32) {
    %c0_i32 = arith.constant 0 : i32
    %c0_i32_0 = arith.constant 0 : i32
    %c0_i32_1 = arith.constant 0 : i32
    return %c0_i32, %c0_i32_0 : i32, i32
  }
  func.func @transform_24(%arg0: i32) -> (i32, i32) {
    %c0_i32 = arith.constant 0 : i32
    %c0_i32_0 = arith.constant 0 : i32
    %c0_i32_1 = arith.constant 0 : i32
    return %c0_i32, %c0_i32_0 : i32, i32
  }
  func.func @transform_25(%arg0: i32) -> (i32, i32) {
    %c0_i32 = arith.constant 0 : i32
    %c0_i32_0 = arith.constant 0 : i32
    %c0_i32_1 = arith.constant 0 : i32
    return %c0_i32, %c0_i32_0 : i32, i32
  }
  func.func @transform_26(%arg0: i32) -> (i32, i32) {
    %c0_i32 = arith.constant 0 : i32
    %c0_i32_0 = arith.constant 0 : i32
    %c0_i32_1 = arith.constant 0 : i32
    return %c0_i32, %c0_i32_0 : i32, i32
  }
}

</mosaic_0001>

<bundles_post_ra>
// kernel: conv_mdn_forward.1
= control target key start
LH: loop header
LB: loop body
LE: loop exit
PB: predicated region body
PF: predicated region fallthrough
CT: control target
= control target key end

     0   :  { %s7244_s0 = inlined_call_operand.vmem [shape: f32[4,18,128], index: 0, kind: input, shape index: {}]   ;;  %s7245_s1 = inlined_call_operand.vmem [shape: f32[128,32], index: 1, kind: input, shape index: {}]   ;;  %s7246_s2 = inlined_call_operand.vmem [shape: f32[1,32], index: 2, kind: input, shape index: {}]   ;;  %s7247_s3 = inlined_call_operand.vmem [shape: f32[9,2,18], index: 3, kind: input, shape index: {}]   ;;  %s7248_s4 = inlined_call_operand.vmem [shape: f32[288,288], index: 4, kind: input, shape index: {}]   ;;  %s7249_s5 = inlined_call_operand.vmem [shape: f32[1,288], index: 5, kind: input, shape index: {}]   ;;  %s7250_s6 = inlined_call_operand.vmem [shape: f32[288,288], index: 6, kind: input, shape index: {}]   ;;  %s7251_s7 = inlined_call_operand.vmem [shape: f32[1,288], index: 7, kind: input, shape index: {}]   ;;  %s7252_s8 = inlined_call_operand.vmem [shape: f32[288,288], index: 8, kind: input, shape index: {}]   ;;  %s7253_s9 = inlined_call_operand.vmem [shape: f32[1,288], index: 9, kind: input, shape index: {}]   ;;  %s7254_s10 = inlined_call_operand.vmem [shape: f32[288,288], index: 10, kind: input, shape index: {}]   ;;  %s7255_s11 = inlined_call_operand.vmem [shape: f32[1,288], index: 11, kind: input, shape index: {}]   ;;  %s7256_s12 = inlined_call_operand.vmem [shape: f32[288,288], index: 12, kind: input, shape index: {}]   ;;  %s7257_s13 = inlined_call_operand.vmem [shape: f32[1,288], index: 13, kind: input, shape index: {}]   ;;  %s7258_s14 = inlined_call_operand.vmem [shape: f32[288,128], index: 14, kind: input, shape index: {}]   ;;  %s7259_s15 = inlined_call_operand.vmem [shape: f32[1,128], index: 15, kind: input, shape index: {}]   ;;  %s7260_s16 = inlined_call_operand.vmem [shape: f32[128,18], index: 16, kind: input, shape index: {}]   ;;  %s7261_s17 = inlined_call_operand.vmem [shape: f32[1,18], index: 17, kind: input, shape index: {}]   ;;  %s7262_s18 = inlined_call_operand.vmem [shape: f32[18,3], index: 18, kind: input, shape index: {}]   ;;  %s7263_s19 = inlined_call_operand.vmem [shape: f32[1,3], index: 19, kind: input, shape index: {}]   ;;  %s7264_s20 = inlined_call_operand.vmem [shape: f32[18,6], index: 20, kind: input, shape index: {}]   ;;  %s7265_s21 = inlined_call_operand.vmem [shape: f32[1,6], index: 21, kind: input, shape index: {}]   ;;  %s7266_s22 = inlined_call_operand.vmem [shape: f32[18,6], index: 22, kind: input, shape index: {}]   ;;  %s7267_s23 = inlined_call_operand.vmem [shape: f32[1,6], index: 23, kind: input, shape index: {}]   ;;  %s7268_s24 = inlined_call_operand.hbm [shape: f32[2,3], index: 24, kind: output, shape index: {0}]   ;;  %s7269_s25 = inlined_call_operand.vmem [shape: f32[2,6], index: 25, kind: output, shape index: {1}]   ;;  %s7270_s26 = inlined_call_operand.vmem [shape: f32[2,6], index: 26, kind: output, shape index: {2}]  }
   0x1   :  { %7278 = sst [smem:[#allocation5_spill]] %s7244_s0 }
   0x2   :  { %7279 = sst [smem:[#allocation6_spill]] %s7245_s1 }
   0x3   :  { %7280 = sst [smem:[#allocation7_spill]] %s7246_s2 }
   0x4   :  { %7281 = sst [smem:[#allocation8_spill]] %s7247_s3 }
   0x5   :  { %7282 = sst [smem:[#allocation9_spill]] %s7248_s4 }
   0x6   :  { %7283 = sst [smem:[#allocation10_spill]] %s7249_s5 }
   0x7   :  { %7284 = sst [smem:[#allocation11_spill]] %s7250_s6 }
   0x8   :  { %7285 = sst [smem:[#allocation12_spill]] %s7251_s7 }
   0x9   :  { %7286 = sst [smem:[#allocation13_spill]] %s7252_s8 }
   0xa   :  { %7287 = sst [smem:[#allocation14_spill]] %s7253_s9 }
   0xb   :  { %7288 = sst [smem:[#allocation15_spill]] %s7254_s10 }
   0xc   :  { %s7289_s7 = sld [smem:[#allocation6_spill]]  ;;  %v4688_v1 = vmov 0.0  }
   0xd   :  { %4281 = vmatprep.subr.mxu0 %v4688_v1  ;;  %4322 = vmatprep.subr.mxu1 %v4688_v1 }
  0x12   :  { %v4832_v0 = vld [vmem:[%s7289_s7 + $0x78] sm:$0xff]  ;;  %v4839_v2 = vld [vmem:[%s7289_s7 + $0x70] sm:$0xff]  ;;  %v4848_v3 = vld [vmem:[%s7289_s7 + $0x68] sm:$0xff] }
  0x13   :  { %4282 = vmatpush3.msra.mxu0 %v4832_v0  ;;  %4323 = vmatpush3.msra.mxu1 %v4832_v0  ;;  %v4857_v4 = vld [vmem:[%s7289_s7 + $0x60] sm:$0xff]  ;;  %v4866_v5 = vld [vmem:[%s7289_s7 + $0x58] sm:$0xff]  ;;  %v4875_v6 = vld [vmem:[%s7289_s7 + $0x50] sm:$0xff] }
  0x14   :  { %4283 = vmatprep.subr.mxu0 %v4688_v1  ;;  %4324 = vmatprep.subr.mxu1 %v4688_v1 }
  0x15   :  { %4284 = vmatpush3.msra.mxu0 %v4839_v2  ;;  %4325 = vmatpush3.msra.mxu1 %v4839_v2 }
  0x16   :  { %4285 = vmatprep.subr.mxu0 %v4688_v1  ;;  %4326 = vmatprep.subr.mxu1 %v4688_v1 }
  0x17   :  { %4286 = vmatpush3.msra.mxu0 %v4848_v3  ;;  %4327 = vmatpush3.msra.mxu1 %v4848_v3 }
  0x18   :  { %4287 = vmatprep.subr.mxu0 %v4688_v1  ;;  %4328 = vmatprep.subr.mxu1 %v4688_v1 }
  0x19   :  { %4288 = vmatpush3.msra.mxu0 %v4857_v4  ;;  %4329 = vmatpush3.msra.mxu1 %v4857_v4 }
  0x1a   :  { %4289 = vmatprep.subr.mxu0 %v4688_v1  ;;  %4330 = vmatprep.subr.mxu1 %v4688_v1 }
  0x1b   :  { %32 = vsyncpa [#allocation3], 0  ;;  %4290 = vmatpush3.msra.mxu0 %v4866_v5  ;;  %4331 = vmatpush3.msra.mxu1 %v4866_v5  ;;  %v4884_v7 = vld [vmem:[%s7289_s7 + $0x48] sm:$0xff]  ;;  %v4893_v8 = vld [vmem:[%s7289_s7 + $0x40] sm:$0xff]  ;;  %s7290_s0 = sld [smem:[#allocation5_spill]]  ;;  %vm4689_vm0 = vmmov 0  }
  0x1c   :  { %4291 = vmatprep.subr.mxu0 %v4688_v1  ;;  %4332 = vmatprep.subr.mxu1 %v4688_v1  ;;  %v4902_v9 = vld [vmem:[%s7289_s7 + $0x38] sm:$0xff]  ;;  %v4911_v10 = vld [vmem:[%s7289_s7 + $0x30] sm:$0xff]  ;;  %v4920_v11 = vld [vmem:[%s7289_s7 + $0x28] sm:$0xff]  ;;  %s7291_s3 = sld [smem:[#allocation7_spill]]  ;;  %vm462_vm2 = vcmask 1041408   ;;  %vm458_vm5 = vcmask 146432  }
  0x1d   :  { %4292 = vmatpush3.msra.mxu0 %v4875_v6  ;;  %4333 = vmatpush3.msra.mxu1 %v4875_v6  ;;  %v4929_v12 = vld [vmem:[%s7289_s7 + $0x20] sm:$0xff]  ;;  %v4938_v13 = vld [vmem:[%s7289_s7 + $0x18] sm:$0xff]  ;;  %v4947_v14 = vld [vmem:[%s7289_s7 + $0x10] sm:$0xff]  ;;  %s7292_s4 = sld [smem:[#allocation8_spill]]  ;;  %s4690_s29 = smov 32   ;;  %vm1160_vm6 = vcmask 261120  }
  0x1e   :  { %4293 = vmatprep.subr.mxu0 %v4688_v1  ;;  %4334 = vmatprep.subr.mxu1 %v4688_v1  ;;  %v4956_v15 = vld [vmem:[%s7289_s7 + $0x8] sm:$0xff]  ;;  %v4965_v16 = vld [vmem:[%s7289_s7] sm:$0xff]  ;;  %s7293_s2 = sld [smem:[#allocation9_spill]]  ;;  %s4691_s8 = smov 64   ;;  %vm1162_vm7 = vcmask 523264   ;;  %vm1164_vm8 = vcmask 785408  }
  0x1f   :  { %4294 = vmatpush3.msra.mxu0 %v4884_v7  ;;  %4335 = vmatpush3.msra.mxu1 %v4884_v7  ;;  %s7295_s6 = sld [smem:[#allocation10_spill]] }
  0x20   :  { %4295 = vmatprep.subr.mxu0 %v4688_v1  ;;  %4336 = vmatprep.subr.mxu1 %v4688_v1 }
  0x21   :  { %4296 = vmatpush3.msra.mxu0 %v4893_v8  ;;  %4337 = vmatpush3.msra.mxu1 %v4893_v8  ;;  %v81_v17 = vld [vmem:[%s7290_s0] sm:$0xff]  ;;  %v3843_v18 = vld [vmem:[%s7290_s0 + $0x18] sm:$0xff]  ;;  %v82_v19 = vld [vmem:[%s7290_s0 + $0x8] sm:$0xff] }
  0x22   :  { %4297 = vmatprep.subr.mxu0 %v4688_v1  ;;  %4338 = vmatprep.subr.mxu1 %v4688_v1  ;;  %v3844_v20 = vld [vmem:[%s7290_s0 + $0x20] sm:$0xff]  ;;  %v83_v21 = vld [vmem:[%s7290_s0 + $0x10] sm:$0x3]  ;;  %v3845_v22 = vld [vmem:[%s7290_s0 + $0x28] sm:$0x3] }
  0x23   :  { %4298 = vmatpush3.msra.mxu0 %v4902_v9  ;;  %4339 = vmatpush3.msra.mxu1 %v4902_v9  ;;  %v3846_v23 = vld [vmem:[%s7290_s0 + $0x30] sm:$0xff]  ;;  %v3849_v24 = vld [vmem:[%s7290_s0 + $0x48] sm:$0xff]  ;;  %v3847_v25 = vld [vmem:[%s7290_s0 + $0x38] sm:$0xff] }
  0x24   :  { %4299 = vmatprep.subr.mxu0 %v4688_v1  ;;  %4340 = vmatprep.subr.mxu1 %v4688_v1  ;;  %v3850_v26 = vld [vmem:[%s7290_s0 + $0x50] sm:$0xff]  ;;  %v3848_v27 = vld [vmem:[%s7290_s0 + $0x40] sm:$0x3]  ;;  %v3851_v28 = vld [vmem:[%s7290_s0 + $0x58] sm:$0x3]  ;;  %s7296_s0 = sld [smem:[#allocation13_spill]] }
  0x25   :  { %4300 = vmatpush3.msra.mxu0 %v4911_v10  ;;  %4341 = vmatpush3.msra.mxu1 %v4911_v10  ;;  %v3842_v41 = vld [vmem:[%s7291_s3] ss:$0 sm:$0xff]  ;;  %s4692_s3 = smov 96  }
  0x26   :  { %4301 = vmatprep.subr.mxu0 %v4688_v1  ;;  %4342 = vmatprep.subr.mxu1 %v4688_v1 }
  0x27   :  { %4302 = vmatpush3.msra.mxu0 %v4920_v11  ;;  %4343 = vmatpush3.msra.mxu1 %v4920_v11 }
  0x28   :  { %4303 = vmatprep.subr.mxu0 %v4688_v1  ;;  %4344 = vmatprep.subr.mxu1 %v4688_v1 }
  0x29   :  { %4304 = vmatpush3.msra.mxu0 %v4929_v12  ;;  %4345 = vmatpush3.msra.mxu1 %v4929_v12 }
  0x2a   :  { %4305 = vmatprep.subr.mxu0 %v4688_v1  ;;  %4346 = vmatprep.subr.mxu1 %v4688_v1 }
  0x2b   :  { %4306 = vmatpush3.msra.mxu0 %v4938_v13  ;;  %4347 = vmatpush3.msra.mxu1 %v4938_v13 }
  0x2c   :  { %4307 = vmatprep.subr.mxu0 %v4688_v1  ;;  %4348 = vmatprep.subr.mxu1 %v4688_v1 }
  0x2d   :  { %4308 = vmatpush3.msra.mxu0 %v4947_v14  ;;  %4349 = vmatpush3.msra.mxu1 %v4947_v14 }
  0x2e   :  { %4309 = vmatprep.subr.mxu0 %v4688_v1  ;;  %4350 = vmatprep.subr.mxu1 %v4688_v1 }
  0x2f   :  { %4310 = vmatpush3.msra.mxu0 %v4956_v15  ;;  %4351 = vmatpush3.msra.mxu1 %v4956_v15 }
  0x30   :  { %4311 = vmatprep.subr.mxu0 %v4688_v1  ;;  %4352 = vmatprep.subr.mxu1 %v4688_v1 }
  0x31   :  { %4312 = vmatpush3.msra.mxu0 %v4965_v16  ;;  %4313 = vmatprep.mubr.msk.f32.mxu0 %vm4689_vm0, %v4688_v1 }
  0x32   :  { %4353 = vmatpush3.msra.mxu1 %v4965_v16  ;;  %4314 = vmatmul.mubr.f32.vlgmr.msra.gmra.mxu0 %v81_v17  ;;  %v3854_v17 = vld [vmem:[%s7292_s4 + $0x2] sm:$0x3] }
  0x33   :  { %4354 = vmatprep.mubr.msk.f32.mxu1 %vm4689_vm0, %v4688_v1  ;;  %4363 = vmatprep.subr.mxu0 %v4688_v1 }
  0x34   :  { %4404 = vmatprep.subr.mxu1 %v4688_v1  ;;  %4355 = vmatmul.mubr.f32.vlgmr.msra.gmra.mxu1 %v3843_v18 }
  0x35   :  { %4364 = vmatpush3.msra.mxu0 %v4832_v0  ;;  %4405 = vmatpush3.msra.mxu1 %v4832_v0 }
  0x36   :  { %4365 = vmatprep.subr.mxu0 %v4688_v1  ;;  %4406 = vmatprep.subr.mxu1 %v4688_v1 }
  0x37   :  { %4366 = vmatpush3.msra.mxu0 %v4839_v2  ;;  %4407 = vmatpush3.msra.mxu1 %v4839_v2 }
  0x38   :  { %4367 = vmatprep.subr.mxu0 %v4688_v1  ;;  %4408 = vmatprep.subr.mxu1 %v4688_v1 }
  0x39   :  { %4368 = vmatpush3.msra.mxu0 %v4848_v3  ;;  %4409 = vmatpush3.msra.mxu1 %v4848_v3 }
  0x3a   :  { %4369 = vmatprep.subr.mxu0 %v4688_v1  ;;  %4410 = vmatprep.subr.mxu1 %v4688_v1 }
  0x3b   :  { %4370 = vmatpush3.msra.mxu0 %v4857_v4  ;;  %4411 = vmatpush3.msra.mxu1 %v4857_v4 }
  0x3c   :  { %4371 = vmatprep.subr.mxu0 %v4688_v1  ;;  %4412 = vmatprep.subr.mxu1 %v4688_v1 }
  0x3d   :  { %4372 = vmatpush3.msra.mxu0 %v4866_v5  ;;  %4413 = vmatpush3.msra.mxu1 %v4866_v5 }
  0x3e   :  { %4373 = vmatprep.subr.mxu0 %v4688_v1  ;;  %4414 = vmatprep.subr.mxu1 %v4688_v1 }
  0x3f   :  { %4374 = vmatpush3.msra.mxu0 %v4875_v6  ;;  %4415 = vmatpush3.msra.mxu1 %v4875_v6 }
  0x40   :  { %4375 = vmatprep.subr.mxu0 %v4688_v1  ;;  %4416 = vmatprep.subr.mxu1 %v4688_v1 }
  0x41   :  { %4376 = vmatpush3.msra.mxu0 %v4884_v7  ;;  %4417 = vmatpush3.msra.mxu1 %v4884_v7 }
  0x42   :  { %4377 = vmatprep.subr.mxu0 %v4688_v1  ;;  %4418 = vmatprep.subr.mxu1 %v4688_v1 }
  0x43   :  { %4378 = vmatpush3.msra.mxu0 %v4893_v8  ;;  %4419 = vmatpush3.msra.mxu1 %v4893_v8 }
  0x44   :  { %4379 = vmatprep.subr.mxu0 %v4688_v1  ;;  %4420 = vmatprep.subr.mxu1 %v4688_v1 }
  0x45   :  { %4380 = vmatpush3.msra.mxu0 %v4902_v9  ;;  %4421 = vmatpush3.msra.mxu1 %v4902_v9 }
  0x46   :  { %4381 = vmatprep.subr.mxu0 %v4688_v1  ;;  %4422 = vmatprep.subr.mxu1 %v4688_v1 }
  0x47   :  { %4382 = vmatpush3.msra.mxu0 %v4911_v10  ;;  %4423 = vmatpush3.msra.mxu1 %v4911_v10 }
  0x48   :  { %4383 = vmatprep.subr.mxu0 %v4688_v1  ;;  %4424 = vmatprep.subr.mxu1 %v4688_v1 }
  0x49   :  { %4316 = vmatprep.mubr.msk.f32.mxu0 %vm4689_vm0, %v4688_v1  ;;  %4384 = vmatpush3.msra.mxu0 %v4920_v11 }
  0x4a   :  { %4425 = vmatpush3.msra.mxu1 %v4920_v11  ;;  %4317 = vmatmul.mubr.f32.gmra.mxu0 %v82_v19  ;;  %v457_v19 = vld [vmem:[%s7292_s4] sm:$0x3] }
  0x4b   :  { %4385 = vmatprep.subr.mxu0 %v4688_v1  ;;  %4426 = vmatprep.subr.mxu1 %v4688_v1 }
  0x4c   :  { %4357 = vmatprep.mubr.msk.f32.mxu1 %vm4689_vm0, %v4688_v1  ;;  %4386 = vmatpush3.msra.mxu0 %v4929_v12 }
  0x4d   :  { %4427 = vmatpush3.msra.mxu1 %v4929_v12  ;;  %4387 = vmatprep.subr.mxu0 %v4688_v1 }
  0x4e   :  { %4358 = vmatmul.mubr.f32.gmra.mxu1 %v3844_v20  ;;  %4428 = vmatprep.subr.mxu1 %v4688_v1  ;;  %v3857_v20 = vld [vmem:[%s7292_s4 + $0x4] sm:$0x3] }
  0x4f   :  { %4319 = vmatprep.mubr.msk.f32.mxu0 %vm4689_vm0, %v4688_v1  ;;  %4388 = vmatpush3.msra.mxu0 %v4938_v13 }
  0x50   :  { %4429 = vmatpush3.msra.mxu1 %v4938_v13  ;;  %4320 = vmatmul.mubr.f32.gmra.mxu0 %v83_v21  ;;  %v3860_v21 = vld [vmem:[%s7292_s4 + $0x6] sm:$0x3] }
  0x51   :  { %4389 = vmatprep.subr.mxu0 %v4688_v1  ;;  %4430 = vmatprep.subr.mxu1 %v4688_v1 }
  0x52   :  { %4360 = vmatprep.mubr.msk.f32.mxu1 %vm4689_vm0, %v4688_v1  ;;  %4390 = vmatpush3.msra.mxu0 %v4947_v14 }
  0x53   :  { %4431 = vmatpush3.msra.mxu1 %v4947_v14  ;;  %4391 = vmatprep.subr.mxu0 %v4688_v1 }
  0x54   :  { %4361 = vmatmul.mubr.f32.gmra.mxu1 %v3845_v22  ;;  %4432 = vmatprep.subr.mxu1 %v4688_v1  ;;  %v3866_v22 = vld [vmem:[%s7292_s4 + $0xa] sm:$0x3] }
  0x55   :  { %4392 = vmatpush3.msra.mxu0 %v4956_v15  ;;  %4433 = vmatpush3.msra.mxu1 %v4956_v15 }
  0x56   :  { %4393 = vmatprep.subr.mxu0 %v4688_v1  ;;  %4434 = vmatprep.subr.mxu1 %v4688_v1 }
  0x57   :  { %4394 = vmatpush3.msra.mxu0 %v4965_v16  ;;  %4395 = vmatprep.mubr.msk.f32.mxu0 %vm4689_vm0, %v4688_v1 }
  0x58   :  { %4435 = vmatpush3.msra.mxu1 %v4965_v16  ;;  %4436 = vmatprep.mubr.msk.f32.mxu1 %vm4689_vm0, %v4688_v1 }
  0x59   :  { %4396 = vmatmul.mubr.f32.vlgmr.msra.gmra.mxu0 %v3846_v23  ;;  %4437 = vmatmul.mubr.f32.vlgmr.msra.gmra.mxu1 %v3849_v24  ;;  %v3863_v23 = vld [vmem:[%s7292_s4 + $0x8] sm:$0x3]  ;;  %v3869_v24 = vld [vmem:[%s7292_s4 + $0xc] sm:$0x3] }
  0x5a   :  { %4398 = vmatprep.mubr.msk.f32.mxu0 %vm4689_vm0, %v4688_v1  ;;  %4439 = vmatprep.mubr.msk.f32.mxu1 %vm4689_vm0, %v4688_v1 }
  0x5b   :  { %4445 = vmatprep.subr.mxu0 %v4688_v1  ;;  %4454 = vmatprep.subr.mxu1 %v4688_v1 }
  0x5d   :  { %4399 = vmatmul.mubr.f32.gmra.mxu0 %v3847_v25  ;;  %4440 = vmatmul.mubr.f32.gmra.mxu1 %v3850_v26  ;;  %v3872_v25 = vld [vmem:[%s7292_s4 + $0xe] sm:$0x3]  ;;  %v3875_v26 = vld [vmem:[%s7292_s4 + $0x10] sm:$0x3] }
  0x5e   :  { %4401 = vmatprep.mubr.msk.f32.mxu0 %vm4689_vm0, %v4688_v1  ;;  %4442 = vmatprep.mubr.msk.f32.mxu1 %vm4689_vm0, %v4688_v1 }
  0x61   :  { %4402 = vmatmul.mubr.f32.gmra.mxu0 %v3848_v27  ;;  %4443 = vmatmul.mubr.f32.gmra.mxu1 %v3851_v28  ;;  %v1215_v27 = vld [vmem:[%s7293_s2 + $0x170] sm:$0xff]  ;;  %v1214_v28 = vld [vmem:[%s7293_s2 + $0x168] sm:$0xff] }
  0x62   :  { %4460 = vmatprep.mubr.msk.f32.mxu1 %vm4689_vm0, %v4688_v1  ;;  %4451 = vmatprep.mubr.msk.f32.mxu0 %vm4689_vm0, %v4688_v1 }
  0xf2   :  { %v173_v29 = vpop.f32.mrf.mxu0 }
  0xf3   :  { %v174_v48 = vadd.f32 %v3842_v41, %v173_v29  ;;  %v1212_v29 = vld [vmem:[%s7293_s2 + $0x158] sm:$0xff] }
  0xf4   :  { %v257_v30 = vpop.f32.mrf.mxu1  ;;  %v4315_v31 = vpop.f32.mrf.mxu0 }
  0xf5   :  { %v258_v49 = vadd.f32 %v3842_v41, %v257_v30  ;;  %v1211_v30 = vld [vmem:[%s7293_s2 + $0x150] sm:$0xff]  ;;  %v1209_v31 = vld [vmem:[%s7293_s2 + $0x140] sm:$0xff] }
  0xf6   :  { %v4356_v32 = vpop.f32.mrf.mxu1 }
  0xf7   :  { %v271_v59 = vmax.f32 %v174_v48, %v258_v49  ;;  %v1208_v32 = vld [vmem:[%s7293_s2 + $0x138] sm:$0xff]  ;;  %v1266_v48 = vld [vmem:[%s7293_s2 + $0x308] sm:$0xff]  ;;  %v1193_v49 = vld [vmem:[%s7293_s2 + $0xc0] sm:$0xff] }
 0x10a   :  { %v178_v33 = vpop.f32.mrf.mxu0 }
 0x10b   :  { %v179_v44 = vadd.f32 %v3842_v41, %v178_v33  ;;  %v1206_v33 = vld [vmem:[%s7293_s2 + $0x128] sm:$0xff] }
 0x10c   :  { %v4318_v34 = vpop.f32.mrf.mxu0 }
 0x10d   :  { %v1205_v34 = vld [vmem:[%s7293_s2 + $0x120] sm:$0xff] }
 0x10e   :  { %v262_v35 = vpop.f32.mrf.mxu1 }
 0x10f   :  { %v263_v45 = vadd.f32 %v3842_v41, %v262_v35  ;;  %v1203_v35 = vld [vmem:[%s7293_s2 + $0x110] sm:$0xff] }
 0x110   :  { %v183_v36 = vpop.f32.mrf.mxu0  ;;  %v4359_v37 = vpop.f32.mrf.mxu1 }
 0x111   :  { %v184_v50 = vadd.f32 %v3842_v41, %v183_v36  ;;  %v272_v54 = vmax.f32 %v179_v44, %v263_v45  ;;  %v1202_v36 = vld [vmem:[%s7293_s2 + $0x108] sm:$0xff]  ;;  %v1200_v37 = vld [vmem:[%s7293_s2 + $0xf8] sm:$0xff]  ;;  %v1269_v44 = vld [vmem:[%s7293_s2 + $0x320] sm:$0xff] }
 0x112   :  { %v4321_v38 = vpop.f32.mrf.mxu0  ;;  %v1196_v45 = vld [vmem:[%s7293_s2 + $0xd8] sm:$0xff] }
 0x113   :  { %v1275_v38 = vld [vmem:[%s7293_s2 + $0x350] sm:$0xff] }
 0x114   :  { %v267_v39 = vpop.f32.mrf.mxu1 }
 0x115   :  { %v268_v51 = vadd.f32 %v3842_v41, %v267_v39  ;;  %v1274_v39 = vld [vmem:[%s7293_s2 + $0x348] sm:$0xff] }
 0x116   :  { %v4362_v40 = vpop.f32.mrf.mxu1 }
 0x117   :  { %v273_v62 = vmax.f32 %v184_v50, %v268_v51  ;;  %v1199_v40 = vld [vmem:[%s7293_s2 + $0xf0] sm:$0xff]  ;;  %v1265_v50 = vld [vmem:[%s7293_s2 + $0x300] sm:$0xff] }
 0x118   :  { %v1191_v51 = vld [vmem:[%s7293_s2 + $0xb0] sm:$0xff] }
 0x119   :  { %v344_v42 = vpop.f32.mrf.mxu0  ;;  %v431_v43 = vpop.f32.mrf.mxu1 }
 0x11a   :  { %v345_v55 = vadd.f32 %v3842_v41, %v344_v42  ;;  %v432_v3 = vadd.f32 %v3842_v41, %v431_v43  ;;  %v1197_v42 = vld [vmem:[%s7293_s2 + $0xe0] sm:$0xff]  ;;  %v1271_v43 = vld [vmem:[%s7293_s2 + $0x330] sm:$0xff] }
 0x11b   :  { %v4397_v46 = vpop.f32.mrf.mxu0  ;;  %v4438_v47 = vpop.f32.mrf.mxu1 }
 0x11c   :  { %v358_v2 = vmax.f32 %v271_v59, %v345_v55  ;;  %v1268_v46 = vld [vmem:[%s7293_s2 + $0x318] sm:$0xff]  ;;  %v1194_v47 = vld [vmem:[%s7293_s2 + $0xc8] sm:$0xff]  ;;  %v1187_v55 = vld [vmem:[%s7293_s2 + $0x90] sm:$0xff] }
 0x11d   :  { %v349_v52 = vpop.f32.mrf.mxu0  ;;  %v436_v53 = vpop.f32.mrf.mxu1  ;;  %v1181_v59 = vld [vmem:[%s7293_s2 + $0x60] sm:$0xff] }
 0x11e   :  { %v350_v56 = vadd.f32 %v3842_v41, %v349_v52  ;;  %v437_v61 = vadd.f32 %v3842_v41, %v436_v53  ;;  %v445_v10 = vmax.f32 %v358_v2, %v432_v3  ;;  %v1264_v52 = vld [vmem:[%s7293_s2 + $0x2f8] sm:$0xff]  ;;  %v1190_v53 = vld [vmem:[%s7293_s2 + $0xa8] sm:$0xff] }
 0x11f   :  { %v4400_v57 = vpop.f32.mrf.mxu0  ;;  %v4441_v58 = vpop.f32.mrf.mxu1  ;;  %v1172_v2 = vld [vmem:[%s7293_s2 + $0x18] sm:$0xff]  ;;  %v1170_v3 = vld [vmem:[%s7293_s2 + $0x8] sm:$0xff] }
 0x120   :  { %v359_v60 = vmax.f32 %v272_v54, %v350_v56  ;;  %v451_v14 = vmul.f32 0.1, %v445_v10  ;;  %vm448_vm4 = vcmp.gt.f32.partialorder %v445_v10, 0.0  ;;  %v1188_v54 = vld [vmem:[%s7293_s2 + $0x98] sm:$0xff]  ;;  %v1185_v56 = vld [vmem:[%s7293_s2 + $0x80] sm:$0xff]  ;;  %v1182_v58 = vld [vmem:[%s7293_s2 + $0x68] sm:$0xff] }
 0x121   :  { %v354_v63 = vpop.f32.mrf.mxu0  ;;  %v441_v0 = vpop.f32.mrf.mxu1  ;;  %v1184_v57 = vld [vmem:[%s7293_s2 + $0x78] sm:$0xff] }
 0x122   :  { %v355_v4 = vadd.f32 %v3842_v41, %v354_v63  ;;  %v442_v5 = vadd.f32 %v3842_v41, %v441_v0  ;;  %v446_v8 = vmax.f32 %v359_v60, %v437_v61  ;;  %v5121_v18 = vsel %vm448_vm4, %v445_v10, %v451_v14  ;;  %v1272_v41 = vld [vmem:[%s7293_s2 + $0x338] sm:$0xff]  ;;  %v1179_v60 = vld [vmem:[%s7293_s2 + $0x50] sm:$0xff]  ;;  %v1178_v61 = vld [vmem:[%s7293_s2 + $0x48] sm:$0xff] }
 0x123   :  { %v4403_v6 = vpop.f32.mrf.mxu0  ;;  %v4444_v7 = vpop.f32.mrf.mxu1  ;;  %v1175_v63 = vld [vmem:[%s7293_s2 + $0x30] sm:$0xff]  ;;  %v1173_v0 = vld [vmem:[%s7293_s2 + $0x20] sm:$0xff]  ;;  %v1256_v10 = vld [vmem:[%s7293_s2 + $0x2b8] sm:$0xff] }
 0x124   :  { %v360_v9 = vmax.f32 %v273_v62, %v355_v4  ;;  %v452_v12 = vmul.f32 0.1, %v446_v8  ;;  %vm449_vm3 = vcmp.gt.f32.partialorder %v446_v8, 0.0  ;;  %v1176_v62 = vld [vmem:[%s7293_s2 + $0x38] sm:$0xff]  ;;  %v1169_v4 = vld [vmem:[%s7293_s2] sm:$0xff]  ;;  %v1262_v6 = vld [vmem:[%s7293_s2 + $0x2e8] sm:$0xff] }
 0x125   :  { %v1260_v7 = vld [vmem:[%s7293_s2 + $0x2d8] sm:$0xff]  ;;  %v1250_v14 = vld [vmem:[%s7293_s2 + $0x288] sm:$0xff] }
 0x126   :  { %v447_v11 = vmax.f32 %v360_v9, %v442_v5  ;;  %v5112_v16 = vsel %vm449_vm3, %v446_v8, %v452_v12  ;;  %v1263_v5 = vld [vmem:[%s7293_s2 + $0x2f0] sm:$0xff]  ;;  %v1257_v9 = vld [vmem:[%s7293_s2 + $0x2c0] sm:$0xff] }
 0x127   :  { %v1259_v8 = vld [vmem:[%s7293_s2 + $0x2d0] sm:$0xff]  ;;  %v1253_v12 = vld [vmem:[%s7293_s2 + $0x2a0] sm:$0xff] }
 0x128   :  { %vm450_vm1 = vcmp.gt.f32.partialorder %v447_v11, 0.0  ;;  %v453_v13 = vmul.f32 0.1, %v447_v11 }
 0x12a   :  { %v5106_v15 = vsel %vm450_vm1, %v447_v11, %v453_v13  ;;  %v1254_v11 = vld [vmem:[%s7293_s2 + $0x2a8] sm:$0xff]  ;;  %v1251_v13 = vld [vmem:[%s7293_s2 + $0x290] sm:$0xff] }
 0x12b   :  { %4446 = vmatpush3.msk.msra.mxu0 %vm462_vm2, %v5106_v15  ;;  %4455 = vmatpush3.msk.msra.mxu1 %vm462_vm2, %v5106_v15 }
 0x12c   :  { %4447 = vmatprep.subr.mxu0 %v4688_v1  ;;  %4456 = vmatprep.subr.mxu1 %v4688_v1 }
 0x12d   :  { %4448 = vmatpush3.msra.mxu0 %v5112_v16  ;;  %4457 = vmatpush3.msra.mxu1 %v5112_v16 }
 0x12e   :  { %4449 = vmatprep.subr.mxu0 %v4688_v1  ;;  %4458 = vmatprep.subr.mxu1 %v4688_v1 }
 0x12f   :  { %4450 = vmatpush3.msra.mxu0 %v5121_v18  ;;  %4459 = vmatpush3.msra.mxu1 %v5121_v18 }
 0x130   :  { %4461 = vmatmul.mubr.msk.f32.vlgmr.msra.gmra.mxu1 %vm458_vm5, %v3854_v17  ;;  %4463 = vmatprep.subr.mxu0 %v4688_v1  ;;  %v1245_v17 = vld [vmem:[%s7293_s2 + $0x260] sm:$0xff] }
 0x131   :  { %4472 = vmatprep.subr.mxu1 %v4688_v1  ;;  %4452 = vmatmul.mubr.msk.f32.vlgmr.msra.gmra.mxu0 %vm458_vm5, %v457_v19  ;;  %v1242_v19 = vld [vmem:[%s7293_s2 + $0x248] sm:$0xff] }
 0x132   :  { %4464 = vmatpush3.msk.msra.mxu0 %vm462_vm2, %v5106_v15  ;;  %4473 = vmatpush3.msk.msra.mxu1 %vm462_vm2, %v5106_v15 }
 0x133   :  { %4465 = vmatprep.subr.mxu0 %v4688_v1  ;;  %4474 = vmatprep.subr.mxu1 %v4688_v1 }
 0x134   :  { %4466 = vmatpush3.msra.mxu0 %v5112_v16  ;;  %4475 = vmatpush3.msra.mxu1 %v5112_v16 }
 0x135   :  { %4467 = vmatprep.subr.mxu0 %v4688_v1  ;;  %4476 = vmatprep.subr.mxu1 %v4688_v1 }
 0x136   :  { %4468 = vmatpush3.msra.mxu0 %v5121_v18  ;;  %4469 = vmatprep.mubr.msk.f32.mxu0 %vm4689_vm0, %v4688_v1 }
 0x137   :  { %4477 = vmatpush3.msra.mxu1 %v5121_v18  ;;  %4470 = vmatmul.mubr.msk.f32.vlgmr.msra.gmra.mxu0 %vm458_vm5, %v3857_v20  ;;  %v1241_v20 = vld [vmem:[%s7293_s2 + $0x240] sm:$0xff] }
 0x138   :  { %4478 = vmatprep.mubr.msk.f32.mxu1 %vm4689_vm0, %v4688_v1  ;;  %4481 = vmatprep.subr.mxu0 %v4688_v1 }
 0x139   :  { %4490 = vmatprep.subr.mxu1 %v4688_v1  ;;  %4479 = vmatmul.mubr.msk.f32.vlgmr.msra.gmra.mxu1 %vm458_vm5, %v3860_v21  ;;  %v1239_v21 = vld [vmem:[%s7293_s2 + $0x230] sm:$0xff] }
 0x13a   :  { %4482 = vmatpush3.msk.msra.mxu0 %vm462_vm2, %v5106_v15  ;;  %4491 = vmatpush3.msk.msra.mxu1 %vm462_vm2, %v5106_v15 }
 0x13b   :  { %4483 = vmatprep.subr.mxu0 %v4688_v1  ;;  %4492 = vmatprep.subr.mxu1 %v4688_v1 }
 0x13c   :  { %4484 = vmatpush3.msra.mxu0 %v5112_v16  ;;  %4493 = vmatpush3.msra.mxu1 %v5112_v16 }
 0x13d   :  { %4485 = vmatprep.subr.mxu0 %v4688_v1  ;;  %4494 = vmatprep.subr.mxu1 %v4688_v1 }
 0x13e   :  { %4486 = vmatpush3.msra.mxu0 %v5121_v18  ;;  %4495 = vmatpush3.msra.mxu1 %v5121_v18 }
 0x13f   :  { %4496 = vmatprep.mubr.msk.f32.mxu1 %vm4689_vm0, %v4688_v1  ;;  %4487 = vmatprep.mubr.msk.f32.mxu0 %vm4689_vm0, %v4688_v1 }
 0x140   :  { %4497 = vmatmul.mubr.msk.f32.vlgmr.msra.gmra.mxu1 %vm458_vm5, %v3866_v22  ;;  %4499 = vmatprep.subr.mxu0 %v4688_v1  ;;  %v1238_v22 = vld [vmem:[%s7293_s2 + $0x228] sm:$0xff] }
 0x141   :  { %4508 = vmatprep.subr.mxu1 %v4688_v1  ;;  %4488 = vmatmul.mubr.msk.f32.vlgmr.msra.gmra.mxu0 %vm458_vm5, %v3863_v23  ;;  %v1236_v23 = vld [vmem:[%s7293_s2 + $0x218] sm:$0xff] }
 0x142   :  { %4500 = vmatpush3.msk.msra.mxu0 %vm462_vm2, %v5106_v15  ;;  %4509 = vmatpush3.msk.msra.mxu1 %vm462_vm2, %v5106_v15 }
 0x143   :  { %4501 = vmatprep.subr.mxu0 %v4688_v1  ;;  %4510 = vmatprep.subr.mxu1 %v4688_v1 }
 0x144   :  { %4502 = vmatpush3.msra.mxu0 %v5112_v16  ;;  %4511 = vmatpush3.msra.mxu1 %v5112_v16 }
 0x145   :  { %4503 = vmatprep.subr.mxu0 %v4688_v1  ;;  %4512 = vmatprep.subr.mxu1 %v4688_v1 }
 0x146   :  { %4504 = vmatpush3.msra.mxu0 %v5121_v18  ;;  %4505 = vmatprep.mubr.msk.f32.mxu0 %vm4689_vm0, %v4688_v1 }
 0x147   :  { %4513 = vmatpush3.msra.mxu1 %v5121_v18  ;;  %4506 = vmatmul.mubr.msk.f32.vlgmr.msra.gmra.mxu0 %vm458_vm5, %v3869_v24  ;;  %v1235_v24 = vld [vmem:[%s7293_s2 + $0x210] sm:$0xff] }
 0x148   :  { %4514 = vmatprep.mubr.msk.f32.mxu1 %vm4689_vm0, %v4688_v1  ;;  %4517 = vmatprep.subr.mxu0 %v4688_v1 }
 0x149   :  { %4515 = vmatmul.mubr.msk.f32.vlgmr.msra.gmra.mxu1 %vm458_vm5, %v3872_v25  ;;  %4518 = vmatpush3.msk.msra.mxu0 %vm462_vm2, %v5106_v15  ;;  %v1248_v15 = vld [vmem:[%s7293_s2 + $0x278] sm:$0xff]  ;;  %v1233_v25 = vld [vmem:[%s7293_s2 + $0x200] sm:$0xff] }
 0x14a   :  { %4519 = vmatprep.subr.mxu0 %v4688_v1  ;;  %4523 = vmatprep.mubr.msk.f32.mxu0 %vm4689_vm0, %v4688_v1 }
 0x14b   :  { %4520 = vmatpush3.msra.mxu0 %v5112_v16  ;;  %1297 = vmatprep.subr.mxu1 %v1215_v27  ;;  %v1247_v16 = vld [vmem:[%s7293_s2 + $0x270] sm:$0xff] }
 0x14c   :  { %4521 = vmatprep.subr.mxu0 %v4688_v1  ;;  %1298 = vmatpush1.msra.mxu1 %v1214_v28 }
 0x14d   :  { %4522 = vmatpush3.msra.mxu0 %v5121_v18  ;;  %1299 = vmatprep.subr.mxu1 %v1212_v29  ;;  %v1244_v18 = vld [vmem:[%s7293_s2 + $0x258] sm:$0xff] }
 0x14e   :  { %4524 = vmatmul.mubr.msk.f32.vlgmr.msra.gmra.mxu0 %vm458_vm5, %v3875_v26  ;;  %1300 = vmatpush1.msra.mxu1 %v1211_v30  ;;  %v1232_v30 = vld [vmem:[%s7293_s2 + $0x1f8] sm:$0xff] }
 0x14f   :  { %1432 = vmatprep.mubr.f32.mxu0 %v4688_v1  ;;  %1301 = vmatprep.subr.mxu1 %v1209_v31  ;;  %v1230_v31 = vld [vmem:[%s7293_s2 + $0x1e8] sm:$0xff] }
 0x150   :  { %1302 = vmatpush1.msra.mxu1 %v1208_v32  ;;  %1392 = vmatprep.subr.mxu0 %v1275_v38  ;;  %v1229_v32 = vld [vmem:[%s7293_s2 + $0x1e0] sm:$0xff] }
 0x151   :  { %1303 = vmatprep.subr.mxu1 %v1206_v33  ;;  %1393 = vmatpush1.msra.mxu0 %v1274_v39  ;;  %v1227_v33 = vld [vmem:[%s7293_s2 + $0x1d0] sm:$0xff] }
 0x152   :  { %1304 = vmatpush1.msra.mxu1 %v1205_v34  ;;  %1394 = vmatprep.subr.mxu0 %v1272_v41  ;;  %v1221_v41 = vld [vmem:[%s7293_s2 + $0x1a0] sm:$0xff] }
 0x153   :  { %1305 = vmatprep.subr.mxu1 %v1203_v35  ;;  %1395 = vmatpush1.msra.mxu0 %v1271_v43  ;;  %v1226_v35 = vld [vmem:[%s7293_s2 + $0x1c8] sm:$0xff] }
 0x154   :  { %1306 = vmatpush1.msra.mxu1 %v1202_v36  ;;  %1396 = vmatprep.subr.mxu0 %v1269_v44  ;;  %v1224_v36 = vld [vmem:[%s7293_s2 + $0x1b8] sm:$0xff]  ;;  %v1218_v43 = vld [vmem:[%s7293_s2 + $0x188] sm:$0xff]  ;;  %v1217_v44 = vld [vmem:[%s7293_s2 + $0x180] sm:$0xff] }
 0x155   :  { %1307 = vmatprep.subr.mxu1 %v1200_v37  ;;  %1397 = vmatpush1.msra.mxu0 %v1268_v46 }
 0x156   :  { %1308 = vmatpush1.msra.mxu1 %v1199_v40  ;;  %1398 = vmatprep.subr.mxu0 %v1266_v48  ;;  %v1223_v40 = vld [vmem:[%s7293_s2 + $0x1b0] sm:$0xff] }
 0x157   :  { %1309 = vmatprep.subr.mxu1 %v1197_v42  ;;  %1399 = vmatpush1.msra.mxu0 %v1265_v50  ;;  %v1220_v42 = vld [vmem:[%s7293_s2 + $0x198] sm:$0xff] }
 0x158   :  { %1310 = vmatpush1.msra.mxu1 %v1196_v45  ;;  %4012 = vmatprep.subr.mxu0 %v1264_v52 }
 0x159   :  { %1311 = vmatprep.subr.mxu1 %v1194_v47 }
 0x15a   :  { %1312 = vmatpush1.msra.mxu1 %v1193_v49 }
 0x15b   :  { %1313 = vmatprep.subr.mxu1 %v1191_v51 }
 0x15c   :  { %1314 = vmatpush1.msra.mxu1 %v1190_v53  ;;  %v1216_v53 = vld [vmem:[%s7293_s2 + $0x178] sm:$0xff] }
 0x15d   :  { %1315 = vmatprep.subr.mxu1 %v1188_v54 }
 0x15e   :  { %1316 = vmatpush1.msra.mxu1 %v1187_v55  ;;  %v1261_v55 = vld [vmem:[%s7293_s2 + $0x2e0] sm:$0xff] }
 0x15f   :  { %1317 = vmatprep.subr.mxu1 %v1185_v56  ;;  %v1213_v56 = vld [vmem:[%s7293_s2 + $0x160] sm:$0xff] }
 0x160   :  { %1318 = vmatpush1.msra.mxu1 %v1184_v57  ;;  %v1258_v57 = vld [vmem:[%s7293_s2 + $0x2c8] sm:$0xff] }
 0x161   :  { %1319 = vmatprep.subr.mxu1 %v1182_v58 }
 0x162   :  { %1320 = vmatpush1.msra.mxu1 %v1181_v59  ;;  %v1210_v59 = vld [vmem:[%s7293_s2 + $0x148] sm:$0xff] }
 0x163   :  { %1321 = vmatprep.subr.mxu1 %v1179_v60  ;;  %v1255_v60 = vld [vmem:[%s7293_s2 + $0x2b0] sm:$0xff] }
 0x164   :  { %1322 = vmatpush1.msra.mxu1 %v1178_v61  ;;  %v1207_v61 = vld [vmem:[%s7293_s2 + $0x130] sm:$0xff] }
 0x165   :  { %1323 = vmatprep.subr.mxu1 %v1176_v62  ;;  %v1252_v62 = vld [vmem:[%s7293_s2 + $0x298] sm:$0xff] }
 0x166   :  { %1324 = vmatpush1.msra.mxu1 %v1175_v63  ;;  %v1204_v63 = vld [vmem:[%s7293_s2 + $0x118] sm:$0xff] }
 0x167   :  { %1325 = vmatprep.subr.mxu1 %v1173_v0  ;;  %v1249_v0 = vld [vmem:[%s7293_s2 + $0x280] sm:$0xff] }
 0x168   :  { %1326 = vmatpush1.msra.mxu1 %v1172_v2  ;;  %v1201_v2 = vld [vmem:[%s7293_s2 + $0x100] sm:$0xff] }
 0x169   :  { %1327 = vmatprep.subr.mxu1 %v1170_v3  ;;  %v1246_v3 = vld [vmem:[%s7293_s2 + $0x268] sm:$0xff] }
 0x16a   :  { %1328 = vmatpush1.msra.mxu1 %v1169_v4  ;;  %v1198_v4 = vld [vmem:[%s7293_s2 + $0xe8] sm:$0xff] }
 0x16b   :  { %1329 = vmatprep.subr.mxu1 %v1263_v5  ;;  %v1243_v5 = vld [vmem:[%s7293_s2 + $0x250] sm:$0xff] }
 0x16c   :  { %1330 = vmatpush2.msra.mxu1 %v1262_v6  ;;  %v1195_v6 = vld [vmem:[%s7293_s2 + $0xd0] sm:$0xff] }
 0x16d   :  { %1331 = vmatprep.subr.mxu1 %v1260_v7  ;;  %v1240_v7 = vld [vmem:[%s7293_s2 + $0x238] sm:$0xff] }
 0x16e   :  { %1332 = vmatpush2.msra.mxu1 %v1259_v8  ;;  %v1192_v8 = vld [vmem:[%s7293_s2 + $0xb8] sm:$0xff] }
 0x16f   :  { %1333 = vmatprep.subr.mxu1 %v1257_v9  ;;  %v1237_v9 = vld [vmem:[%s7293_s2 + $0x220] sm:$0xff] }
 0x170   :  { %1334 = vmatpush2.msra.mxu1 %v1256_v10  ;;  %v1189_v10 = vld [vmem:[%s7293_s2 + $0xa0] sm:$0xff] }
 0x171   :  { %1335 = vmatprep.subr.mxu1 %v1254_v11  ;;  %v1234_v11 = vld [vmem:[%s7293_s2 + $0x208] sm:$0xff] }
 0x172   :  { %1336 = vmatpush2.msra.mxu1 %v1253_v12  ;;  %v1186_v12 = vld [vmem:[%s7293_s2 + $0x88] sm:$0xff] }
 0x173   :  { %1337 = vmatprep.subr.mxu1 %v1251_v13  ;;  %v1231_v13 = vld [vmem:[%s7293_s2 + $0x1f0] sm:$0xff] }
 0x174   :  { %1338 = vmatpush2.msra.mxu1 %v1250_v14  ;;  %v1183_v14 = vld [vmem:[%s7293_s2 + $0x70] sm:$0xff] }
 0x175   :  { %1339 = vmatprep.subr.mxu1 %v1248_v15  ;;  %v1228_v15 = vld [vmem:[%s7293_s2 + $0x1d8] sm:$0xff] }
 0x176   :  { %1340 = vmatpush2.msra.mxu1 %v1247_v16  ;;  %v1180_v16 = vld [vmem:[%s7293_s2 + $0x58] sm:$0xff] }
 0x177   :  { %1341 = vmatprep.subr.mxu1 %v1245_v17  ;;  %v1225_v17 = vld [vmem:[%s7293_s2 + $0x1c0] sm:$0xff] }
 0x178   :  { %1342 = vmatpush2.msra.mxu1 %v1244_v18  ;;  %v1177_v18 = vld [vmem:[%s7293_s2 + $0x40] sm:$0xff] }
 0x179   :  { %1343 = vmatprep.subr.mxu1 %v1242_v19  ;;  %v1222_v19 = vld [vmem:[%s7293_s2 + $0x1a8] sm:$0xff] }
 0x17a   :  { %1344 = vmatpush2.msra.mxu1 %v1241_v20  ;;  %v1174_v20 = vld [vmem:[%s7293_s2 + $0x28] sm:$0xff] }
 0x17b   :  { %1345 = vmatprep.subr.mxu1 %v1239_v21  ;;  %v1219_v21 = vld [vmem:[%s7293_s2 + $0x190] sm:$0xff] }
 0x17c   :  { %1346 = vmatpush2.msra.mxu1 %v1238_v22  ;;  %v1171_v22 = vld [vmem:[%s7293_s2 + $0x10] sm:$0xff] }
 0x17d   :  { %1347 = vmatprep.subr.mxu1 %v1236_v23 }
 0x17e   :  { %1348 = vmatpush2.msra.mxu1 %v1235_v24 }
 0x17f   :  { %1349 = vmatprep.subr.mxu1 %v1233_v25 }
 0x180   :  { %1350 = vmatpush2.msra.mxu1 %v1232_v30 }
 0x181   :  { %1351 = vmatprep.subr.mxu1 %v1230_v31 }
 0x182   :  { %1352 = vmatpush2.msra.mxu1 %v1229_v32 }
 0x183   :  { %1353 = vmatprep.subr.mxu1 %v1227_v33 }
 0x184   :  { %1354 = vmatpush2.msra.mxu1 %v1226_v35  ;;  %v1276_v35 = vld [vmem:[%s7293_s2 + $0x358] sm:$0xff] }
 0x185   :  { %1355 = vmatprep.subr.mxu1 %v1224_v36 }
 0x186   :  { %1356 = vmatpush2.msra.mxu1 %v1223_v40 }
 0x187   :  { %1357 = vmatprep.subr.mxu1 %v1221_v41 }
 0x188   :  { %1358 = vmatpush2.msra.mxu1 %v1220_v42 }
 0x189   :  { %1359 = vmatprep.subr.mxu1 %v1218_v43 }
 0x18a   :  { %1360 = vmatpush2.msra.mxu1 %v1217_v44 }
 0x1f0   :  { %v607_v26 = vpop.f32.mrf.mxu1 }
 0x1f1   :  { %1137 = vrot.lane.b32.xlu0 %v607_v26, %s4690_s29  ;;  %v5411_v27 = vpop.f32.mrf.mxu0 }
 0x1f2   :  { %v4462_v28 = vpop.f32.mrf.mxu1 }
 0x1f3   :  { %v4453_v29 = vpop.f32.mrf.mxu0 }
 0x1f7   :  { %v682_v34 = vpop.f32.mrf.mxu0 }
 0x1f8   :  { %1141 = vrot.lane.b32.xlu1 %v682_v34, %s4691_s8 }
 0x1f9   :  { %v757_v37 = vpop.f32.mrf.mxu1  ;;  %v4471_v38 = vpop.f32.mrf.mxu0 }
 0x1fa   :  { %v1267_v38 = vld [vmem:[%s7293_s2 + $0x310] sm:$0xff] }
 0x1fb   :  { %v4480_v39 = vpop.f32.mrf.mxu1 }
 0x200   :  { %v907_v45 = vpop.f32.mrf.mxu1 }
 0x201   :  { %1149 = vrot.lane.b32.xlu0 %v907_v45, %s4690_s29  ;;  %v5447_v46 = vpop.f32.mrf.mxu0  ;;  %s7294_s29 = sld [smem:[#allocation11_spill]] }
 0x202   :  { %v4498_v47 = vpop.f32.mrf.mxu1 }
 0x203   :  { %v4489_v48 = vpop.f32.mrf.mxu0 }
 0x207   :  { %v982_v49 = vpop.f32.mrf.mxu0  ;;  %v1634_v39 = vld [vmem:[%s7294_s29 + $0x170] sm:$0xff]  ;;  %v1633_v40 = vld [vmem:[%s7294_s29 + $0x168] sm:$0xff]  ;;  %v1631_v41 = vld [vmem:[%s7294_s29 + $0x158] sm:$0xff] }
 0x208   :  { %1153 = vrot.lane.b32.xlu1 %v982_v49, %s4691_s8  ;;  %v1630_v42 = vld [vmem:[%s7294_s29 + $0x150] sm:$0xff]  ;;  %v1628_v43 = vld [vmem:[%s7294_s29 + $0x140] sm:$0xff]  ;;  %v1627_v44 = vld [vmem:[%s7294_s29 + $0x138] sm:$0xff]  ;;  %s7297_s8 = sld [smem:[#allocation12_spill]] }
 0x209   :  { %v1057_v50 = vpop.f32.mrf.mxu1  ;;  %v4507_v51 = vpop.f32.mrf.mxu0  ;;  %v1625_v45 = vld [vmem:[%s7294_s29 + $0x128] sm:$0xff]  ;;  %v1622_v47 = vld [vmem:[%s7294_s29 + $0x110] sm:$0xff]  ;;  %v1619_v49 = vld [vmem:[%s7294_s29 + $0xf8] sm:$0xff] }
 0x20a   :  { %1157 = vrot.lane.b32.xlu0 %v1057_v50, %s4692_s3  ;;  %v1621_v48 = vld [vmem:[%s7294_s29 + $0x108] sm:$0xff]  ;;  %v1618_v50 = vld [vmem:[%s7294_s29 + $0xf0] sm:$0xff]  ;;  %v1616_v51 = vld [vmem:[%s7294_s29 + $0xe0] sm:$0xff] }
 0x20b   :  { %v4516_v52 = vpop.f32.mrf.mxu1 }
 0x20c   :  { %1145 = vrot.lane.b32.xlu1 %v757_v37, %s4692_s3  ;;  %v1270_v37 = vld [vmem:[%s7293_s2 + $0x328] sm:$0xff]  ;;  %v1615_v52 = vld [vmem:[%s7294_s29 + $0xd8] sm:$0xff]  ;;  %s7299_s3 = sld [smem:[#allocation14_spill]] }
 0x20e   :  { %v5452_v54 = vpop.f32.mrf.mxu0 }
 0x20f   :  { %3878 = vmatmul.mubr.msk.f32.vlgmr.msra.gmra.mxu0 %vm1160_vm6, %v5452_v54 }
 0x210   :  { %4013 = vmatpush3.msra.mxu0 %v1216_v53  ;;  %v4525_v58 = vpop.f32.mrf.mxu0  ;;  %v1613_v53 = vld [vmem:[%s7294_s29 + $0xc8] sm:$0xff] }
 0x211   :  { %4014 = vmatprep.subr.mxu0 %v1261_v55  ;;  %v1612_v55 = vld [vmem:[%s7294_s29 + $0xc0] sm:$0xff]  ;;  %v1607_v58 = vld [vmem:[%s7294_s29 + $0x98] sm:$0xff] }
 0x212   :  { %4015 = vmatpush3.msra.mxu0 %v1213_v56  ;;  %v1610_v56 = vld [vmem:[%s7294_s29 + $0xb0] sm:$0xff] }
 0x213   :  { %4016 = vmatprep.subr.mxu0 %v1258_v57  ;;  %v1609_v57 = vld [vmem:[%s7294_s29 + $0xa8] sm:$0xff] }
 0x214   :  { %4017 = vmatpush3.msra.mxu0 %v1210_v59  ;;  %v1606_v59 = vld [vmem:[%s7294_s29 + $0x90] sm:$0xff] }
 0x215   :  { %4018 = vmatprep.subr.mxu0 %v1255_v60  ;;  %v1604_v60 = vld [vmem:[%s7294_s29 + $0x80] sm:$0xff] }
 0x216   :  { %4019 = vmatpush3.msra.mxu0 %v1207_v61  ;;  %v1603_v61 = vld [vmem:[%s7294_s29 + $0x78] sm:$0xff] }
 0x217   :  { %4020 = vmatprep.subr.mxu0 %v1252_v62  ;;  %v1601_v62 = vld [vmem:[%s7294_s29 + $0x68] sm:$0xff] }
 0x218   :  { %4021 = vmatpush3.msra.mxu0 %v1204_v63  ;;  %v1600_v63 = vld [vmem:[%s7294_s29 + $0x60] sm:$0xff] }
 0x219   :  { %4022 = vmatprep.subr.mxu0 %v1249_v0  ;;  %v1598_v0 = vld [vmem:[%s7294_s29 + $0x50] sm:$0xff] }
 0x21a   :  { %4023 = vmatpush3.msra.mxu0 %v1201_v2  ;;  %v1597_v2 = vld [vmem:[%s7294_s29 + $0x48] sm:$0xff] }
 0x21b   :  { %4024 = vmatprep.subr.mxu0 %v1246_v3  ;;  %v1595_v3 = vld [vmem:[%s7294_s29 + $0x38] sm:$0xff] }
 0x21c   :  { %4025 = vmatpush3.msra.mxu0 %v1198_v4  ;;  %v1594_v4 = vld [vmem:[%s7294_s29 + $0x30] sm:$0xff] }
 0x21d   :  { %4026 = vmatprep.subr.mxu0 %v1243_v5  ;;  %v1592_v5 = vld [vmem:[%s7294_s29 + $0x20] sm:$0xff] }
 0x21e   :  { %4027 = vmatpush3.msra.mxu0 %v1195_v6  ;;  %v1591_v6 = vld [vmem:[%s7294_s29 + $0x18] sm:$0xff] }
 0x21f   :  { %4028 = vmatprep.subr.mxu0 %v1240_v7  ;;  %v1589_v7 = vld [vmem:[%s7294_s29 + $0x8] sm:$0xff] }
 0x220   :  { %4029 = vmatpush3.msra.mxu0 %v1192_v8  ;;  %v1588_v8 = vld [vmem:[%s7294_s29] sm:$0xff] }
 0x221   :  { %4030 = vmatprep.subr.mxu0 %v1237_v9  ;;  %v1682_v9 = vld [vmem:[%s7294_s29 + $0x2f0] sm:$0xff] }
 0x222   :  { %4031 = vmatpush3.msra.mxu0 %v1189_v10  ;;  %v1681_v10 = vld [vmem:[%s7294_s29 + $0x2e8] sm:$0xff] }
 0x223   :  { %4032 = vmatprep.subr.mxu0 %v1234_v11  ;;  %v1679_v11 = vld [vmem:[%s7294_s29 + $0x2d8] sm:$0xff] }
 0x224   :  { %4033 = vmatpush3.msra.mxu0 %v1186_v12  ;;  %v1678_v12 = vld [vmem:[%s7294_s29 + $0x2d0] sm:$0xff] }
 0x225   :  { %4034 = vmatprep.subr.mxu0 %v1231_v13  ;;  %v1676_v13 = vld [vmem:[%s7294_s29 + $0x2c0] sm:$0xff] }
 0x226   :  { %4035 = vmatpush3.msra.mxu0 %v1183_v14  ;;  %v1675_v14 = vld [vmem:[%s7294_s29 + $0x2b8] sm:$0xff] }
 0x227   :  { %4036 = vmatprep.subr.mxu0 %v1228_v15  ;;  %v1673_v15 = vld [vmem:[%s7294_s29 + $0x2a8] sm:$0xff] }
 0x228   :  { %4037 = vmatpush3.msra.mxu0 %v1180_v16  ;;  %v1672_v16 = vld [vmem:[%s7294_s29 + $0x2a0] sm:$0xff] }
 0x229   :  { %4038 = vmatprep.subr.mxu0 %v1225_v17  ;;  %v1670_v17 = vld [vmem:[%s7294_s29 + $0x290] sm:$0xff] }
 0x22a   :  { %4039 = vmatpush3.msra.mxu0 %v1177_v18  ;;  %v1669_v18 = vld [vmem:[%s7294_s29 + $0x288] sm:$0xff] }
 0x22b   :  { %4040 = vmatprep.subr.mxu0 %v1222_v19  ;;  %v1667_v19 = vld [vmem:[%s7294_s29 + $0x278] sm:$0xff] }
 0x22c   :  { %4041 = vmatpush3.msra.mxu0 %v1174_v20  ;;  %v1666_v20 = vld [vmem:[%s7294_s29 + $0x270] sm:$0xff] }
 0x22d   :  { %4042 = vmatprep.subr.mxu0 %v1219_v21  ;;  %v1664_v21 = vld [vmem:[%s7294_s29 + $0x260] sm:$0xff] }
 0x22e   :  { %4043 = vmatpush3.msra.mxu0 %v1171_v22  ;;  %v1663_v22 = vld [vmem:[%s7294_s29 + $0x258] sm:$0xff] }
 0x22f   :  { %4526 = vmatprep.subr.mxu0 %v4688_v1 }
 0x263   :  { %v1138_v23 = vpop.permute.xlu0 %1137 }
 0x264   :  { %v1161_v31 = vsel %vm1160_vm6, %v5411_v27, %v1138_v23  ;;  %v1273_v27 = vld [vmem:[%s7293_s2 + $0x340] sm:$0xff]  ;;  %v1661_v23 = vld [vmem:[%s7294_s29 + $0x248] sm:$0xff]  ;;  %s7298_s2 = sld [smem:[#allocation15_spill]] }
 0x26a   :  { %v1142_v24 = vpop.permute.xlu1 %1141 }
 0x26b   :  { %v1163_v33 = vsel %vm1162_vm7, %v1161_v31, %v1142_v24  ;;  %v1660_v24 = vld [vmem:[%s7294_s29 + $0x240] sm:$0xff]  ;;  %v1651_v31 = vld [vmem:[%s7294_s29 + $0x1f8] sm:$0xff] }
 0x273   :  { %v1150_v25 = vpop.permute.xlu0 %1149 }
 0x274   :  { %v1166_v26 = vsel %vm1160_vm6, %v5447_v46, %v1150_v25  ;;  %v1624_v46 = vld [vmem:[%s7294_s29 + $0x120] sm:$0xff]  ;;  %v1658_v25 = vld [vmem:[%s7294_s29 + $0x230] sm:$0xff] }
 0x27a   :  { %v1154_v28 = vpop.permute.xlu1 %1153 }
 0x27b   :  { %v1167_v29 = vsel %vm1162_vm7, %v1166_v26, %v1154_v28  ;;  %v1657_v26 = vld [vmem:[%s7294_s29 + $0x228] sm:$0xff]  ;;  %v1655_v28 = vld [vmem:[%s7294_s29 + $0x218] sm:$0xff] }
 0x27c   :  { %v1158_v30 = vpop.permute.xlu0 %1157 }
 0x27d   :  { %v5551_v32 = vsel %vm1164_vm8, %v1167_v29, %v1158_v30  ;;  %v1654_v29 = vld [vmem:[%s7294_s29 + $0x210] sm:$0xff]  ;;  %v1652_v30 = vld [vmem:[%s7294_s29 + $0x200] sm:$0xff] }
 0x27e   :  { %1361 = vmatprep.mubr.f32.mxu1 %v5551_v32  ;;  %1503 = vmatprep.mubr.f32.mxu0 %v5551_v32  ;;  %v1146_v34 = vpop.permute.xlu1 %1145 }
 0x27f   :  { %v5558_v36 = vsel %vm1164_vm8, %v1163_v33, %v1146_v34  ;;  %v1649_v33 = vld [vmem:[%s7294_s29 + $0x1e8] sm:$0xff]  ;;  %v1648_v34 = vld [vmem:[%s7294_s29 + $0x1e0] sm:$0xff] }
 0x280   :  { %1362 = vmatmul.mubr.f32.vlgmr.msra.gmra.mxu1 %v5558_v36  ;;  %1504 = vmatmul.mubr.f32.vlgmr.msra.gmra.mxu0 %v5558_v36 }
 0x281   :  { %4527 = vmatpush3.msra.mxu0 %v1276_v35  ;;  %4534 = vmatprep.mubr.msk.f32.mxu0 %vm4689_vm0, %v4688_v1  ;;  %v1646_v35 = vld [vmem:[%s7294_s29 + $0x1d0] sm:$0xff] }
 0x282   :  { %4528 = vmatprep.subr.mxu0 %v4688_v1  ;;  %1851 = vmatprep.mubr.f32.mxu1 %v4688_v1 }
 0x283   :  { %4529 = vmatpush3.msra.mxu0 %v1273_v27  ;;  %v1645_v27 = vld [vmem:[%s7294_s29 + $0x1c8] sm:$0xff] }
 0x284   :  { %4530 = vmatprep.subr.mxu0 %v4688_v1 }
 0x285   :  { %4531 = vmatpush3.msra.mxu0 %v1270_v37  ;;  %v1694_v37 = vld [vmem:[%s7294_s29 + $0x350] sm:$0xff] }
 0x286   :  { %4532 = vmatprep.subr.mxu0 %v4688_v1  ;;  %1811 = vmatprep.subr.mxu1 %v1694_v37  ;;  %v1659_v37 = vld [vmem:[%s7294_s29 + $0x238] sm:$0xff] }
 0x287   :  { %4533 = vmatpush3.msra.mxu0 %v1267_v38  ;;  %v1643_v38 = vld [vmem:[%s7294_s29 + $0x1b8] sm:$0xff] }
 0x288   :  { %4535 = vmatmul.mubr.msk.f32.vlgmr.msra.gmra.mxu0 %vm1160_vm6, %v5452_v54  ;;  %1716 = vmatprep.subr.mxu0 %v1634_v39  ;;  %v1693_v39 = vld [vmem:[%s7294_s29 + $0x348] sm:$0xff] }
 0x289   :  { %1717 = vmatpush1.msra.mxu0 %v1633_v40  ;;  %v1642_v40 = vld [vmem:[%s7294_s29 + $0x1b0] sm:$0xff]  ;;  %1812 = vmatpush1.msra.mxu1 %v1693_v39  ;;  %v1656_v39 = vld [vmem:[%s7294_s29 + $0x220] sm:$0xff] }
 0x28a   :  { %1718 = vmatprep.subr.mxu0 %v1631_v41  ;;  %v1691_v41 = vld [vmem:[%s7294_s29 + $0x338] sm:$0xff] }
 0x28b   :  { %1719 = vmatpush1.msra.mxu0 %v1630_v42  ;;  %1813 = vmatprep.subr.mxu1 %v1691_v41  ;;  %v1640_v42 = vld [vmem:[%s7294_s29 + $0x1a0] sm:$0xff]  ;;  %v1653_v41 = vld [vmem:[%s7294_s29 + $0x208] sm:$0xff] }
 0x28c   :  { %1720 = vmatprep.subr.mxu0 %v1628_v43  ;;  %v1690_v43 = vld [vmem:[%s7294_s29 + $0x330] sm:$0xff] }
 0x28d   :  { %1721 = vmatpush1.msra.mxu0 %v1627_v44  ;;  %1814 = vmatpush1.msra.mxu1 %v1690_v43  ;;  %v1639_v44 = vld [vmem:[%s7294_s29 + $0x198] sm:$0xff]  ;;  %v1650_v43 = vld [vmem:[%s7294_s29 + $0x1f0] sm:$0xff] }
 0x28e   :  { %1722 = vmatprep.subr.mxu0 %v1625_v45  ;;  %v1688_v45 = vld [vmem:[%s7294_s29 + $0x320] sm:$0xff] }
 0x28f   :  { %1723 = vmatpush1.msra.mxu0 %v1624_v46  ;;  %1815 = vmatprep.subr.mxu1 %v1688_v45  ;;  %v1637_v46 = vld [vmem:[%s7294_s29 + $0x188] sm:$0xff]  ;;  %v1647_v45 = vld [vmem:[%s7294_s29 + $0x1d8] sm:$0xff] }
 0x290   :  { %1724 = vmatprep.subr.mxu0 %v1622_v47  ;;  %v1687_v47 = vld [vmem:[%s7294_s29 + $0x318] sm:$0xff] }
 0x291   :  { %1725 = vmatpush1.msra.mxu0 %v1621_v48  ;;  %1816 = vmatpush1.msra.mxu1 %v1687_v47  ;;  %v1636_v48 = vld [vmem:[%s7294_s29 + $0x180] sm:$0xff] }
 0x292   :  { %1726 = vmatprep.subr.mxu0 %v1619_v49  ;;  %v1685_v49 = vld [vmem:[%s7294_s29 + $0x308] sm:$0xff]  ;;  %v1644_v47 = vld [vmem:[%s7294_s29 + $0x1c0] sm:$0xff] }
 0x293   :  { %1727 = vmatpush1.msra.mxu0 %v1618_v50  ;;  %1817 = vmatprep.subr.mxu1 %v1685_v49  ;;  %v1684_v50 = vld [vmem:[%s7294_s29 + $0x300] sm:$0xff]  ;;  %v1641_v49 = vld [vmem:[%s7294_s29 + $0x1a8] sm:$0xff] }
 0x294   :  { %1728 = vmatprep.subr.mxu0 %v1616_v51  ;;  %1818 = vmatpush1.msra.mxu1 %v1684_v50  ;;  %v1683_v51 = vld [vmem:[%s7294_s29 + $0x2f8] sm:$0xff]  ;;  %v1593_v50 = vld [vmem:[%s7294_s29 + $0x28] sm:$0xff] }
 0x295   :  { %1729 = vmatpush1.msra.mxu0 %v1615_v52  ;;  %4052 = vmatprep.subr.mxu1 %v1683_v51  ;;  %v1279_v52 = vlaneseq  ;;  %v1638_v51 = vld [vmem:[%s7294_s29 + $0x190] sm:$0xff] }
 0x296   :  { %1730 = vmatprep.subr.mxu0 %v1613_v53 }
 0x297   :  { %1731 = vmatpush1.msra.mxu0 %v1612_v55  ;;  %v1280_v53 = vshrl.u32 %v1279_v52, 7  ;;  %v1590_v52 = vld [vmem:[%s7294_s29 + $0x10] sm:$0xff] }
 0x298   :  { %1732 = vmatprep.subr.mxu0 %v1610_v56 }
 0x299   :  { %1733 = vmatpush1.msra.mxu0 %v1609_v57  ;;  %v5798_v55 = vsub.s32 0, %v1280_v53  ;;  %v1277_v57 = vld [vmem:[%s7295_s6] sm:$0x7] }
 0x29a   :  { %1734 = vmatprep.subr.mxu0 %v1607_v58  ;;  %v5803_v58 = vsub.s32 1, %v1280_v53 }
 0x29b   :  { %1735 = vmatpush1.msra.mxu0 %v1606_v59  ;;  %v1282_v59 = vrot.slane %v1277_v57, %v5798_v55 }
 0x29c   :  { %1736 = vmatprep.subr.mxu0 %v1604_v60  ;;  %v5806_v60 = vsub.s32 2, %v1280_v53  ;;  %v1695_v53 = vld [vmem:[%s7294_s29 + $0x358] sm:$0xff] }
 0x29d   :  { %1737 = vmatpush1.msra.mxu0 %v1603_v61 }
 0x29e   :  { %1738 = vmatprep.subr.mxu0 %v1601_v62  ;;  %v1286_v62 = vrot.slane %v1277_v57, %v5803_v58 }
 0x29f   :  { %1739 = vmatpush1.msra.mxu0 %v1600_v63 }
 0x2a0   :  { %1740 = vmatprep.subr.mxu0 %v1598_v0 }
 0x2a1   :  { %1741 = vmatpush1.msra.mxu0 %v1597_v2 }
 0x2a2   :  { %1742 = vmatprep.subr.mxu0 %v1595_v3  ;;  %v1290_v3 = vrot.slane %v1277_v57, %v5806_v60  ;;  %v1689_v57 = vld [vmem:[%s7294_s29 + $0x328] sm:$0xff] }
 0x2a3   :  { %1743 = vmatpush1.msra.mxu0 %v1594_v4 }
 0x2a4   :  { %1744 = vmatprep.subr.mxu0 %v1592_v5 }
 0x2a5   :  { %1745 = vmatpush1.msra.mxu0 %v1591_v6 }
 0x2a6   :  { %1746 = vmatprep.subr.mxu0 %v1589_v7 }
 0x2a7   :  { %1747 = vmatpush1.msra.mxu0 %v1588_v8 }
 0x2a8   :  { %1748 = vmatprep.subr.mxu0 %v1682_v9 }
 0x2a9   :  { %1749 = vmatpush2.msra.mxu0 %v1681_v10 }
 0x2aa   :  { %1750 = vmatprep.subr.mxu0 %v1679_v11 }
 0x2ab   :  { %1751 = vmatpush2.msra.mxu0 %v1678_v12 }
 0x2ac   :  { %1752 = vmatprep.subr.mxu0 %v1676_v13 }
 0x2ad   :  { %1753 = vmatpush2.msra.mxu0 %v1675_v14 }
 0x2ae   :  { %1754 = vmatprep.subr.mxu0 %v1673_v15 }
 0x2af   :  { %1755 = vmatpush2.msra.mxu0 %v1672_v16 }
 0x2b0   :  { %1756 = vmatprep.subr.mxu0 %v1670_v17 }
 0x2b1   :  { %1757 = vmatpush2.msra.mxu0 %v1669_v18 }
 0x2b2   :  { %1758 = vmatprep.subr.mxu0 %v1667_v19  ;;  %v1635_v19 = vld [vmem:[%s7294_s29 + $0x178] sm:$0xff] }
 0x2b3   :  { %1759 = vmatpush2.msra.mxu0 %v1666_v20 }
 0x2b4   :  { %1760 = vmatprep.subr.mxu0 %v1664_v21  ;;  %v1680_v21 = vld [vmem:[%s7294_s29 + $0x2e0] sm:$0xff] }
 0x2b5   :  { %1761 = vmatpush2.msra.mxu0 %v1663_v22  ;;  %v1632_v22 = vld [vmem:[%s7294_s29 + $0x160] sm:$0xff] }
 0x2b6   :  { %1762 = vmatprep.subr.mxu0 %v1661_v23  ;;  %v1677_v23 = vld [vmem:[%s7294_s29 + $0x2c8] sm:$0xff] }
 0x2b7   :  { %1763 = vmatpush2.msra.mxu0 %v1660_v24  ;;  %v1629_v24 = vld [vmem:[%s7294_s29 + $0x148] sm:$0xff] }
 0x2b8   :  { %1764 = vmatprep.subr.mxu0 %v1658_v25  ;;  %v1674_v25 = vld [vmem:[%s7294_s29 + $0x2b0] sm:$0xff] }
 0x2b9   :  { %1765 = vmatpush2.msra.mxu0 %v1657_v26  ;;  %v1626_v26 = vld [vmem:[%s7294_s29 + $0x130] sm:$0xff] }
 0x2ba   :  { %1766 = vmatprep.subr.mxu0 %v1655_v28  ;;  %v1671_v28 = vld [vmem:[%s7294_s29 + $0x298] sm:$0xff] }
 0x2bb   :  { %1767 = vmatpush2.msra.mxu0 %v1654_v29  ;;  %v1623_v29 = vld [vmem:[%s7294_s29 + $0x118] sm:$0xff] }
 0x2bc   :  { %1768 = vmatprep.subr.mxu0 %v1652_v30  ;;  %v1668_v30 = vld [vmem:[%s7294_s29 + $0x280] sm:$0xff] }
 0x2bd   :  { %1769 = vmatpush2.msra.mxu0 %v1651_v31  ;;  %v1620_v31 = vld [vmem:[%s7294_s29 + $0x100] sm:$0xff] }
 0x2be   :  { %1770 = vmatprep.subr.mxu0 %v1649_v33  ;;  %v1665_v33 = vld [vmem:[%s7294_s29 + $0x268] sm:$0xff] }
 0x2bf   :  { %1771 = vmatpush2.msra.mxu0 %v1648_v34  ;;  %v1617_v34 = vld [vmem:[%s7294_s29 + $0xe8] sm:$0xff] }
 0x2c0   :  { %1772 = vmatprep.subr.mxu0 %v1646_v35  ;;  %v1662_v35 = vld [vmem:[%s7294_s29 + $0x250] sm:$0xff] }
 0x2c1   :  { %1773 = vmatpush2.msra.mxu0 %v1645_v27  ;;  %v1614_v27 = vld [vmem:[%s7294_s29 + $0xd0] sm:$0xff] }
 0x2c2   :  { %1774 = vmatprep.subr.mxu0 %v1643_v38  ;;  %v1611_v38 = vld [vmem:[%s7294_s29 + $0xb8] sm:$0xff] }
 0x2c3   :  { %1775 = vmatpush2.msra.mxu0 %v1642_v40  ;;  %v1608_v40 = vld [vmem:[%s7294_s29 + $0xa0] sm:$0xff] }
 0x2c4   :  { %1776 = vmatprep.subr.mxu0 %v1640_v42  ;;  %v1605_v42 = vld [vmem:[%s7294_s29 + $0x88] sm:$0xff] }
 0x2c5   :  { %1777 = vmatpush2.msra.mxu0 %v1639_v44  ;;  %v1602_v44 = vld [vmem:[%s7294_s29 + $0x70] sm:$0xff] }
 0x2c6   :  { %1778 = vmatprep.subr.mxu0 %v1637_v46  ;;  %v1599_v46 = vld [vmem:[%s7294_s29 + $0x58] sm:$0xff] }
 0x2c7   :  { %1779 = vmatpush2.msra.mxu0 %v1636_v48  ;;  %v1596_v48 = vld [vmem:[%s7294_s29 + $0x40] sm:$0xff] }
 0x2cf   :  { %v1434_v56 = vpop.f32.mrf.mxu0 }
 0x2d1   :  { %v1436_v61 = vpop.f32.mrf.mxu0 }
 0x340   :  { %v1363_v63 = vpop.f32.mrf.mxu1  ;;  %v4044_v0 = vpop.f32.mrf.mxu0 }
 0x341   :  { %v1364_v2 = vadd.f32 %v1363_v63, %v1282_v59  ;;  %v1686_v59 = vld [vmem:[%s7294_s29 + $0x310] sm:$0xff]  ;;  %v2053_v63 = vld [vmem:[%s7296_s0 + $0x158] sm:$0xff] }
 0x342   :  { %v1365_v4 = vpop.f32.mrf.mxu1  ;;  %v4045_v5 = vpop.f32.mrf.mxu0 }
 0x343   :  { %v1435_v6 = vadd.f32 %v1434_v56, %v1364_v2  ;;  %v1366_v7 = vadd.f32 %v1365_v4, %v1286_v62  ;;  %v4046_v8 = vadd.f32 %v4045_v5, %v4044_v0  ;;  %v1692_v56 = vld [vmem:[%s7294_s29 + $0x340] sm:$0xff]  ;;  %v2055_v62 = vld [vmem:[%s7296_s0 + $0x168] sm:$0xff]  ;;  %v2052_v0 = vld [vmem:[%s7296_s0 + $0x150] sm:$0xff] }
 0x344   :  { %v2050_v2 = vld [vmem:[%s7296_s0 + $0x140] sm:$0xff]  ;;  %v2047_v4 = vld [vmem:[%s7296_s0 + $0x128] sm:$0xff] }
 0x345   :  { %v1437_v9 = vadd.f32 %v1436_v61, %v1366_v7  ;;  %v1506_v10 = vadd.f32 %v4046_v8, %v1290_v3  ;;  %v1582_v11 = vmul.f32 0.1, %v1435_v6  ;;  %vm1579_vm10 = vcmp.gt.f32.partialorder %v1435_v6, 0.0  ;;  %v2056_v61 = vld [vmem:[%s7296_s0 + $0x170] sm:$0xff]  ;;  %v2049_v3 = vld [vmem:[%s7296_s0 + $0x138] sm:$0xff]  ;;  %v2046_v5 = vld [vmem:[%s7296_s0 + $0x120] sm:$0xff] }
 0x346   :  { %v2043_v7 = vld [vmem:[%s7296_s0 + $0x108] sm:$0xff]  ;;  %v2041_v8 = vld [vmem:[%s7296_s0 + $0xf8] sm:$0xff] }
 0x347   :  { %vm1580_vm9 = vcmp.gt.f32.partialorder %v1437_v9, 0.0  ;;  %v1583_v12 = vmul.f32 0.1, %v1437_v9  ;;  %v5810_v17 = vsel %vm1579_vm10, %v1435_v6, %v1582_v11  ;;  %v2044_v6 = vld [vmem:[%s7296_s0 + $0x110] sm:$0xff]  ;;  %v2037_v11 = vld [vmem:[%s7296_s0 + $0xd8] sm:$0xff] }
 0x348   :  { %v1575_v13 = vpop.f32.mrf.mxu0 }
 0x349   :  { %v1576_v14 = vadd.f32 %v1575_v13, %v1506_v10  ;;  %v1586_v15 = vsel %vm1580_vm9, %v1437_v9, %v1583_v12  ;;  %v2040_v9 = vld [vmem:[%s7296_s0 + $0xf0] sm:$0xff]  ;;  %v2038_v10 = vld [vmem:[%s7296_s0 + $0xe0] sm:$0xff]  ;;  %v2035_v12 = vld [vmem:[%s7296_s0 + $0xc8] sm:$0xff] }
 0x34a   :  { %v4536_v16 = vpop.f32.mrf.mxu0  ;;  %1780 = vmatprep.mubr.f32.mxu0 %v1586_v15  ;;  %v2034_v13 = vld [vmem:[%s7296_s0 + $0xc0] sm:$0xff] }
 0x34b   :  { %vm1581_vm11 = vcmp.gt.f32.partialorder %v1576_v14, 0.0  ;;  %v1584_v18 = vmul.f32 0.1, %v1576_v14  ;;  %1781 = vmatmul.mubr.f32.vlgmr.msra.gmra.mxu0 %v5810_v17  ;;  %v2029_v16 = vld [vmem:[%s7296_s0 + $0x98] sm:$0xff] }
 0x34c   :  { %2273 = vmatprep.mubr.f32.mxu0 %v4688_v1 }
 0x34d   :  { %v5817_v20 = vsel %vm1581_vm11, %v1576_v14, %v1584_v18  ;;  %v2032_v14 = vld [vmem:[%s7296_s0 + $0xb0] sm:$0xff]  ;;  %v2026_v18 = vld [vmem:[%s7296_s0 + $0x80] sm:$0xff] }
 0x34e   :  { %3880 = vmatmul.mubr.msk.f32.vlgmr.msra.gmra.mxu1 %vm1160_vm6, %v5817_v20 }
 0x34f   :  { %4053 = vmatpush3.msra.mxu1 %v1635_v19  ;;  %1922 = vmatprep.mubr.f32.mxu1 %v1586_v15  ;;  %v2031_v15 = vld [vmem:[%s7296_s0 + $0xa8] sm:$0xff]  ;;  %v2025_v19 = vld [vmem:[%s7296_s0 + $0x78] sm:$0xff] }
 0x350   :  { %4054 = vmatprep.subr.mxu1 %v1680_v21  ;;  %v2022_v21 = vld [vmem:[%s7296_s0 + $0x60] sm:$0xff] }
 0x351   :  { %4055 = vmatpush3.msra.mxu1 %v1632_v22  ;;  %v2020_v22 = vld [vmem:[%s7296_s0 + $0x50] sm:$0xff] }
 0x352   :  { %4056 = vmatprep.subr.mxu1 %v1677_v23  ;;  %v2019_v23 = vld [vmem:[%s7296_s0 + $0x48] sm:$0xff] }
 0x353   :  { %4057 = vmatpush3.msra.mxu1 %v1629_v24  ;;  %v2017_v24 = vld [vmem:[%s7296_s0 + $0x38] sm:$0xff] }
 0x354   :  { %4058 = vmatprep.subr.mxu1 %v1674_v25  ;;  %v2016_v25 = vld [vmem:[%s7296_s0 + $0x30] sm:$0xff] }
 0x355   :  { %4059 = vmatpush3.msra.mxu1 %v1626_v26  ;;  %v2014_v26 = vld [vmem:[%s7296_s0 + $0x20] sm:$0xff] }
 0x356   :  { %4060 = vmatprep.subr.mxu1 %v1671_v28  ;;  %v2013_v28 = vld [vmem:[%s7296_s0 + $0x18] sm:$0xff] }
 0x357   :  { %4061 = vmatpush3.msra.mxu1 %v1623_v29  ;;  %v2011_v29 = vld [vmem:[%s7296_s0 + $0x8] sm:$0xff] }
 0x358   :  { %4062 = vmatprep.subr.mxu1 %v1668_v30  ;;  %v2010_v30 = vld [vmem:[%s7296_s0] sm:$0xff] }
 0x359   :  { %4063 = vmatpush3.msra.mxu1 %v1620_v31  ;;  %v2104_v31 = vld [vmem:[%s7296_s0 + $0x2f0] sm:$0xff] }
 0x35a   :  { %4064 = vmatprep.subr.mxu1 %v1665_v33  ;;  %v2103_v33 = vld [vmem:[%s7296_s0 + $0x2e8] sm:$0xff] }
 0x35b   :  { %4065 = vmatpush3.msra.mxu1 %v1617_v34  ;;  %v2101_v34 = vld [vmem:[%s7296_s0 + $0x2d8] sm:$0xff] }
 0x35c   :  { %4066 = vmatprep.subr.mxu1 %v1662_v35  ;;  %v2100_v35 = vld [vmem:[%s7296_s0 + $0x2d0] sm:$0xff] }
 0x35d   :  { %4067 = vmatpush3.msra.mxu1 %v1614_v27  ;;  %v2098_v27 = vld [vmem:[%s7296_s0 + $0x2c0] sm:$0xff] }
 0x35e   :  { %4068 = vmatprep.subr.mxu1 %v1659_v37  ;;  %v2097_v37 = vld [vmem:[%s7296_s0 + $0x2b8] sm:$0xff] }
 0x35f   :  { %4069 = vmatpush3.msra.mxu1 %v1611_v38  ;;  %v2095_v38 = vld [vmem:[%s7296_s0 + $0x2a8] sm:$0xff] }
 0x360   :  { %4070 = vmatprep.subr.mxu1 %v1656_v39  ;;  %v2094_v39 = vld [vmem:[%s7296_s0 + $0x2a0] sm:$0xff] }
 0x361   :  { %4071 = vmatpush3.msra.mxu1 %v1608_v40  ;;  %v2092_v40 = vld [vmem:[%s7296_s0 + $0x290] sm:$0xff] }
 0x362   :  { %4072 = vmatprep.subr.mxu1 %v1653_v41  ;;  %v2091_v41 = vld [vmem:[%s7296_s0 + $0x288] sm:$0xff] }
 0x363   :  { %4073 = vmatpush3.msra.mxu1 %v1605_v42  ;;  %v2089_v42 = vld [vmem:[%s7296_s0 + $0x278] sm:$0xff] }
 0x364   :  { %4074 = vmatprep.subr.mxu1 %v1650_v43  ;;  %v2088_v43 = vld [vmem:[%s7296_s0 + $0x270] sm:$0xff] }
 0x365   :  { %4075 = vmatpush3.msra.mxu1 %v1602_v44  ;;  %v2086_v44 = vld [vmem:[%s7296_s0 + $0x260] sm:$0xff] }
 0x366   :  { %4076 = vmatprep.subr.mxu1 %v1647_v45  ;;  %v2085_v45 = vld [vmem:[%s7296_s0 + $0x258] sm:$0xff] }
 0x367   :  { %4077 = vmatpush3.msra.mxu1 %v1599_v46  ;;  %v2083_v46 = vld [vmem:[%s7296_s0 + $0x248] sm:$0xff] }
 0x368   :  { %4078 = vmatprep.subr.mxu1 %v1644_v47  ;;  %v2082_v47 = vld [vmem:[%s7296_s0 + $0x240] sm:$0xff] }
 0x369   :  { %4079 = vmatpush3.msra.mxu1 %v1596_v48  ;;  %v2080_v48 = vld [vmem:[%s7296_s0 + $0x230] sm:$0xff] }
 0x36a   :  { %4080 = vmatprep.subr.mxu1 %v1641_v49  ;;  %v2079_v49 = vld [vmem:[%s7296_s0 + $0x228] sm:$0xff] }
 0x36b   :  { %4081 = vmatpush3.msra.mxu1 %v1593_v50  ;;  %v2077_v50 = vld [vmem:[%s7296_s0 + $0x218] sm:$0xff] }
 0x36c   :  { %4082 = vmatprep.subr.mxu1 %v1638_v51  ;;  %v2076_v51 = vld [vmem:[%s7296_s0 + $0x210] sm:$0xff] }
 0x36d   :  { %4083 = vmatpush3.msra.mxu1 %v1590_v52  ;;  %v2074_v52 = vld [vmem:[%s7296_s0 + $0x200] sm:$0xff] }
 0x36e   :  { %1923 = vmatmul.mubr.f32.vlgmr.msra.gmra.mxu1 %v5810_v17  ;;  %4537 = vmatprep.subr.mxu1 %v4688_v1  ;;  %v2028_v17 = vld [vmem:[%s7296_s0 + $0x90] sm:$0xff] }
 0x36f   :  { %4538 = vmatpush3.msra.mxu1 %v1695_v53  ;;  %4545 = vmatprep.mubr.msk.f32.mxu1 %vm4689_vm0, %v4688_v1  ;;  %v2073_v53 = vld [vmem:[%s7296_s0 + $0x1f8] sm:$0xff] }
 0x370   :  { %4539 = vmatprep.subr.mxu1 %v4688_v1 }
 0x371   :  { %4540 = vmatpush3.msra.mxu1 %v1692_v56  ;;  %v2071_v56 = vld [vmem:[%s7296_s0 + $0x1e8] sm:$0xff] }
 0x372   :  { %4541 = vmatprep.subr.mxu1 %v4688_v1 }
 0x373   :  { %4542 = vmatpush3.msra.mxu1 %v1689_v57  ;;  %v2070_v57 = vld [vmem:[%s7296_s0 + $0x1e0] sm:$0xff] }
 0x374   :  { %4543 = vmatprep.subr.mxu1 %v4688_v1 }
 0x375   :  { %4544 = vmatpush3.msra.mxu1 %v1686_v59  ;;  %v2068_v59 = vld [vmem:[%s7296_s0 + $0x1d0] sm:$0xff] }
 0x376   :  { %4546 = vmatmul.mubr.msk.f32.vlgmr.msra.gmra.mxu1 %vm1160_vm6, %v5817_v20  ;;  %2138 = vmatprep.subr.mxu1 %v2056_v61  ;;  %v2023_v20 = vld [vmem:[%s7296_s0 + $0x68] sm:$0xff] }
 0x377   :  { %2139 = vmatpush1.msra.mxu1 %v2055_v62  ;;  %v2067_v61 = vld [vmem:[%s7296_s0 + $0x1c8] sm:$0xff]  ;;  %v2065_v62 = vld [vmem:[%s7296_s0 + $0x1b8] sm:$0xff] }
 0x378   :  { %2140 = vmatprep.subr.mxu1 %v2053_v63  ;;  %v2064_v63 = vld [vmem:[%s7296_s0 + $0x1b0] sm:$0xff] }
 0x379   :  { %2141 = vmatpush1.msra.mxu1 %v2052_v0  ;;  %v2062_v0 = vld [vmem:[%s7296_s0 + $0x1a0] sm:$0xff] }
 0x37a   :  { %2142 = vmatprep.subr.mxu1 %v2050_v2  ;;  %v2061_v2 = vld [vmem:[%s7296_s0 + $0x198] sm:$0xff] }
 0x37b   :  { %2143 = vmatpush1.msra.mxu1 %v2049_v3  ;;  %v2059_v3 = vld [vmem:[%s7296_s0 + $0x188] sm:$0xff] }
 0x37c   :  { %2144 = vmatprep.subr.mxu1 %v2047_v4  ;;  %v2116_v4 = vld [vmem:[%s7296_s0 + $0x350] sm:$0xff] }
 0x37d   :  { %2145 = vmatpush1.msra.mxu1 %v2046_v5  ;;  %v2058_v5 = vld [vmem:[%s7296_s0 + $0x180] sm:$0xff]  ;;  %2233 = vmatprep.subr.mxu0 %v2116_v4  ;;  %v2024_v4 = vld [vmem:[%s7296_s0 + $0x70] sm:$0xff] }
 0x37e   :  { %2146 = vmatprep.subr.mxu1 %v2044_v6  ;;  %v2115_v6 = vld [vmem:[%s7296_s0 + $0x348] sm:$0xff] }
 0x37f   :  { %2147 = vmatpush1.msra.mxu1 %v2043_v7  ;;  %2234 = vmatpush1.msra.mxu0 %v2115_v6  ;;  %v2113_v7 = vld [vmem:[%s7296_s0 + $0x338] sm:$0xff] }
 0x380   :  { %2148 = vmatprep.subr.mxu1 %v2041_v8  ;;  %2235 = vmatprep.subr.mxu0 %v2113_v7  ;;  %v2112_v8 = vld [vmem:[%s7296_s0 + $0x330] sm:$0xff]  ;;  %v2021_v6 = vld [vmem:[%s7296_s0 + $0x58] sm:$0xff]  ;;  %v2066_v7 = vld [vmem:[%s7296_s0 + $0x1c0] sm:$0xff] }
 0x381   :  { %2149 = vmatpush1.msra.mxu1 %v2040_v9  ;;  %2236 = vmatpush1.msra.mxu0 %v2112_v8  ;;  %v2110_v9 = vld [vmem:[%s7296_s0 + $0x320] sm:$0xff] }
 0x382   :  { %2150 = vmatprep.subr.mxu1 %v2038_v10  ;;  %2237 = vmatprep.subr.mxu0 %v2110_v9  ;;  %v2109_v10 = vld [vmem:[%s7296_s0 + $0x318] sm:$0xff]  ;;  %v2018_v8 = vld [vmem:[%s7296_s0 + $0x40] sm:$0xff]  ;;  %v2063_v9 = vld [vmem:[%s7296_s0 + $0x1a8] sm:$0xff] }
 0x383   :  { %2151 = vmatpush1.msra.mxu1 %v2037_v11  ;;  %2238 = vmatpush1.msra.mxu0 %v2109_v10  ;;  %v2107_v11 = vld [vmem:[%s7296_s0 + $0x308] sm:$0xff] }
 0x384   :  { %2152 = vmatprep.subr.mxu1 %v2035_v12  ;;  %2239 = vmatprep.subr.mxu0 %v2107_v11  ;;  %v2106_v12 = vld [vmem:[%s7296_s0 + $0x300] sm:$0xff]  ;;  %v2015_v10 = vld [vmem:[%s7296_s0 + $0x28] sm:$0xff]  ;;  %v2060_v11 = vld [vmem:[%s7296_s0 + $0x190] sm:$0xff] }
 0x385   :  { %2153 = vmatpush1.msra.mxu1 %v2034_v13  ;;  %v2105_v13 = vld [vmem:[%s7296_s0 + $0x2f8] sm:$0xff]  ;;  %2240 = vmatpush1.msra.mxu0 %v2106_v12  ;;  %v2012_v12 = vld [vmem:[%s7296_s0 + $0x10] sm:$0xff] }
 0x386   :  { %2154 = vmatprep.subr.mxu1 %v2032_v14  ;;  %4092 = vmatprep.subr.mxu0 %v2105_v13  ;;  %v1696_v14 = vld [vmem:[%s7297_s8] sm:$0x7]  ;;  %v2117_v13 = vld [vmem:[%s7296_s0 + $0x358] sm:$0xff] }
 0x387   :  { %2155 = vmatpush1.msra.mxu1 %v2031_v15  ;;  %v1701_v15 = vrot.slane %v1696_v14, %v5798_v55 }
 0x388   :  { %2156 = vmatprep.subr.mxu1 %v2029_v16  ;;  %v1705_v16 = vrot.slane %v1696_v14, %v5803_v58 }
 0x389   :  { %2157 = vmatpush1.msra.mxu1 %v2028_v17 }
 0x38a   :  { %2158 = vmatprep.subr.mxu1 %v2026_v18 }
 0x38b   :  { %2159 = vmatpush1.msra.mxu1 %v2025_v19 }
 0x38c   :  { %2160 = vmatprep.subr.mxu1 %v2023_v20 }
 0x38d   :  { %2161 = vmatpush1.msra.mxu1 %v2022_v21 }
 0x38e   :  { %2162 = vmatprep.subr.mxu1 %v2020_v22 }
 0x38f   :  { %2163 = vmatpush1.msra.mxu1 %v2019_v23 }
 0x390   :  { %2164 = vmatprep.subr.mxu1 %v2017_v24 }
 0x391   :  { %2165 = vmatpush1.msra.mxu1 %v2016_v25 }
 0x392   :  { %2166 = vmatprep.subr.mxu1 %v2014_v26 }
 0x393   :  { %2167 = vmatpush1.msra.mxu1 %v2013_v28 }
 0x394   :  { %2168 = vmatprep.subr.mxu1 %v2011_v29 }
 0x395   :  { %2169 = vmatpush1.msra.mxu1 %v2010_v30 }
 0x396   :  { %2170 = vmatprep.subr.mxu1 %v2104_v31 }
 0x397   :  { %2171 = vmatpush2.msra.mxu1 %v2103_v33 }
 0x398   :  { %2172 = vmatprep.subr.mxu1 %v2101_v34 }
 0x399   :  { %2173 = vmatpush2.msra.mxu1 %v2100_v35  ;;  %v1709_v35 = vrot.slane %v1696_v14, %v5806_v60  ;;  %v2114_v14 = vld [vmem:[%s7296_s0 + $0x340] sm:$0xff] }
 0x39a   :  { %2174 = vmatprep.subr.mxu1 %v2098_v27 }
 0x39b   :  { %2175 = vmatpush2.msra.mxu1 %v2097_v37 }
 0x39c   :  { %2176 = vmatprep.subr.mxu1 %v2095_v38 }
 0x39d   :  { %2177 = vmatpush2.msra.mxu1 %v2094_v39 }
 0x39e   :  { %2178 = vmatprep.subr.mxu1 %v2092_v40 }
 0x39f   :  { %2179 = vmatpush2.msra.mxu1 %v2091_v41  ;;  %v2057_v41 = vld [vmem:[%s7296_s0 + $0x178] sm:$0xff] }
 0x3a0   :  { %2180 = vmatprep.subr.mxu1 %v2089_v42 }
 0x3a1   :  { %2181 = vmatpush2.msra.mxu1 %v2088_v43  ;;  %v2102_v43 = vld [vmem:[%s7296_s0 + $0x2e0] sm:$0xff] }
 0x3a2   :  { %2182 = vmatprep.subr.mxu1 %v2086_v44  ;;  %v2054_v44 = vld [vmem:[%s7296_s0 + $0x160] sm:$0xff] }
 0x3a3   :  { %2183 = vmatpush2.msra.mxu1 %v2085_v45  ;;  %v2051_v45 = vld [vmem:[%s7296_s0 + $0x148] sm:$0xff] }
 0x3a4   :  { %2184 = vmatprep.subr.mxu1 %v2083_v46  ;;  %v2096_v46 = vld [vmem:[%s7296_s0 + $0x2b0] sm:$0xff] }
 0x3a5   :  { %2185 = vmatpush2.msra.mxu1 %v2082_v47  ;;  %v2048_v47 = vld [vmem:[%s7296_s0 + $0x130] sm:$0xff] }
 0x3a6   :  { %2186 = vmatprep.subr.mxu1 %v2080_v48  ;;  %v2093_v48 = vld [vmem:[%s7296_s0 + $0x298] sm:$0xff] }
 0x3a7   :  { %2187 = vmatpush2.msra.mxu1 %v2079_v49  ;;  %v2045_v49 = vld [vmem:[%s7296_s0 + $0x118] sm:$0xff] }
 0x3a8   :  { %2188 = vmatprep.subr.mxu1 %v2077_v50  ;;  %v2090_v50 = vld [vmem:[%s7296_s0 + $0x280] sm:$0xff] }
 0x3a9   :  { %2189 = vmatpush2.msra.mxu1 %v2076_v51  ;;  %v2042_v51 = vld [vmem:[%s7296_s0 + $0x100] sm:$0xff] }
 0x3aa   :  { %2190 = vmatprep.subr.mxu1 %v2074_v52  ;;  %v2087_v52 = vld [vmem:[%s7296_s0 + $0x268] sm:$0xff] }
 0x3ab   :  { %2191 = vmatpush2.msra.mxu1 %v2073_v53  ;;  %v2039_v53 = vld [vmem:[%s7296_s0 + $0xe8] sm:$0xff] }
 0x3ac   :  { %2192 = vmatprep.subr.mxu1 %v2071_v56  ;;  %v2084_v56 = vld [vmem:[%s7296_s0 + $0x250] sm:$0xff] }
 0x3ad   :  { %2193 = vmatpush2.msra.mxu1 %v2070_v57  ;;  %v2036_v57 = vld [vmem:[%s7296_s0 + $0xd0] sm:$0xff] }
 0x3ae   :  { %2194 = vmatprep.subr.mxu1 %v2068_v59  ;;  %v2081_v59 = vld [vmem:[%s7296_s0 + $0x238] sm:$0xff] }
 0x3af   :  { %2195 = vmatpush2.msra.mxu1 %v2067_v61  ;;  %v2033_v61 = vld [vmem:[%s7296_s0 + $0xb8] sm:$0xff] }
 0x3b0   :  { %2196 = vmatprep.subr.mxu1 %v2065_v62  ;;  %v2078_v62 = vld [vmem:[%s7296_s0 + $0x220] sm:$0xff] }
 0x3b1   :  { %2197 = vmatpush2.msra.mxu1 %v2064_v63  ;;  %v2030_v63 = vld [vmem:[%s7296_s0 + $0xa0] sm:$0xff] }
 0x3b2   :  { %2198 = vmatprep.subr.mxu1 %v2062_v0  ;;  %v2075_v0 = vld [vmem:[%s7296_s0 + $0x208] sm:$0xff] }
 0x3b3   :  { %2199 = vmatpush2.msra.mxu1 %v2061_v2  ;;  %v2027_v2 = vld [vmem:[%s7296_s0 + $0x88] sm:$0xff] }
 0x3b4   :  { %2200 = vmatprep.subr.mxu1 %v2059_v3  ;;  %v2072_v3 = vld [vmem:[%s7296_s0 + $0x1f0] sm:$0xff] }
 0x3b5   :  { %2201 = vmatpush2.msra.mxu1 %v2058_v5  ;;  %v2069_v5 = vld [vmem:[%s7296_s0 + $0x1d8] sm:$0xff] }
 0x40b   :  { %v1782_v17 = vpop.f32.mrf.mxu0 }
 0x40c   :  { %v1783_v18 = vadd.f32 %v1782_v17, %v1701_v15  ;;  %v2111_v15 = vld [vmem:[%s7296_s0 + $0x328] sm:$0xff]  ;;  %v2475_v17 = vld [vmem:[%s7298_s2 + $0x170] sm:$0xff] }
 0x40d   :  { %v1784_v19 = vpop.f32.mrf.mxu0 }
 0x40e   :  { %v1785_v20 = vadd.f32 %v1784_v19, %v1705_v16  ;;  %v1853_v21 = vpop.f32.mrf.mxu1  ;;  %v2108_v16 = vld [vmem:[%s7296_s0 + $0x310] sm:$0xff]  ;;  %v2472_v19 = vld [vmem:[%s7298_s2 + $0x158] sm:$0xff] }
 0x40f   :  { %v1854_v22 = vadd.f32 %v1853_v21, %v1783_v18  ;;  %v2474_v18 = vld [vmem:[%s7298_s2 + $0x168] sm:$0xff]  ;;  %v2469_v21 = vld [vmem:[%s7298_s2 + $0x140] sm:$0xff] }
 0x410   :  { %v1855_v23 = vpop.f32.mrf.mxu1 }
 0x411   :  { %v1998_v24 = vadd.f32 %v1854_v22, %v5558_v36  ;;  %v1856_v25 = vadd.f32 %v1855_v23, %v1785_v20  ;;  %v2471_v20 = vld [vmem:[%s7298_s2 + $0x150] sm:$0xff]  ;;  %v2468_v22 = vld [vmem:[%s7298_s2 + $0x138] sm:$0xff]  ;;  %v2466_v23 = vld [vmem:[%s7298_s2 + $0x128] sm:$0xff] }
 0x413   :  { %v1999_v26 = vadd.f32 %v1856_v25, %v5551_v32  ;;  %v2004_v28 = vmul.f32 0.1, %v1998_v24  ;;  %vm2001_vm13 = vcmp.gt.f32.partialorder %v1998_v24, 0.0  ;;  %v2463_v25 = vld [vmem:[%s7298_s2 + $0x110] sm:$0xff] }
 0x415   :  { %vm2002_vm12 = vcmp.gt.f32.partialorder %v1999_v26, 0.0  ;;  %v2005_v29 = vmul.f32 0.1, %v1999_v26  ;;  %v6161_v31 = vsel %vm2001_vm13, %v1998_v24, %v2004_v28  ;;  %v2465_v24 = vld [vmem:[%s7298_s2 + $0x120] sm:$0xff]  ;;  %v2460_v28 = vld [vmem:[%s7298_s2 + $0xf8] sm:$0xff] }
 0x417   :  { %v6158_v30 = vsel %vm2002_vm12, %v1999_v26, %v2005_v29  ;;  %v2462_v26 = vld [vmem:[%s7298_s2 + $0x108] sm:$0xff]  ;;  %v2459_v29 = vld [vmem:[%s7298_s2 + $0xf0] sm:$0xff] }
 0x418   :  { %2202 = vmatprep.mubr.f32.mxu1 %v6158_v30 }
 0x419   :  { %2203 = vmatmul.mubr.f32.vlgmr.msra.gmra.mxu1 %v6161_v31 }
 0x41a   :  { %2692 = vmatprep.mubr.f32.mxu1 %v4688_v1 }
 0x42e   :  { %v4084_v33 = vpop.f32.mrf.mxu1 }
 0x430   :  { %v4085_v34 = vpop.f32.mrf.mxu1 }
 0x431   :  { %v4086_v36 = vadd.f32 %v4085_v34, %v4084_v33  ;;  %v2457_v33 = vld [vmem:[%s7298_s2 + $0xe0] sm:$0xff]  ;;  %v2456_v34 = vld [vmem:[%s7298_s2 + $0xd8] sm:$0xff] }
 0x433   :  { %v1925_v32 = vadd.f32 %v4086_v36, %v1709_v35  ;;  %v2454_v36 = vld [vmem:[%s7298_s2 + $0xc8] sm:$0xff]  ;;  %v2453_v35 = vld [vmem:[%s7298_s2 + $0xc0] sm:$0xff] }
 0x436   :  { %v1994_v27 = vpop.f32.mrf.mxu1 }
 0x437   :  { %v1995_v37 = vadd.f32 %v1994_v27, %v1925_v32  ;;  %v2451_v32 = vld [vmem:[%s7298_s2 + $0xb0] sm:$0xff]  ;;  %v2450_v27 = vld [vmem:[%s7298_s2 + $0xa8] sm:$0xff] }
 0x438   :  { %v4547_v38 = vpop.f32.mrf.mxu1 }
 0x439   :  { %v2000_v39 = vadd.f32 %v1995_v37, %v5452_v54  ;;  %v2099_v54 = vld [vmem:[%s7296_s0 + $0x2c8] sm:$0xff]  ;;  %v2448_v37 = vld [vmem:[%s7298_s2 + $0x98] sm:$0xff]  ;;  %v2447_v38 = vld [vmem:[%s7298_s2 + $0x90] sm:$0xff] }
 0x43b   :  { %vm2003_vm14 = vcmp.gt.f32.partialorder %v2000_v39, 0.0  ;;  %v2006_v40 = vmul.f32 0.1, %v2000_v39 }
 0x43d   :  { %v6170_v42 = vsel %vm2003_vm14, %v2000_v39, %v2006_v40  ;;  %v2445_v39 = vld [vmem:[%s7298_s2 + $0x80] sm:$0xff]  ;;  %v2444_v40 = vld [vmem:[%s7298_s2 + $0x78] sm:$0xff] }
 0x43e   :  { %3882 = vmatmul.mubr.msk.f32.vlgmr.msra.gmra.mxu0 %vm1160_vm6, %v6170_v42 }
 0x43f   :  { %4093 = vmatpush3.msra.mxu0 %v2057_v41  ;;  %2344 = vmatprep.mubr.f32.mxu0 %v6158_v30  ;;  %v2442_v41 = vld [vmem:[%s7298_s2 + $0x68] sm:$0xff] }
 0x440   :  { %4094 = vmatprep.subr.mxu0 %v2102_v43  ;;  %v2441_v43 = vld [vmem:[%s7298_s2 + $0x60] sm:$0xff] }
 0x441   :  { %4095 = vmatpush3.msra.mxu0 %v2054_v44  ;;  %v2439_v44 = vld [vmem:[%s7298_s2 + $0x50] sm:$0xff] }
 0x442   :  { %4096 = vmatprep.subr.mxu0 %v2099_v54  ;;  %v2438_v54 = vld [vmem:[%s7298_s2 + $0x48] sm:$0xff] }
 0x443   :  { %4097 = vmatpush3.msra.mxu0 %v2051_v45  ;;  %v2436_v45 = vld [vmem:[%s7298_s2 + $0x38] sm:$0xff] }
 0x444   :  { %4098 = vmatprep.subr.mxu0 %v2096_v46  ;;  %v2435_v46 = vld [vmem:[%s7298_s2 + $0x30] sm:$0xff] }
 0x445   :  { %4099 = vmatpush3.msra.mxu0 %v2048_v47  ;;  %v2433_v47 = vld [vmem:[%s7298_s2 + $0x20] sm:$0xff] }
 0x446   :  { %4100 = vmatprep.subr.mxu0 %v2093_v48  ;;  %v2432_v48 = vld [vmem:[%s7298_s2 + $0x18] sm:$0xff] }
 0x447   :  { %4101 = vmatpush3.msra.mxu0 %v2045_v49  ;;  %v2430_v49 = vld [vmem:[%s7298_s2 + $0x8] sm:$0xff] }
 0x448   :  { %4102 = vmatprep.subr.mxu0 %v2090_v50  ;;  %v2429_v50 = vld [vmem:[%s7298_s2] sm:$0xff] }
 0x449   :  { %4103 = vmatpush3.msra.mxu0 %v2042_v51  ;;  %v2523_v51 = vld [vmem:[%s7298_s2 + $0x2f0] sm:$0xff] }
 0x44a   :  { %4104 = vmatprep.subr.mxu0 %v2087_v52  ;;  %v2522_v52 = vld [vmem:[%s7298_s2 + $0x2e8] sm:$0xff] }
 0x44b   :  { %4105 = vmatpush3.msra.mxu0 %v2039_v53  ;;  %v2520_v53 = vld [vmem:[%s7298_s2 + $0x2d8] sm:$0xff] }
 0x44c   :  { %4106 = vmatprep.subr.mxu0 %v2084_v56  ;;  %v2519_v56 = vld [vmem:[%s7298_s2 + $0x2d0] sm:$0xff] }
 0x44d   :  { %4107 = vmatpush3.msra.mxu0 %v2036_v57  ;;  %v2517_v57 = vld [vmem:[%s7298_s2 + $0x2c0] sm:$0xff] }
 0x44e   :  { %4108 = vmatprep.subr.mxu0 %v2081_v59  ;;  %v2516_v59 = vld [vmem:[%s7298_s2 + $0x2b8] sm:$0xff] }
 0x44f   :  { %4109 = vmatpush3.msra.mxu0 %v2033_v61  ;;  %v2514_v61 = vld [vmem:[%s7298_s2 + $0x2a8] sm:$0xff] }
 0x450   :  { %4110 = vmatprep.subr.mxu0 %v2078_v62  ;;  %v2513_v62 = vld [vmem:[%s7298_s2 + $0x2a0] sm:$0xff] }
 0x451   :  { %4111 = vmatpush3.msra.mxu0 %v2030_v63  ;;  %v2511_v63 = vld [vmem:[%s7298_s2 + $0x290] sm:$0xff] }
 0x452   :  { %4112 = vmatprep.subr.mxu0 %v2075_v0  ;;  %v2510_v0 = vld [vmem:[%s7298_s2 + $0x288] sm:$0xff] }
 0x453   :  { %4113 = vmatpush3.msra.mxu0 %v2027_v2  ;;  %v2508_v2 = vld [vmem:[%s7298_s2 + $0x278] sm:$0xff] }
 0x454   :  { %4114 = vmatprep.subr.mxu0 %v2072_v3  ;;  %v2507_v3 = vld [vmem:[%s7298_s2 + $0x270] sm:$0xff] }
 0x455   :  { %4115 = vmatpush3.msra.mxu0 %v2024_v4  ;;  %v2505_v4 = vld [vmem:[%s7298_s2 + $0x260] sm:$0xff] }
 0x456   :  { %4116 = vmatprep.subr.mxu0 %v2069_v5  ;;  %v2504_v5 = vld [vmem:[%s7298_s2 + $0x258] sm:$0xff] }
 0x457   :  { %4117 = vmatpush3.msra.mxu0 %v2021_v6  ;;  %v2502_v6 = vld [vmem:[%s7298_s2 + $0x248] sm:$0xff] }
 0x458   :  { %4118 = vmatprep.subr.mxu0 %v2066_v7  ;;  %v2501_v7 = vld [vmem:[%s7298_s2 + $0x240] sm:$0xff] }
 0x459   :  { %4119 = vmatpush3.msra.mxu0 %v2018_v8  ;;  %v2499_v8 = vld [vmem:[%s7298_s2 + $0x230] sm:$0xff] }
 0x45a   :  { %4120 = vmatprep.subr.mxu0 %v2063_v9  ;;  %v2498_v9 = vld [vmem:[%s7298_s2 + $0x228] sm:$0xff] }
 0x45b   :  { %4121 = vmatpush3.msra.mxu0 %v2015_v10  ;;  %v2496_v10 = vld [vmem:[%s7298_s2 + $0x218] sm:$0xff] }
 0x45c   :  { %4122 = vmatprep.subr.mxu0 %v2060_v11  ;;  %v2495_v11 = vld [vmem:[%s7298_s2 + $0x210] sm:$0xff] }
 0x45d   :  { %4123 = vmatpush3.msra.mxu0 %v2012_v12  ;;  %v2493_v12 = vld [vmem:[%s7298_s2 + $0x200] sm:$0xff] }
 0x45e   :  { %2345 = vmatmul.mubr.f32.vlgmr.msra.gmra.mxu0 %v6161_v31  ;;  %4548 = vmatprep.subr.mxu0 %v4688_v1 }
 0x45f   :  { %4549 = vmatpush3.msra.mxu0 %v2117_v13  ;;  %4556 = vmatprep.mubr.msk.f32.mxu0 %vm4689_vm0, %v4688_v1  ;;  %v2492_v13 = vld [vmem:[%s7298_s2 + $0x1f8] sm:$0xff] }
 0x460   :  { %4550 = vmatprep.subr.mxu0 %v4688_v1 }
 0x461   :  { %4551 = vmatpush3.msra.mxu0 %v2114_v14  ;;  %v2490_v14 = vld [vmem:[%s7298_s2 + $0x1e8] sm:$0xff] }
 0x462   :  { %4552 = vmatprep.subr.mxu0 %v4688_v1 }
 0x463   :  { %4553 = vmatpush3.msra.mxu0 %v2111_v15  ;;  %v2489_v15 = vld [vmem:[%s7298_s2 + $0x1e0] sm:$0xff] }
 0x464   :  { %4554 = vmatprep.subr.mxu0 %v4688_v1 }
 0x465   :  { %4555 = vmatpush3.msra.mxu0 %v2108_v16  ;;  %v2487_v16 = vld [vmem:[%s7298_s2 + $0x1d0] sm:$0xff] }
 0x466   :  { %4557 = vmatmul.mubr.msk.f32.vlgmr.msra.gmra.mxu0 %vm1160_vm6, %v6170_v42  ;;  %2557 = vmatprep.subr.mxu0 %v2475_v17  ;;  %v2486_v17 = vld [vmem:[%s7298_s2 + $0x1c8] sm:$0xff] }
 0x467   :  { %2558 = vmatpush1.msra.mxu0 %v2474_v18  ;;  %v2484_v18 = vld [vmem:[%s7298_s2 + $0x1b8] sm:$0xff] }
 0x468   :  { %2559 = vmatprep.subr.mxu0 %v2472_v19  ;;  %v2483_v19 = vld [vmem:[%s7298_s2 + $0x1b0] sm:$0xff] }
 0x469   :  { %2560 = vmatpush1.msra.mxu0 %v2471_v20  ;;  %v2481_v20 = vld [vmem:[%s7298_s2 + $0x1a0] sm:$0xff] }
 0x46a   :  { %2561 = vmatprep.subr.mxu0 %v2469_v21  ;;  %v2480_v21 = vld [vmem:[%s7298_s2 + $0x198] sm:$0xff] }
 0x46b   :  { %2562 = vmatpush1.msra.mxu0 %v2468_v22  ;;  %v2478_v22 = vld [vmem:[%s7298_s2 + $0x188] sm:$0xff] }
 0x46c   :  { %2563 = vmatprep.subr.mxu0 %v2466_v23  ;;  %v2535_v23 = vld [vmem:[%s7298_s2 + $0x350] sm:$0xff] }
 0x46d   :  { %2564 = vmatpush1.msra.mxu0 %v2465_v24  ;;  %v2534_v24 = vld [vmem:[%s7298_s2 + $0x348] sm:$0xff]  ;;  %2652 = vmatprep.subr.mxu1 %v2535_v23  ;;  %v2443_v23 = vld [vmem:[%s7298_s2 + $0x70] sm:$0xff] }
 0x46e   :  { %2565 = vmatprep.subr.mxu0 %v2463_v25  ;;  %v2532_v25 = vld [vmem:[%s7298_s2 + $0x338] sm:$0xff]  ;;  %2653 = vmatpush1.msra.mxu1 %v2534_v24 }
 0x46f   :  { %2566 = vmatpush1.msra.mxu0 %v2462_v26  ;;  %v2477_v26 = vld [vmem:[%s7298_s2 + $0x180] sm:$0xff]  ;;  %2654 = vmatprep.subr.mxu1 %v2532_v25  ;;  %v2488_v24 = vld [vmem:[%s7298_s2 + $0x1d8] sm:$0xff] }
 0x470   :  { %2567 = vmatprep.subr.mxu0 %v2460_v28  ;;  %v2531_v28 = vld [vmem:[%s7298_s2 + $0x330] sm:$0xff]  ;;  %v2440_v25 = vld [vmem:[%s7298_s2 + $0x58] sm:$0xff] }
 0x471   :  { %2568 = vmatpush1.msra.mxu0 %v2459_v29  ;;  %2655 = vmatpush1.msra.mxu1 %v2531_v28  ;;  %v2529_v29 = vld [vmem:[%s7298_s2 + $0x320] sm:$0xff] }
 0x472   :  { %2569 = vmatprep.subr.mxu0 %v2457_v33  ;;  %2656 = vmatprep.subr.mxu1 %v2529_v29  ;;  %v2528_v33 = vld [vmem:[%s7298_s2 + $0x318] sm:$0xff]  ;;  %v2437_v28 = vld [vmem:[%s7298_s2 + $0x40] sm:$0xff]  ;;  %v2482_v29 = vld [vmem:[%s7298_s2 + $0x1a8] sm:$0xff] }
 0x473   :  { %2570 = vmatpush1.msra.mxu0 %v2456_v34  ;;  %2657 = vmatpush1.msra.mxu1 %v2528_v33  ;;  %v2526_v34 = vld [vmem:[%s7298_s2 + $0x308] sm:$0xff] }
 0x474   :  { %2571 = vmatprep.subr.mxu0 %v2454_v36  ;;  %2658 = vmatprep.subr.mxu1 %v2526_v34  ;;  %v2525_v36 = vld [vmem:[%s7298_s2 + $0x300] sm:$0xff]  ;;  %v2434_v33 = vld [vmem:[%s7298_s2 + $0x28] sm:$0xff]  ;;  %v2479_v34 = vld [vmem:[%s7298_s2 + $0x190] sm:$0xff] }
 0x475   :  { %2572 = vmatpush1.msra.mxu0 %v2453_v35  ;;  %2659 = vmatpush1.msra.mxu1 %v2525_v36  ;;  %v2524_v35 = vld [vmem:[%s7298_s2 + $0x2f8] sm:$0xff]  ;;  %v2431_v36 = vld [vmem:[%s7298_s2 + $0x10] sm:$0xff] }
 0x476   :  { %2573 = vmatprep.subr.mxu0 %v2451_v32  ;;  %4132 = vmatprep.subr.mxu1 %v2524_v35  ;;  %v2118_v32 = vld [vmem:[%s7299_s3] sm:$0x7]  ;;  %v2536_v35 = vld [vmem:[%s7298_s2 + $0x358] sm:$0xff] }
 0x477   :  { %2574 = vmatpush1.msra.mxu0 %v2450_v27 }
 0x478   :  { %2575 = vmatprep.subr.mxu0 %v2448_v37  ;;  %v2123_v37 = vrot.slane %v2118_v32, %v5798_v55 }
 0x479   :  { %2576 = vmatpush1.msra.mxu0 %v2447_v38  ;;  %v2127_v38 = vrot.slane %v2118_v32, %v5803_v58 }
 0x47a   :  { %2577 = vmatprep.subr.mxu0 %v2445_v39 }
 0x47b   :  { %2578 = vmatpush1.msra.mxu0 %v2444_v40 }
 0x47c   :  { %2579 = vmatprep.subr.mxu0 %v2442_v41 }
 0x47d   :  { %2580 = vmatpush1.msra.mxu0 %v2441_v43 }
 0x47e   :  { %2581 = vmatprep.subr.mxu0 %v2439_v44 }
 0x47f   :  { %2582 = vmatpush1.msra.mxu0 %v2438_v54 }
 0x480   :  { %2583 = vmatprep.subr.mxu0 %v2436_v45 }
 0x481   :  { %2584 = vmatpush1.msra.mxu0 %v2435_v46 }
 0x482   :  { %2585 = vmatprep.subr.mxu0 %v2433_v47 }
 0x483   :  { %2586 = vmatpush1.msra.mxu0 %v2432_v48 }
 0x484   :  { %2587 = vmatprep.subr.mxu0 %v2430_v49 }
 0x485   :  { %2588 = vmatpush1.msra.mxu0 %v2429_v50 }
 0x486   :  { %2589 = vmatprep.subr.mxu0 %v2523_v51 }
 0x487   :  { %2590 = vmatpush2.msra.mxu0 %v2522_v52 }
 0x488   :  { %2591 = vmatprep.subr.mxu0 %v2520_v53  ;;  %v2131_v53 = vrot.slane %v2118_v32, %v5806_v60  ;;  %v2533_v32 = vld [vmem:[%s7298_s2 + $0x340] sm:$0xff] }
 0x489   :  { %2592 = vmatpush2.msra.mxu0 %v2519_v56 }
 0x48a   :  { %2593 = vmatprep.subr.mxu0 %v2517_v57 }
 0x48b   :  { %2594 = vmatpush2.msra.mxu0 %v2516_v59 }
 0x48c   :  { %2595 = vmatprep.subr.mxu0 %v2514_v61 }
 0x48d   :  { %2596 = vmatpush2.msra.mxu0 %v2513_v62 }
 0x48e   :  { %2597 = vmatprep.subr.mxu0 %v2511_v63  ;;  %v2476_v63 = vld [vmem:[%s7298_s2 + $0x178] sm:$0xff] }
 0x48f   :  { %2598 = vmatpush2.msra.mxu0 %v2510_v0 }
 0x490   :  { %2599 = vmatprep.subr.mxu0 %v2508_v2  ;;  %v2521_v2 = vld [vmem:[%s7298_s2 + $0x2e0] sm:$0xff] }
 0x491   :  { %2600 = vmatpush2.msra.mxu0 %v2507_v3  ;;  %v2473_v3 = vld [vmem:[%s7298_s2 + $0x160] sm:$0xff] }
 0x492   :  { %2601 = vmatprep.subr.mxu0 %v2505_v4  ;;  %v2518_v4 = vld [vmem:[%s7298_s2 + $0x2c8] sm:$0xff] }
 0x493   :  { %2602 = vmatpush2.msra.mxu0 %v2504_v5  ;;  %v2470_v5 = vld [vmem:[%s7298_s2 + $0x148] sm:$0xff] }
 0x494   :  { %2603 = vmatprep.subr.mxu0 %v2502_v6  ;;  %v2515_v6 = vld [vmem:[%s7298_s2 + $0x2b0] sm:$0xff] }
 0x495   :  { %2604 = vmatpush2.msra.mxu0 %v2501_v7  ;;  %v2467_v7 = vld [vmem:[%s7298_s2 + $0x130] sm:$0xff] }
 0x496   :  { %2605 = vmatprep.subr.mxu0 %v2499_v8  ;;  %v2512_v8 = vld [vmem:[%s7298_s2 + $0x298] sm:$0xff] }
 0x497   :  { %2606 = vmatpush2.msra.mxu0 %v2498_v9  ;;  %v2464_v9 = vld [vmem:[%s7298_s2 + $0x118] sm:$0xff] }
 0x498   :  { %2607 = vmatprep.subr.mxu0 %v2496_v10  ;;  %v2509_v10 = vld [vmem:[%s7298_s2 + $0x280] sm:$0xff] }
 0x499   :  { %2608 = vmatpush2.msra.mxu0 %v2495_v11  ;;  %v2461_v11 = vld [vmem:[%s7298_s2 + $0x100] sm:$0xff] }
 0x49a   :  { %2609 = vmatprep.subr.mxu0 %v2493_v12  ;;  %v2506_v12 = vld [vmem:[%s7298_s2 + $0x268] sm:$0xff] }
 0x49b   :  { %2610 = vmatpush2.msra.mxu0 %v2492_v13  ;;  %v2458_v13 = vld [vmem:[%s7298_s2 + $0xe8] sm:$0xff] }
 0x49c   :  { %2611 = vmatprep.subr.mxu0 %v2490_v14  ;;  %v2503_v14 = vld [vmem:[%s7298_s2 + $0x250] sm:$0xff] }
 0x49d   :  { %2612 = vmatpush2.msra.mxu0 %v2489_v15  ;;  %v2455_v15 = vld [vmem:[%s7298_s2 + $0xd0] sm:$0xff] }
 0x49e   :  { %2613 = vmatprep.subr.mxu0 %v2487_v16  ;;  %v2500_v16 = vld [vmem:[%s7298_s2 + $0x238] sm:$0xff] }
 0x49f   :  { %2614 = vmatpush2.msra.mxu0 %v2486_v17  ;;  %v2452_v17 = vld [vmem:[%s7298_s2 + $0xb8] sm:$0xff] }
 0x4a0   :  { %2615 = vmatprep.subr.mxu0 %v2484_v18  ;;  %v2497_v18 = vld [vmem:[%s7298_s2 + $0x220] sm:$0xff] }
 0x4a1   :  { %2616 = vmatpush2.msra.mxu0 %v2483_v19  ;;  %v2449_v19 = vld [vmem:[%s7298_s2 + $0xa0] sm:$0xff] }
 0x4a2   :  { %2617 = vmatprep.subr.mxu0 %v2481_v20  ;;  %v2494_v20 = vld [vmem:[%s7298_s2 + $0x208] sm:$0xff] }
 0x4a3   :  { %2618 = vmatpush2.msra.mxu0 %v2480_v21  ;;  %v2446_v21 = vld [vmem:[%s7298_s2 + $0x88] sm:$0xff] }
 0x4a4   :  { %2619 = vmatprep.subr.mxu0 %v2478_v22  ;;  %v2491_v22 = vld [vmem:[%s7298_s2 + $0x1f0] sm:$0xff] }
 0x4a5   :  { %2620 = vmatpush2.msra.mxu0 %v2477_v26  ;;  %v2485_v26 = vld [vmem:[%s7298_s2 + $0x1c0] sm:$0xff] }
 0x4d9   :  { %v2204_v27 = vpop.f32.mrf.mxu1 }
 0x4da   :  { %v2205_v40 = vadd.f32 %v2204_v27, %v2123_v37  ;;  %v2530_v27 = vld [vmem:[%s7298_s2 + $0x328] sm:$0xff]  ;;  %v2527_v37 = vld [vmem:[%s7298_s2 + $0x310] sm:$0xff] }
 0x4db   :  { %v2206_v39 = vpop.f32.mrf.mxu1 }
 0x4dc   :  { %v2207_v43 = vadd.f32 %v2206_v39, %v2127_v38  ;;  %v2894_v38 = vld [vmem:[%s7256_s12 + $0x170] sm:$0xff]  ;;  %v2893_v39 = vld [vmem:[%s7256_s12 + $0x168] sm:$0xff] }
 0x4fe   :  { %v2275_v41 = vpop.f32.mrf.mxu0 }
 0x4ff   :  { %v2276_v44 = vadd.f32 %v2275_v41, %v2205_v40  ;;  %v2891_v40 = vld [vmem:[%s7256_s12 + $0x158] sm:$0xff]  ;;  %v2890_v41 = vld [vmem:[%s7256_s12 + $0x150] sm:$0xff] }
 0x500   :  { %v2277_v54 = vpop.f32.mrf.mxu0 }
 0x501   :  { %v2278_v45 = vadd.f32 %v2277_v54, %v2207_v43  ;;  %v2423_v46 = vmul.f32 0.1, %v2276_v44  ;;  %vm2420_vm15 = vcmp.gt.f32.partialorder %v2276_v44, 0.0  ;;  %v2888_v43 = vld [vmem:[%s7256_s12 + $0x140] sm:$0xff]  ;;  %v2885_v54 = vld [vmem:[%s7256_s12 + $0x128] sm:$0xff] }
 0x503   :  { %v2424_v47 = vmul.f32 0.1, %v2278_v45  ;;  %vm2421_vm1 = vcmp.gt.f32.partialorder %v2278_v45, 0.0  ;;  %v6510_v49 = vsel %vm2420_vm15, %v2276_v44, %v2423_v46  ;;  %v2887_v44 = vld [vmem:[%s7256_s12 + $0x138] sm:$0xff]  ;;  %v2882_v46 = vld [vmem:[%s7256_s12 + $0x110] sm:$0xff] }
 0x505   :  { %v2427_v48 = vsel %vm2421_vm1, %v2278_v45, %v2424_v47  ;;  %v2884_v45 = vld [vmem:[%s7256_s12 + $0x120] sm:$0xff]  ;;  %v2881_v47 = vld [vmem:[%s7256_s12 + $0x108] sm:$0xff] }
 0x506   :  { %2621 = vmatprep.mubr.f32.mxu0 %v2427_v48 }
 0x507   :  { %2622 = vmatmul.mubr.f32.vlgmr.msra.gmra.mxu0 %v6510_v49 }
 0x508   :  { %3111 = vmatprep.mubr.f32.mxu0 %v4688_v1 }
 0x51e   :  { %v4124_v50 = vpop.f32.mrf.mxu0 }
 0x520   :  { %v4125_v51 = vpop.f32.mrf.mxu0 }
 0x521   :  { %v4126_v52 = vadd.f32 %v4125_v51, %v4124_v50  ;;  %v2876_v50 = vld [vmem:[%s7256_s12 + $0xe0] sm:$0xff]  ;;  %v2875_v51 = vld [vmem:[%s7256_s12 + $0xd8] sm:$0xff] }
 0x523   :  { %v2347_v56 = vadd.f32 %v4126_v52, %v2131_v53  ;;  %v2873_v52 = vld [vmem:[%s7256_s12 + $0xc8] sm:$0xff]  ;;  %v2872_v53 = vld [vmem:[%s7256_s12 + $0xc0] sm:$0xff] }
 0x526   :  { %v2416_v57 = vpop.f32.mrf.mxu0 }
 0x527   :  { %v2417_v59 = vadd.f32 %v2416_v57, %v2347_v56  ;;  %v2870_v56 = vld [vmem:[%s7256_s12 + $0xb0] sm:$0xff]  ;;  %v2869_v57 = vld [vmem:[%s7256_s12 + $0xa8] sm:$0xff] }
 0x528   :  { %v4558_v61 = vpop.f32.mrf.mxu0 }
 0x529   :  { %vm2422_vm3 = vcmp.gt.f32.partialorder %v2417_v59, 0.0  ;;  %v2425_v62 = vmul.f32 0.1, %v2417_v59  ;;  %v2866_v61 = vld [vmem:[%s7256_s12 + $0x90] sm:$0xff] }
 0x52b   :  { %v6518_v0 = vsel %vm2422_vm3, %v2417_v59, %v2425_v62  ;;  %v2867_v59 = vld [vmem:[%s7256_s12 + $0x98] sm:$0xff]  ;;  %v2864_v62 = vld [vmem:[%s7256_s12 + $0x80] sm:$0xff] }
 0x52c   :  { %3884 = vmatmul.mubr.msk.f32.vlgmr.msra.gmra.mxu1 %vm1160_vm6, %v6518_v0 }
 0x52d   :  { %4133 = vmatpush3.msra.mxu1 %v2476_v63  ;;  %2763 = vmatprep.mubr.f32.mxu1 %v2427_v48  ;;  %v2879_v48 = vld [vmem:[%s7256_s12 + $0xf8] sm:$0xff] }
 0x52e   :  { %4134 = vmatprep.subr.mxu1 %v2521_v2  ;;  %v2863_v63 = vld [vmem:[%s7256_s12 + $0x78] sm:$0xff]  ;;  %v2860_v2 = vld [vmem:[%s7256_s12 + $0x60] sm:$0xff] }
 0x52f   :  { %4135 = vmatpush3.msra.mxu1 %v2473_v3  ;;  %v2858_v3 = vld [vmem:[%s7256_s12 + $0x50] sm:$0xff] }
 0x530   :  { %4136 = vmatprep.subr.mxu1 %v2518_v4  ;;  %v2857_v4 = vld [vmem:[%s7256_s12 + $0x48] sm:$0xff] }
 0x531   :  { %4137 = vmatpush3.msra.mxu1 %v2470_v5  ;;  %v2855_v5 = vld [vmem:[%s7256_s12 + $0x38] sm:$0xff] }
 0x532   :  { %4138 = vmatprep.subr.mxu1 %v2515_v6  ;;  %v2854_v6 = vld [vmem:[%s7256_s12 + $0x30] sm:$0xff] }
 0x533   :  { %4139 = vmatpush3.msra.mxu1 %v2467_v7  ;;  %v2852_v7 = vld [vmem:[%s7256_s12 + $0x20] sm:$0xff] }
 0x534   :  { %4140 = vmatprep.subr.mxu1 %v2512_v8  ;;  %v2851_v8 = vld [vmem:[%s7256_s12 + $0x18] sm:$0xff] }
 0x535   :  { %4141 = vmatpush3.msra.mxu1 %v2464_v9  ;;  %v2849_v9 = vld [vmem:[%s7256_s12 + $0x8] sm:$0xff] }
 0x536   :  { %4142 = vmatprep.subr.mxu1 %v2509_v10  ;;  %v2848_v10 = vld [vmem:[%s7256_s12] sm:$0xff] }
 0x537   :  { %4143 = vmatpush3.msra.mxu1 %v2461_v11  ;;  %v2942_v11 = vld [vmem:[%s7256_s12 + $0x2f0] sm:$0xff] }
 0x538   :  { %4144 = vmatprep.subr.mxu1 %v2506_v12  ;;  %v2941_v12 = vld [vmem:[%s7256_s12 + $0x2e8] sm:$0xff] }
 0x539   :  { %4145 = vmatpush3.msra.mxu1 %v2458_v13  ;;  %v2939_v13 = vld [vmem:[%s7256_s12 + $0x2d8] sm:$0xff] }
 0x53a   :  { %4146 = vmatprep.subr.mxu1 %v2503_v14  ;;  %v2938_v14 = vld [vmem:[%s7256_s12 + $0x2d0] sm:$0xff] }
 0x53b   :  { %4147 = vmatpush3.msra.mxu1 %v2455_v15  ;;  %v2936_v15 = vld [vmem:[%s7256_s12 + $0x2c0] sm:$0xff] }
 0x53c   :  { %4148 = vmatprep.subr.mxu1 %v2500_v16  ;;  %v2935_v16 = vld [vmem:[%s7256_s12 + $0x2b8] sm:$0xff] }
 0x53d   :  { %4149 = vmatpush3.msra.mxu1 %v2452_v17  ;;  %v2933_v17 = vld [vmem:[%s7256_s12 + $0x2a8] sm:$0xff] }
 0x53e   :  { %4150 = vmatprep.subr.mxu1 %v2497_v18  ;;  %v2932_v18 = vld [vmem:[%s7256_s12 + $0x2a0] sm:$0xff] }
 0x53f   :  { %4151 = vmatpush3.msra.mxu1 %v2449_v19  ;;  %v2930_v19 = vld [vmem:[%s7256_s12 + $0x290] sm:$0xff] }
 0x540   :  { %4152 = vmatprep.subr.mxu1 %v2494_v20  ;;  %v2929_v20 = vld [vmem:[%s7256_s12 + $0x288] sm:$0xff] }
 0x541   :  { %4153 = vmatpush3.msra.mxu1 %v2446_v21  ;;  %v2927_v21 = vld [vmem:[%s7256_s12 + $0x278] sm:$0xff] }
 0x542   :  { %4154 = vmatprep.subr.mxu1 %v2491_v22  ;;  %v2926_v22 = vld [vmem:[%s7256_s12 + $0x270] sm:$0xff] }
 0x543   :  { %4155 = vmatpush3.msra.mxu1 %v2443_v23  ;;  %v2924_v23 = vld [vmem:[%s7256_s12 + $0x260] sm:$0xff] }
 0x544   :  { %4156 = vmatprep.subr.mxu1 %v2488_v24  ;;  %v2923_v24 = vld [vmem:[%s7256_s12 + $0x258] sm:$0xff] }
 0x545   :  { %4157 = vmatpush3.msra.mxu1 %v2440_v25  ;;  %v2921_v25 = vld [vmem:[%s7256_s12 + $0x248] sm:$0xff] }
 0x546   :  { %4158 = vmatprep.subr.mxu1 %v2485_v26  ;;  %v2920_v26 = vld [vmem:[%s7256_s12 + $0x240] sm:$0xff] }
 0x547   :  { %4159 = vmatpush3.msra.mxu1 %v2437_v28  ;;  %v2918_v28 = vld [vmem:[%s7256_s12 + $0x230] sm:$0xff] }
 0x548   :  { %4160 = vmatprep.subr.mxu1 %v2482_v29  ;;  %v2917_v29 = vld [vmem:[%s7256_s12 + $0x228] sm:$0xff] }
 0x549   :  { %4161 = vmatpush3.msra.mxu1 %v2434_v33  ;;  %v2915_v33 = vld [vmem:[%s7256_s12 + $0x218] sm:$0xff] }
 0x54a   :  { %4162 = vmatprep.subr.mxu1 %v2479_v34  ;;  %v2914_v34 = vld [vmem:[%s7256_s12 + $0x210] sm:$0xff] }
 0x54b   :  { %4163 = vmatpush3.msra.mxu1 %v2431_v36  ;;  %v2912_v36 = vld [vmem:[%s7256_s12 + $0x200] sm:$0xff] }
 0x54c   :  { %2764 = vmatmul.mubr.f32.vlgmr.msra.gmra.mxu1 %v6510_v49  ;;  %4559 = vmatprep.subr.mxu1 %v4688_v1  ;;  %v2878_v49 = vld [vmem:[%s7256_s12 + $0xf0] sm:$0xff] }
 0x54d   :  { %4560 = vmatpush3.msra.mxu1 %v2536_v35  ;;  %4567 = vmatprep.mubr.msk.f32.mxu1 %vm4689_vm0, %v4688_v1  ;;  %v2911_v35 = vld [vmem:[%s7256_s12 + $0x1f8] sm:$0xff] }
 0x54e   :  { %4561 = vmatprep.subr.mxu1 %v4688_v1 }
 0x54f   :  { %4562 = vmatpush3.msra.mxu1 %v2533_v32  ;;  %v2909_v32 = vld [vmem:[%s7256_s12 + $0x1e8] sm:$0xff] }
 0x550   :  { %4563 = vmatprep.subr.mxu1 %v4688_v1 }
 0x551   :  { %4564 = vmatpush3.msra.mxu1 %v2530_v27  ;;  %v2908_v27 = vld [vmem:[%s7256_s12 + $0x1e0] sm:$0xff] }
 0x552   :  { %4565 = vmatprep.subr.mxu1 %v4688_v1 }
 0x553   :  { %4566 = vmatpush3.msra.mxu1 %v2527_v37  ;;  %v2906_v37 = vld [vmem:[%s7256_s12 + $0x1d0] sm:$0xff] }
 0x554   :  { %4568 = vmatmul.mubr.msk.f32.vlgmr.msra.gmra.mxu1 %vm1160_vm6, %v6518_v0  ;;  %2976 = vmatprep.subr.mxu1 %v2894_v38  ;;  %v2861_v0 = vld [vmem:[%s7256_s12 + $0x68] sm:$0xff] }
 0x555   :  { %2977 = vmatpush1.msra.mxu1 %v2893_v39  ;;  %v2905_v38 = vld [vmem:[%s7256_s12 + $0x1c8] sm:$0xff]  ;;  %v2903_v39 = vld [vmem:[%s7256_s12 + $0x1b8] sm:$0xff] }
 0x556   :  { %2978 = vmatprep.subr.mxu1 %v2891_v40  ;;  %v2902_v40 = vld [vmem:[%s7256_s12 + $0x1b0] sm:$0xff] }
 0x557   :  { %2979 = vmatpush1.msra.mxu1 %v2890_v41  ;;  %v2900_v41 = vld [vmem:[%s7256_s12 + $0x1a0] sm:$0xff] }
 0x558   :  { %2980 = vmatprep.subr.mxu1 %v2888_v43  ;;  %v2899_v43 = vld [vmem:[%s7256_s12 + $0x198] sm:$0xff] }
 0x559   :  { %2981 = vmatpush1.msra.mxu1 %v2887_v44  ;;  %v2897_v44 = vld [vmem:[%s7256_s12 + $0x188] sm:$0xff] }
 0x55a   :  { %2982 = vmatprep.subr.mxu1 %v2885_v54  ;;  %v2954_v54 = vld [vmem:[%s7256_s12 + $0x350] sm:$0xff] }
 0x55b   :  { %2983 = vmatpush1.msra.mxu1 %v2884_v45  ;;  %v2953_v45 = vld [vmem:[%s7256_s12 + $0x348] sm:$0xff]  ;;  %3071 = vmatprep.subr.mxu0 %v2954_v54  ;;  %v2862_v54 = vld [vmem:[%s7256_s12 + $0x70] sm:$0xff] }
 0x55c   :  { %2984 = vmatprep.subr.mxu1 %v2882_v46  ;;  %v2951_v46 = vld [vmem:[%s7256_s12 + $0x338] sm:$0xff]  ;;  %3072 = vmatpush1.msra.mxu0 %v2953_v45 }
 0x55d   :  { %2985 = vmatpush1.msra.mxu1 %v2881_v47  ;;  %v2896_v47 = vld [vmem:[%s7256_s12 + $0x180] sm:$0xff]  ;;  %3073 = vmatprep.subr.mxu0 %v2951_v46  ;;  %v2907_v45 = vld [vmem:[%s7256_s12 + $0x1d8] sm:$0xff] }
 0x55e   :  { %2986 = vmatprep.subr.mxu1 %v2879_v48  ;;  %v2950_v48 = vld [vmem:[%s7256_s12 + $0x330] sm:$0xff]  ;;  %v2859_v46 = vld [vmem:[%s7256_s12 + $0x58] sm:$0xff] }
 0x55f   :  { %2987 = vmatpush1.msra.mxu1 %v2878_v49  ;;  %3074 = vmatpush1.msra.mxu0 %v2950_v48  ;;  %v2948_v49 = vld [vmem:[%s7256_s12 + $0x320] sm:$0xff] }
 0x560   :  { %2988 = vmatprep.subr.mxu1 %v2876_v50  ;;  %3075 = vmatprep.subr.mxu0 %v2948_v49  ;;  %v2947_v50 = vld [vmem:[%s7256_s12 + $0x318] sm:$0xff]  ;;  %v2856_v48 = vld [vmem:[%s7256_s12 + $0x40] sm:$0xff]  ;;  %v2901_v49 = vld [vmem:[%s7256_s12 + $0x1a8] sm:$0xff] }
 0x561   :  { %2989 = vmatpush1.msra.mxu1 %v2875_v51  ;;  %3076 = vmatpush1.msra.mxu0 %v2947_v50  ;;  %v2945_v51 = vld [vmem:[%s7256_s12 + $0x308] sm:$0xff] }
 0x562   :  { %2990 = vmatprep.subr.mxu1 %v2873_v52  ;;  %3077 = vmatprep.subr.mxu0 %v2945_v51  ;;  %v2944_v52 = vld [vmem:[%s7256_s12 + $0x300] sm:$0xff]  ;;  %v2853_v50 = vld [vmem:[%s7256_s12 + $0x28] sm:$0xff]  ;;  %v2898_v51 = vld [vmem:[%s7256_s12 + $0x190] sm:$0xff] }
 0x563   :  { %2991 = vmatpush1.msra.mxu1 %v2872_v53  ;;  %3078 = vmatpush1.msra.mxu0 %v2944_v52  ;;  %v2943_v53 = vld [vmem:[%s7256_s12 + $0x2f8] sm:$0xff]  ;;  %v2850_v52 = vld [vmem:[%s7256_s12 + $0x10] sm:$0xff] }
 0x564   :  { %2992 = vmatprep.subr.mxu1 %v2870_v56  ;;  %4172 = vmatprep.subr.mxu0 %v2943_v53  ;;  %v2537_v56 = vld [vmem:[%s7255_s11] sm:$0x7]  ;;  %v2955_v53 = vld [vmem:[%s7256_s12 + $0x358] sm:$0xff] }
 0x565   :  { %2993 = vmatpush1.msra.mxu1 %v2869_v57 }
 0x566   :  { %2994 = vmatprep.subr.mxu1 %v2867_v59  ;;  %v2542_v59 = vrot.slane %v2537_v56, %v5798_v55 }
 0x567   :  { %2995 = vmatpush1.msra.mxu1 %v2866_v61  ;;  %v2546_v61 = vrot.slane %v2537_v56, %v5803_v58 }
 0x568   :  { %2996 = vmatprep.subr.mxu1 %v2864_v62 }
 0x569   :  { %2997 = vmatpush1.msra.mxu1 %v2863_v63 }
 0x56a   :  { %2998 = vmatprep.subr.mxu1 %v2861_v0 }
 0x56b   :  { %2999 = vmatpush1.msra.mxu1 %v2860_v2 }
 0x56c   :  { %3000 = vmatprep.subr.mxu1 %v2858_v3 }
 0x56d   :  { %3001 = vmatpush1.msra.mxu1 %v2857_v4 }
 0x56e   :  { %3002 = vmatprep.subr.mxu1 %v2855_v5 }
 0x56f   :  { %3003 = vmatpush1.msra.mxu1 %v2854_v6 }
 0x570   :  { %3004 = vmatprep.subr.mxu1 %v2852_v7 }
 0x571   :  { %3005 = vmatpush1.msra.mxu1 %v2851_v8 }
 0x572   :  { %3006 = vmatprep.subr.mxu1 %v2849_v9 }
 0x573   :  { %3007 = vmatpush1.msra.mxu1 %v2848_v10 }
 0x574   :  { %3008 = vmatprep.subr.mxu1 %v2942_v11 }
 0x575   :  { %3009 = vmatpush2.msra.mxu1 %v2941_v12 }
 0x576   :  { %3010 = vmatprep.subr.mxu1 %v2939_v13  ;;  %v2550_v13 = vrot.slane %v2537_v56, %v5806_v60  ;;  %v2952_v56 = vld [vmem:[%s7256_s12 + $0x340] sm:$0xff] }
 0x577   :  { %3011 = vmatpush2.msra.mxu1 %v2938_v14 }
 0x578   :  { %3012 = vmatprep.subr.mxu1 %v2936_v15 }
 0x579   :  { %3013 = vmatpush2.msra.mxu1 %v2935_v16 }
 0x57a   :  { %3014 = vmatprep.subr.mxu1 %v2933_v17 }
 0x57b   :  { %3015 = vmatpush2.msra.mxu1 %v2932_v18 }
 0x57c   :  { %3016 = vmatprep.subr.mxu1 %v2930_v19  ;;  %v2895_v19 = vld [vmem:[%s7256_s12 + $0x178] sm:$0xff] }
 0x57d   :  { %3017 = vmatpush2.msra.mxu1 %v2929_v20 }
 0x57e   :  { %3018 = vmatprep.subr.mxu1 %v2927_v21  ;;  %v2940_v21 = vld [vmem:[%s7256_s12 + $0x2e0] sm:$0xff] }
 0x57f   :  { %3019 = vmatpush2.msra.mxu1 %v2926_v22  ;;  %v2892_v22 = vld [vmem:[%s7256_s12 + $0x160] sm:$0xff] }
 0x580   :  { %3020 = vmatprep.subr.mxu1 %v2924_v23  ;;  %v2937_v23 = vld [vmem:[%s7256_s12 + $0x2c8] sm:$0xff] }
 0x581   :  { %3021 = vmatpush2.msra.mxu1 %v2923_v24  ;;  %v2889_v24 = vld [vmem:[%s7256_s12 + $0x148] sm:$0xff] }
 0x582   :  { %3022 = vmatprep.subr.mxu1 %v2921_v25  ;;  %v2934_v25 = vld [vmem:[%s7256_s12 + $0x2b0] sm:$0xff] }
 0x583   :  { %3023 = vmatpush2.msra.mxu1 %v2920_v26  ;;  %v2886_v26 = vld [vmem:[%s7256_s12 + $0x130] sm:$0xff] }
 0x584   :  { %3024 = vmatprep.subr.mxu1 %v2918_v28  ;;  %v2931_v28 = vld [vmem:[%s7256_s12 + $0x298] sm:$0xff] }
 0x585   :  { %3025 = vmatpush2.msra.mxu1 %v2917_v29  ;;  %v2883_v29 = vld [vmem:[%s7256_s12 + $0x118] sm:$0xff] }
 0x586   :  { %3026 = vmatprep.subr.mxu1 %v2915_v33  ;;  %v2928_v33 = vld [vmem:[%s7256_s12 + $0x280] sm:$0xff] }
 0x587   :  { %3027 = vmatpush2.msra.mxu1 %v2914_v34  ;;  %v2880_v34 = vld [vmem:[%s7256_s12 + $0x100] sm:$0xff] }
 0x588   :  { %3028 = vmatprep.subr.mxu1 %v2912_v36  ;;  %v2925_v36 = vld [vmem:[%s7256_s12 + $0x268] sm:$0xff] }
 0x589   :  { %3029 = vmatpush2.msra.mxu1 %v2911_v35  ;;  %v2877_v35 = vld [vmem:[%s7256_s12 + $0xe8] sm:$0xff] }
 0x58a   :  { %3030 = vmatprep.subr.mxu1 %v2909_v32  ;;  %v2922_v32 = vld [vmem:[%s7256_s12 + $0x250] sm:$0xff] }
 0x58b   :  { %3031 = vmatpush2.msra.mxu1 %v2908_v27  ;;  %v2874_v27 = vld [vmem:[%s7256_s12 + $0xd0] sm:$0xff] }
 0x58c   :  { %3032 = vmatprep.subr.mxu1 %v2906_v37  ;;  %v2919_v37 = vld [vmem:[%s7256_s12 + $0x238] sm:$0xff] }
 0x58d   :  { %3033 = vmatpush2.msra.mxu1 %v2905_v38  ;;  %v2871_v38 = vld [vmem:[%s7256_s12 + $0xb8] sm:$0xff] }
 0x58e   :  { %3034 = vmatprep.subr.mxu1 %v2903_v39  ;;  %v2916_v39 = vld [vmem:[%s7256_s12 + $0x220] sm:$0xff] }
 0x58f   :  { %3035 = vmatpush2.msra.mxu1 %v2902_v40  ;;  %v2868_v40 = vld [vmem:[%s7256_s12 + $0xa0] sm:$0xff] }
 0x590   :  { %3036 = vmatprep.subr.mxu1 %v2900_v41  ;;  %v2913_v41 = vld [vmem:[%s7256_s12 + $0x208] sm:$0xff] }
 0x591   :  { %3037 = vmatpush2.msra.mxu1 %v2899_v43  ;;  %v2865_v43 = vld [vmem:[%s7256_s12 + $0x88] sm:$0xff] }
 0x592   :  { %3038 = vmatprep.subr.mxu1 %v2897_v44  ;;  %v2910_v44 = vld [vmem:[%s7256_s12 + $0x1f0] sm:$0xff] }
 0x593   :  { %3039 = vmatpush2.msra.mxu1 %v2896_v47  ;;  %v2904_v47 = vld [vmem:[%s7256_s12 + $0x1c0] sm:$0xff] }
 0x594   :  { %4581 = vmatprep.subr.mxu1 %v4688_v1 }
 0x5c7   :  { %v2623_v57 = vpop.f32.mrf.mxu0 }
 0x5c8   :  { %v2624_v63 = vadd.f32 %v2623_v57, %v2542_v59  ;;  %v2949_v57 = vld [vmem:[%s7256_s12 + $0x328] sm:$0xff]  ;;  %v2946_v59 = vld [vmem:[%s7256_s12 + $0x310] sm:$0xff] }
 0x5c9   :  { %v2625_v62 = vpop.f32.mrf.mxu0 }
 0x5ca   :  { %v2626_v2 = vadd.f32 %v2625_v62, %v2546_v61  ;;  %v3301_v61 = vld [vmem:[%s7258_s14 + $0xf8] sm:$0xff] }
 0x5cb   :  { %v3285_v62 = vld [vmem:[%s7258_s14 + $0x78] sm:$0xff] }
 0x5ec   :  { %v2694_v0 = vpop.f32.mrf.mxu1 }
 0x5ed   :  { %v2695_v3 = vadd.f32 %v2694_v0, %v2624_v63  ;;  %v3300_v63 = vld [vmem:[%s7258_s14 + $0xf0] sm:$0xff] }
 0x5ee   :  { %v2696_v4 = vpop.f32.mrf.mxu1  ;;  %v3284_v0 = vld [vmem:[%s7258_s14 + $0x70] sm:$0xff] }
 0x5ef   :  { %v2697_v5 = vadd.f32 %v2696_v4, %v2626_v2  ;;  %v2842_v6 = vmul.f32 0.1, %v2695_v3  ;;  %vm2839_vm4 = vcmp.gt.f32.partialorder %v2695_v3, 0.0  ;;  %v3299_v2 = vld [vmem:[%s7258_s14 + $0xe8] sm:$0xff]  ;;  %v3298_v4 = vld [vmem:[%s7258_s14 + $0xe0] sm:$0xff] }
 0x5f1   :  { %v2843_v7 = vmul.f32 0.1, %v2697_v5  ;;  %vm2840_vm7 = vcmp.gt.f32.partialorder %v2697_v5, 0.0  ;;  %v6858_v9 = vsel %vm2839_vm4, %v2695_v3, %v2842_v6  ;;  %v3283_v3 = vld [vmem:[%s7258_s14 + $0x68] sm:$0xff]  ;;  %v3297_v6 = vld [vmem:[%s7258_s14 + $0xd8] sm:$0xff] }
 0x5f3   :  { %v2846_v8 = vsel %vm2840_vm7, %v2697_v5, %v2843_v7  ;;  %v3282_v5 = vld [vmem:[%s7258_s14 + $0x60] sm:$0xff]  ;;  %v3281_v7 = vld [vmem:[%s7258_s14 + $0x58] sm:$0xff] }
 0x5f4   :  { %3040 = vmatprep.mubr.f32.mxu1 %v2846_v8 }
 0x5f5   :  { %3041 = vmatmul.mubr.f32.vlgmr.msra.gmra.mxu1 %v6858_v9 }
 0x5f6   :  { %4589 = vmatprep.mubr.msk.f32.mxu1 %vm4689_vm0, %v4688_v1 }
 0x60c   :  { %v4164_v10 = vpop.f32.mrf.mxu1 }
 0x60e   :  { %v4165_v11 = vpop.f32.mrf.mxu1 }
 0x60f   :  { %v4166_v12 = vadd.f32 %v4165_v11, %v4164_v10  ;;  %v3295_v10 = vld [vmem:[%s7258_s14 + $0xc8] sm:$0xff] }
 0x610   :  { %v3279_v11 = vld [vmem:[%s7258_s14 + $0x48] sm:$0xff] }
 0x611   :  { %v2766_v14 = vadd.f32 %v4166_v12, %v2550_v13  ;;  %v3294_v12 = vld [vmem:[%s7258_s14 + $0xc0] sm:$0xff] }
 0x612   :  { %v3278_v13 = vld [vmem:[%s7258_s14 + $0x40] sm:$0xff] }
 0x614   :  { %v2835_v15 = vpop.f32.mrf.mxu1 }
 0x615   :  { %v2836_v16 = vadd.f32 %v2835_v15, %v2766_v14  ;;  %v3293_v14 = vld [vmem:[%s7258_s14 + $0xb8] sm:$0xff] }
 0x616   :  { %v4569_v17 = vpop.f32.mrf.mxu1  ;;  %v3277_v15 = vld [vmem:[%s7258_s14 + $0x38] sm:$0xff] }
 0x617   :  { %vm2841_vm8 = vcmp.gt.f32.partialorder %v2836_v16, 0.0  ;;  %v2844_v18 = vmul.f32 0.1, %v2836_v16  ;;  %v3276_v17 = vld [vmem:[%s7258_s14 + $0x30] sm:$0xff] }
 0x619   :  { %v6867_v20 = vsel %vm2841_vm8, %v2836_v16, %v2844_v18  ;;  %v3292_v16 = vld [vmem:[%s7258_s14 + $0xb0] sm:$0xff]  ;;  %v3291_v18 = vld [vmem:[%s7258_s14 + $0xa8] sm:$0xff] }
 0x61a   :  { %3886 = vmatmul.mubr.msk.f32.vlgmr.msra.gmra.mxu0 %vm1160_vm6, %v6867_v20 }
 0x61b   :  { %4173 = vmatpush3.msra.mxu0 %v2895_v19  ;;  %3182 = vmatprep.mubr.f32.mxu0 %v2846_v8  ;;  %v3296_v8 = vld [vmem:[%s7258_s14 + $0xd0] sm:$0xff]  ;;  %v3275_v19 = vld [vmem:[%s7258_s14 + $0x28] sm:$0xff] }
 0x61c   :  { %4174 = vmatprep.subr.mxu0 %v2940_v21  ;;  %v3274_v21 = vld [vmem:[%s7258_s14 + $0x20] sm:$0xff] }
 0x61d   :  { %4175 = vmatpush3.msra.mxu0 %v2892_v22  ;;  %v3289_v22 = vld [vmem:[%s7258_s14 + $0x98] sm:$0xff] }
 0x61e   :  { %4176 = vmatprep.subr.mxu0 %v2937_v23  ;;  %v3273_v23 = vld [vmem:[%s7258_s14 + $0x18] sm:$0xff] }
 0x61f   :  { %4177 = vmatpush3.msra.mxu0 %v2889_v24  ;;  %v3288_v24 = vld [vmem:[%s7258_s14 + $0x90] sm:$0xff] }
 0x620   :  { %4178 = vmatprep.subr.mxu0 %v2934_v25  ;;  %v3272_v25 = vld [vmem:[%s7258_s14 + $0x10] sm:$0xff] }
 0x621   :  { %4179 = vmatpush3.msra.mxu0 %v2886_v26  ;;  %v3287_v26 = vld [vmem:[%s7258_s14 + $0x88] sm:$0xff] }
 0x622   :  { %4180 = vmatprep.subr.mxu0 %v2931_v28  ;;  %v3271_v28 = vld [vmem:[%s7258_s14 + $0x8] sm:$0xff] }
 0x623   :  { %4181 = vmatpush3.msra.mxu0 %v2883_v29  ;;  %v3286_v29 = vld [vmem:[%s7258_s14 + $0x80] sm:$0xff] }
 0x624   :  { %4182 = vmatprep.subr.mxu0 %v2928_v33  ;;  %v3270_v33 = vld [vmem:[%s7258_s14] sm:$0xff] }
 0x625   :  { %4183 = vmatpush3.msra.mxu0 %v2880_v34  ;;  %v3305_v34 = vld [vmem:[%s7258_s14 + $0x118] sm:$0xff] }
 0x626   :  { %4184 = vmatprep.subr.mxu0 %v2925_v36  ;;  %4582 = vmatpush3.msra.mxu1 %v3305_v34  ;;  %v3304_v36 = vld [vmem:[%s7258_s14 + $0x110] sm:$0xff] }
 0x627   :  { %4185 = vmatpush3.msra.mxu0 %v2877_v35  ;;  %4583 = vmatprep.subr.mxu1 %v4688_v1  ;;  %v3303_v35 = vld [vmem:[%s7258_s14 + $0x108] sm:$0xff]  ;;  %v3651_v34 = vld [vmem:[%s7264_s20 + $0x10] sm:$0x3] }
 0x628   :  { %4186 = vmatprep.subr.mxu0 %v2922_v32  ;;  %4584 = vmatpush3.msra.mxu1 %v3304_v36  ;;  %v3302_v32 = vld [vmem:[%s7258_s14 + $0x100] sm:$0xff] }
 0x629   :  { %4187 = vmatpush3.msra.mxu0 %v2874_v27  ;;  %4585 = vmatprep.subr.mxu1 %v4688_v1  ;;  %v2956_v27 = vld [vmem:[%s7257_s13] sm:$0x7] }
 0x62a   :  { %4188 = vmatprep.subr.mxu0 %v2919_v37  ;;  %4586 = vmatpush3.msra.mxu1 %v3303_v35  ;;  %v3650_v35 = vld [vmem:[%s7264_s20 + $0x8] sm:$0xff] }
 0x62b   :  { %4189 = vmatpush3.msra.mxu0 %v2871_v38  ;;  %4587 = vmatprep.subr.mxu1 %v4688_v1  ;;  %v2961_v38 = vrot.slane %v2956_v27, %v5798_v55 }
 0x62c   :  { %4190 = vmatprep.subr.mxu0 %v2916_v39  ;;  %4588 = vmatpush3.msra.mxu1 %v3302_v32  ;;  %v2965_v39 = vrot.slane %v2956_v27, %v5803_v58  ;;  %v3649_v32 = vld [vmem:[%s7264_s20] sm:$0xff] }
 0x62d   :  { %4191 = vmatpush3.msra.mxu0 %v2868_v40  ;;  %4592 = vmatprep.subr.mxu1 %v4688_v1 }
 0x62e   :  { %4192 = vmatprep.subr.mxu0 %v2913_v41 }
 0x62f   :  { %4193 = vmatpush3.msra.mxu0 %v2865_v43 }
 0x630   :  { %4194 = vmatprep.subr.mxu0 %v2910_v44 }
 0x631   :  { %4195 = vmatpush3.msra.mxu0 %v2862_v54 }
 0x632   :  { %4196 = vmatprep.subr.mxu0 %v2907_v45 }
 0x633   :  { %4197 = vmatpush3.msra.mxu0 %v2859_v46 }
 0x634   :  { %4198 = vmatprep.subr.mxu0 %v2904_v47 }
 0x635   :  { %4199 = vmatpush3.msra.mxu0 %v2856_v48 }
 0x636   :  { %4200 = vmatprep.subr.mxu0 %v2901_v49 }
 0x637   :  { %4201 = vmatpush3.msra.mxu0 %v2853_v50 }
 0x638   :  { %4202 = vmatprep.subr.mxu0 %v2898_v51 }
 0x639   :  { %4203 = vmatpush3.msra.mxu0 %v2850_v52 }
 0x63a   :  { %3183 = vmatmul.mubr.f32.vlgmr.msra.gmra.mxu0 %v6858_v9  ;;  %4570 = vmatprep.subr.mxu0 %v4688_v1  ;;  %v3280_v9 = vld [vmem:[%s7258_s14 + $0x50] sm:$0xff] }
 0x63b   :  { %4571 = vmatpush3.msra.mxu0 %v2955_v53  ;;  %4578 = vmatprep.mubr.msk.f32.mxu0 %vm4689_vm0, %v4688_v1 }
 0x63c   :  { %4572 = vmatprep.subr.mxu0 %v4688_v1 }
 0x63d   :  { %4573 = vmatpush3.msra.mxu0 %v2952_v56  ;;  %v2969_v56 = vrot.slane %v2956_v27, %v5806_v60  ;;  %v3471_v60 = vld [vmem:[%s7260_s16 + $0x70] sm:$0xff] }
 0x63e   :  { %4574 = vmatprep.subr.mxu0 %v4688_v1  ;;  %v3736_v27 = vld [vmem:[%s7266_s22 + $0x10] sm:$0x3] }
 0x63f   :  { %4575 = vmatpush3.msra.mxu0 %v2949_v57 }
 0x640   :  { %4576 = vmatprep.subr.mxu0 %v4688_v1 }
 0x641   :  { %4577 = vmatpush3.msra.mxu0 %v2946_v59 }
 0x642   :  { %4579 = vmatmul.mubr.msk.f32.vlgmr.msra.gmra.mxu0 %vm1160_vm6, %v6867_v20  ;;  %4212 = vmatprep.subr.mxu0 %v3301_v61  ;;  %v3290_v20 = vld [vmem:[%s7258_s14 + $0xa0] sm:$0xff] }
 0x643   :  { %4213 = vmatpush3.msra.mxu0 %v3285_v62 }
 0x644   :  { %4214 = vmatprep.subr.mxu0 %v3300_v63 }
 0x645   :  { %4215 = vmatpush3.msra.mxu0 %v3284_v0  ;;  %v3472_v0 = vld [vmem:[%s7260_s16 + $0x78] sm:$0xff] }
 0x646   :  { %4216 = vmatprep.subr.mxu0 %v3299_v2  ;;  %v3469_v2 = vld [vmem:[%s7260_s16 + $0x60] sm:$0xff] }
 0x647   :  { %4217 = vmatpush3.msra.mxu0 %v3283_v3  ;;  %v3468_v3 = vld [vmem:[%s7260_s16 + $0x58] sm:$0xff] }
 0x648   :  { %4218 = vmatprep.subr.mxu0 %v3298_v4  ;;  %v3467_v4 = vld [vmem:[%s7260_s16 + $0x50] sm:$0xff] }
 0x649   :  { %4219 = vmatpush3.msra.mxu0 %v3282_v5  ;;  %v3466_v5 = vld [vmem:[%s7260_s16 + $0x48] sm:$0xff] }
 0x64a   :  { %4220 = vmatprep.subr.mxu0 %v3297_v6  ;;  %v3465_v6 = vld [vmem:[%s7260_s16 + $0x40] sm:$0xff] }
 0x64b   :  { %4221 = vmatpush3.msra.mxu0 %v3281_v7  ;;  %v3464_v7 = vld [vmem:[%s7260_s16 + $0x38] sm:$0xff] }
 0x64c   :  { %4222 = vmatprep.subr.mxu0 %v3296_v8  ;;  %v3463_v8 = vld [vmem:[%s7260_s16 + $0x30] sm:$0xff] }
 0x64d   :  { %4223 = vmatpush3.msra.mxu0 %v3280_v9  ;;  %v3462_v9 = vld [vmem:[%s7260_s16 + $0x28] sm:$0xff] }
 0x64e   :  { %4224 = vmatprep.subr.mxu0 %v3295_v10  ;;  %v3461_v10 = vld [vmem:[%s7260_s16 + $0x20] sm:$0xff] }
 0x64f   :  { %4225 = vmatpush3.msra.mxu0 %v3279_v11  ;;  %v3460_v11 = vld [vmem:[%s7260_s16 + $0x18] sm:$0xff] }
 0x650   :  { %4226 = vmatprep.subr.mxu0 %v3294_v12  ;;  %v3459_v12 = vld [vmem:[%s7260_s16 + $0x10] sm:$0xff] }
 0x651   :  { %4227 = vmatpush3.msra.mxu0 %v3278_v13  ;;  %v3458_v13 = vld [vmem:[%s7260_s16 + $0x8] sm:$0xff] }
 0x652   :  { %4228 = vmatprep.subr.mxu0 %v3293_v14  ;;  %v3457_v14 = vld [vmem:[%s7260_s16] sm:$0xff] }
 0x653   :  { %4229 = vmatpush3.msra.mxu0 %v3277_v15  ;;  %v3552_v15 = vld [vmem:[%s7262_s18 + $0x10] sm:$0x3] }
 0x654   :  { %4230 = vmatprep.subr.mxu0 %v3292_v16  ;;  %v3551_v16 = vld [vmem:[%s7262_s18 + $0x8] sm:$0xff] }
 0x655   :  { %4231 = vmatpush3.msra.mxu0 %v3276_v17 }
 0x656   :  { %4232 = vmatprep.subr.mxu0 %v3291_v18 }
 0x657   :  { %4233 = vmatpush3.msra.mxu0 %v3275_v19 }
 0x658   :  { %4234 = vmatprep.subr.mxu0 %v3290_v20  ;;  %v3888_v20 = vld [vmem:[%s7259_s15] ss:$0 sm:$0xff] }
 0x659   :  { %4235 = vmatpush3.msra.mxu0 %v3274_v21 }
 0x65a   :  { %4236 = vmatprep.subr.mxu0 %v3289_v22 }
 0x65b   :  { %4237 = vmatpush3.msra.mxu0 %v3273_v23 }
 0x65c   :  { %4238 = vmatprep.subr.mxu0 %v3288_v24 }
 0x65d   :  { %4239 = vmatpush3.msra.mxu0 %v3272_v25 }
 0x65e   :  { %4240 = vmatprep.subr.mxu0 %v3287_v26  ;;  %v3550_v26 = vld [vmem:[%s7262_s18] sm:$0xff] }
 0x65f   :  { %4241 = vmatpush3.msra.mxu0 %v3271_v28  ;;  %v3890_v28 = vld [vmem:[%s7261_s17] ss:$0 sm:$0xff] }
 0x660   :  { %4242 = vmatprep.subr.mxu0 %v3286_v29 }
 0x661   :  { %4243 = vmatpush3.msra.mxu0 %v3270_v33 }
 0x662   :  { %4627 = vmatprep.subr.mxu0 %v4688_v1 }
 0x6b5   :  { %v3042_v37 = vpop.f32.mrf.mxu1 }
 0x6b6   :  { %v3043_v41 = vadd.f32 %v3042_v37, %v2961_v38  ;;  %v3735_v37 = vld [vmem:[%s7266_s22 + $0x8] sm:$0xff]  ;;  %v3734_v38 = vld [vmem:[%s7266_s22] sm:$0xff] }
 0x6b7   :  { %v3044_v40 = vpop.f32.mrf.mxu1 }
 0x6b8   :  { %v3045_v44 = vadd.f32 %v3044_v40, %v2965_v39  ;;  %v3891_v39 = vld [vmem:[%s7263_s19] ss:$0 sm:$0xff] }
 0x6da   :  { %v3113_v43 = vpop.f32.mrf.mxu0 }
 0x6db   :  { %v3114_v54 = vadd.f32 %v3113_v43, %v3043_v41 }
 0x6dc   :  { %v3115_v45 = vpop.f32.mrf.mxu0 }
 0x6dd   :  { %v3258_v46 = vadd.f32 %v3114_v54, %v6161_v31  ;;  %v3116_v47 = vadd.f32 %v3115_v45, %v3045_v44  ;;  %v3894_v54 = vld [vmem:[%s7265_s21] ss:$0 sm:$0xff] }
 0x6df   :  { %v3259_v48 = vadd.f32 %v3116_v47, %v6158_v30  ;;  %v3264_v49 = vmul.f32 0.1, %v3258_v46  ;;  %vm3261_vm10 = vcmp.gt.f32.partialorder %v3258_v46, 0.0  ;;  %v3897_v47 = vld [vmem:[%s7267_s23] ss:$0 sm:$0xff]  ;;  %s4693_s23 = smov [#allocation2]  }
 0x6e1   :  { %vm3262_vm9 = vcmp.gt.f32.partialorder %v3259_v48, 0.0  ;;  %v3265_v50 = vmul.f32 0.1, %v3259_v48  ;;  %v3267_v55 = vsel %vm3261_vm10, %v3258_v46, %v3264_v49 }
 0x6e3   :  { %v3268_v51 = vsel %vm3262_vm9, %v3259_v48, %v3265_v50 }
 0x6e4   :  { %3380 = vmatprep.mubr.f32.mxu0 %v3268_v51 }
 0x6e5   :  { %3381 = vmatmul.mubr.f32.vlgmr.msra.gmra.mxu0 %v3267_v55 }
 0x6e6   :  { %4633 = vmatprep.mubr.msk.f32.mxu0 %vm4689_vm0, %v4688_v1  ;;  %4628 = vmatpush3.msk.msra.mxu0 %vm462_vm2, %v3552_v15 }
 0x6e7   :  { %4629 = vmatprep.subr.mxu0 %v4688_v1 }
 0x6e8   :  { %4630 = vmatpush3.msra.mxu0 %v3551_v16 }
 0x6e9   :  { %4631 = vmatprep.subr.mxu0 %v4688_v1 }
 0x6ea   :  { %4632 = vmatpush3.msra.mxu0 %v3550_v26 }
 0x6eb   :  { %4636 = vmatprep.subr.mxu0 %v4688_v1 }
 0x6fa   :  { %v4204_v58 = vpop.f32.mrf.mxu0 }
 0x6fc   :  { %v4205_v52 = vpop.f32.mrf.mxu0 }
 0x6fd   :  { %v4206_v53 = vadd.f32 %v4205_v52, %v4204_v58 }
 0x6ff   :  { %v3185_v31 = vadd.f32 %v4206_v53, %v2969_v56 }
 0x702   :  { %v3254_v57 = vpop.f32.mrf.mxu0 }
 0x703   :  { %v3255_v59 = vadd.f32 %v3254_v57, %v3185_v31 }
 0x704   :  { %v4580_v30 = vpop.f32.mrf.mxu0 }
 0x705   :  { %v3260_v61 = vadd.f32 %v3255_v59, %v6170_v42  ;;  %v3470_v42 = vld [vmem:[%s7260_s16 + $0x68] sm:$0xff] }
 0x707   :  { %vm3263_vm11 = vcmp.gt.f32.partialorder %v3260_v61, 0.0  ;;  %v3266_v62 = vmul.f32 0.1, %v3260_v61 }
 0x709   :  { %v3269_v63 = vsel %vm3263_vm11, %v3260_v61, %v3266_v62 }
 0x70a   :  { %4590 = vmatmul.mubr.msk.f32.vlgmr.msra.gmra.mxu1 %vm1160_vm6, %v3269_v63 }
 0x70b   :  { %4624 = vmatprep.mubr.msk.f32.mxu1 %vm4689_vm0, %v4688_v1  ;;  %4593 = vmatpush3.msra.mxu1 %v3472_v0 }
 0x70c   :  { %4594 = vmatprep.subr.mxu1 %v4688_v1 }
 0x70d   :  { %4595 = vmatpush3.msra.mxu1 %v3471_v60 }
 0x70e   :  { %4596 = vmatprep.subr.mxu1 %v4688_v1 }
 0x70f   :  { %4597 = vmatpush3.msra.mxu1 %v3470_v42 }
 0x710   :  { %4598 = vmatprep.subr.mxu1 %v4688_v1 }
 0x711   :  { %4599 = vmatpush3.msra.mxu1 %v3469_v2 }
 0x712   :  { %4600 = vmatprep.subr.mxu1 %v4688_v1 }
 0x713   :  { %4601 = vmatpush3.msra.mxu1 %v3468_v3 }
 0x714   :  { %4602 = vmatprep.subr.mxu1 %v4688_v1 }
 0x715   :  { %4603 = vmatpush3.msra.mxu1 %v3467_v4 }
 0x716   :  { %4604 = vmatprep.subr.mxu1 %v4688_v1 }
 0x717   :  { %4605 = vmatpush3.msra.mxu1 %v3466_v5 }
 0x718   :  { %4606 = vmatprep.subr.mxu1 %v4688_v1 }
 0x719   :  { %4607 = vmatpush3.msra.mxu1 %v3465_v6 }
 0x71a   :  { %4608 = vmatprep.subr.mxu1 %v4688_v1 }
 0x71b   :  { %4609 = vmatpush3.msra.mxu1 %v3464_v7 }
 0x71c   :  { %4610 = vmatprep.subr.mxu1 %v4688_v1 }
 0x71d   :  { %4611 = vmatpush3.msra.mxu1 %v3463_v8 }
 0x71e   :  { %4612 = vmatprep.subr.mxu1 %v4688_v1 }
 0x71f   :  { %4613 = vmatpush3.msra.mxu1 %v3462_v9 }
 0x720   :  { %4614 = vmatprep.subr.mxu1 %v4688_v1 }
 0x721   :  { %4615 = vmatpush3.msra.mxu1 %v3461_v10 }
 0x722   :  { %4616 = vmatprep.subr.mxu1 %v4688_v1 }
 0x723   :  { %4617 = vmatpush3.msra.mxu1 %v3460_v11 }
 0x724   :  { %4618 = vmatprep.subr.mxu1 %v4688_v1 }
 0x725   :  { %4619 = vmatpush3.msra.mxu1 %v3459_v12 }
 0x726   :  { %4620 = vmatprep.subr.mxu1 %v4688_v1 }
 0x727   :  { %4621 = vmatpush3.msra.mxu1 %v3458_v13 }
 0x728   :  { %4622 = vmatprep.subr.mxu1 %v4688_v1 }
 0x729   :  { %4623 = vmatpush3.msra.mxu1 %v3457_v14 }
 0x7a5   :  { %v4244_v17 = vpop.f32.mrf.mxu0 }
 0x7a7   :  { %v4245_v18 = vpop.f32.mrf.mxu0 }
 0x7a8   :  { %v4246_v19 = vadd.f32 %v4245_v18, %v4244_v17 }
 0x7aa   :  { %v3383_v21 = vadd.f32 %v4246_v19, %v3888_v20 }
 0x7ca   :  { %v3452_v22 = vpop.f32.mrf.mxu1 }
 0x7cb   :  { %v3453_v23 = vadd.f32 %v3452_v22, %v3383_v21 }
 0x7cc   :  { %v4591_v24 = vpop.f32.mrf.mxu1 }
 0x7cd   :  { %v3456_v25 = vmax.f32 %v3453_v23, 0.0 }
 0x7cf   :  { %4625 = vmatmul.mubr.f32.vlgmr.msra.gmra.mxu1 %v3456_v25 }
 0x88f   :  { %v3546_v29 = vpop.f32.mrf.mxu1 }
 0x890   :  { %v3547_v33 = vadd.f32 %v3890_v28, %v3546_v29 }
 0x891   :  { %v4626_v36 = vpop.f32.mrf.mxu1 }
 0x892   :  { %4634 = vmatmul.mubr.msk.f32.vlgmr.msra.gmra.mxu0 %vm458_vm5, %v3547_v33 }
 0x893   :  { %4637 = vmatpush3.msk.msra.mxu0 %vm462_vm2, %v3651_v34  ;;  %4642 = vmatprep.mubr.msk.f32.mxu0 %vm4689_vm0, %v4688_v1 }
 0x894   :  { %4638 = vmatprep.subr.mxu0 %v4688_v1 }
 0x895   :  { %4639 = vmatpush3.msra.mxu0 %v3650_v35 }
 0x896   :  { %4640 = vmatprep.subr.mxu0 %v4688_v1 }
 0x897   :  { %4641 = vmatpush3.msra.mxu0 %v3649_v32 }
 0x898   :  { %4643 = vmatmul.mubr.msk.f32.vlgmr.msra.gmra.mxu0 %vm458_vm5, %v3547_v33  ;;  %4645 = vmatprep.subr.mxu0 %v4688_v1 }
 0x899   :  { %4646 = vmatpush3.msk.msra.mxu0 %vm462_vm2, %v3736_v27  ;;  %4651 = vmatprep.mubr.msk.f32.mxu0 %vm4689_vm0, %v4688_v1  ;;  %vm3636_vm2 = vcmask 17408   ;;  %vm3732_vm0 = vcmask 41984  }
 0x89a   :  { %4647 = vmatprep.subr.mxu0 %v4688_v1 }
 0x89b   :  { %4648 = vmatpush3.msra.mxu0 %v3735_v37 }
 0x89c   :  { %4649 = vmatprep.subr.mxu0 %v4688_v1 }
 0x89d   :  { %4650 = vmatpush3.msra.mxu0 %v3734_v38 }
 0x89e   :  { %4652 = vmatmul.mubr.msk.f32.vlgmr.msra.gmra.mxu0 %vm458_vm5, %v3547_v33 }
 0x952   :  { %v3632_v40 = vpop.f32.mrf.mxu0 }
 0x953   :  { %v3633_v41 = vadd.f32 %v3891_v39, %v3632_v40 }
 0x954   :  { %v4635_v43 = vpop.f32.mrf.mxu0 }
 0x955   :  { %v3637_v44 = vsel %vm3636_vm2, %v3633_v41, -inf }
 0x956   :  { %3638 = vmax.xlane.f32.xlu0 %v3637_v44 }
 0x958   :  { %v3728_v45 = vpop.f32.mrf.mxu0 }
 0x959   :  { %v3729_v1 = vadd.f32 %v3894_v54, %v3728_v45 }
 0x95a   :  { %v4644_v46 = vpop.f32.mrf.mxu0 }
 0x95b   :  { %3733 = vst.msk [vmem:[%s7269_s25] sm:$0x3] %vm3732_vm0, %v3729_v1  ;;  %s3826_s25 = sshll.u32 %s4693_s23, 4  ;;  %s3827_s25 = int_to_ptr.vmem [resolvable:$true] %s3826_s25 }
 0x95c   :  { %s4666_s5 = scalar_lea.vmem %s3827_s25, 32  ;;  %p4671_p1 = scmp.lt.s32.totalorder %s3827_s25, %s3827_s25 }
 0x95d   :  { %p4667_p0 = scmp.ne.s32.totalorder %s3827_s25, %s4666_s5  ;;  %p4672_p2 = scmp.lt.s32.totalorder %s4666_s5, %s4666_s5 }
 0x95e   :  { %v3813_v48 = vpop.f32.mrf.mxu0 }
 0x95f   :  { %v3814_v49 = vadd.f32 %v3897_v47, %v3813_v48  ;;  %p4673_p3 = por %p4672_p2, %p4671_p1 }
 0x960   :  { %v4653_v50 = vpop.f32.mrf.mxu0 }
 0x961   :  { %v3817_v51 = vmul.f32 1.442695, %v3814_v49  ;;  %p4674_p4 = pnand %p4673_p3, %p4667_p0 }
 0x963   :  { %4660 = vpow2.f32 %v3817_v51 }
 0x970   :  { %v4661_v55 = vpop.eup %4660 }
 0x971   :  { %3819 = vst.msk [vmem:[%s7270_s26] sm:$0x3] %vm3732_vm0, %v4661_v55 }
 0x9df   :  { %v3639_v58 = vpop.xlane.xlu0 %3638 }
 0x9e0   :  { %v3640_v52 = vsub.f32 %v3633_v41, %v3639_v58 }
 0x9e2   :  { %v3641_v53 = vmul.f32 1.442695, %v3640_v52 }
 0x9e4   :  { %4662 = vpow2.f32 %v3641_v53 }
 0x9f1   :  { %v4663_v56 = vpop.eup %4662 }
 0x9f2   :  { %v3643_v31 = vsel %vm3636_vm2, %v4663_v56, 0.0 }
 0x9f3   :  { %3644 = vadd.xlane.f32.xlu1 %v3643_v31 }
 0xa7c   :  { %v3645_v57 = vpop.xlane.xlu1 %3644 }
 0xa7d   :  { %4664 = vrcp.f32 %v3645_v57 }
 0xa8a   :  { %v4665_v59 = vpop.eup %4664 }
 0xa8b   :  { %v3647_v30 = vmul.f32 %v4665_v59, %v4663_v56 }
 0xa8d   :  { %3648 = vst.msk [vmem:[#allocation2] sm:$0x3] %vm3636_vm2, %v3647_v30 }
 0xa8e   :  { %4677 = shalt.err (!%p4674_p4)
}
 0xa8f   :  { %3829 = dma.vmem_to_hbm [thread:$0]  %s3827_s25, 32, %s7268_s24, [#allocation3]  }
 0xa90   :  { %4686 = dma.done.wait [#allocation3], 32  }
 0xa91   :  { %4687 = vsyncadd [#allocation3], 4294967264 }
 0xa92   :  { %3841 = vsyncpa [#allocation3], 1 }

</bundles_post_ra>
